<compile_context>
chip_gen: v5e
topology: v5e:2x2
jax: 0.10.0
libtpu: 0.0.40
codegen_flags: <defaults>
</compile_context>

<pallas_src>
import functools

import jax
import jax.numpy as jnp
from jax.experimental import pallas as pl
from jax.experimental.pallas import tpu as pltpu

IMAGENET_MEAN = (0.485, 0.456, 0.406)
IMAGENET_STD = (0.229, 0.224, 0.225)


def _round_up(x, m):
    return (x + m - 1) // m * m


def _pick_row_chunk(n):
    """Largest multiple of 8 (<= 64) dividing n; bounds vreg pressure."""
    for c in range(64, 0, -8):
        if c <= n and n % c == 0:
            return c
    return n


# ----------------------------------------------------------------------------
# Fused normalize -> conv3x3+ReLU -> conv3x3+ReLU -> Gram kernel.
# One grid step = one image; all intermediates stay in VMEM.
# ----------------------------------------------------------------------------
def _make_fused_kernel(*, Wp, hw_out, chunk, cout, inv_scale):
    offs = tuple(dy * Wp + dx for dy in range(3) for dx in range(3))

    def kernel(taps1_ref, mask1_ref, mask2_ref, w1_ref, b1_ref, w2_ref, b2_ref,
               gram_ref, g_ref):
        # conv1 + ReLU: single K=9*Cin matmul (normalization already folded
        # into the glue-built taps).  mask1 zeroes the padded-border rows/cols
        # so the scratch buffer doubles as conv2's zero padding.
        f1 = jnp.dot(taps1_ref[0], w1_ref[...],
                     preferred_element_type=jnp.float32)
        f1 = jnp.maximum(f1 + b1_ref[...], 0.0) * mask1_ref[...]
        g_ref[...] = f1.astype(g_ref.dtype)

        # conv2 + ReLU + Gram, chunked over output rows.
        # Taps are 9 shifted row-windows of the VMEM-resident conv1 output,
        # concatenated lane-wise -> one K=9*64 matmul per chunk
        # (no per-tap K=64 matmuls, no HBM im2col).
        acc = jnp.zeros((cout, cout), jnp.float32)
        for m in range(0, hw_out, chunk):
            taps2 = jnp.concatenate(
                [g_ref[m + o:m + o + chunk, :] for o in offs], axis=-1)
            f2 = jnp.dot(taps2, w2_ref[...],
                         preferred_element_type=jnp.float32)
            f2 = jnp.maximum(f2 + b2_ref[...], 0.0) * mask2_ref[m:m + chunk, :]
            # Gram partial sum: contraction over rows (MXU-native lhs
            # transpose; no explicit vxpose in the hot loop).
            acc = acc + jax.lax.dot_general(
                f2, f2, (((0,), (0,)), ((), ())),
                preferred_element_type=jnp.float32)
        gram_ref[0] = acc * inv_scale

    return kernel


def gram_features(images_nhwc, params, *, compute_dtype=jnp.float32):
    """ImageNet-normalize -> conv1+ReLU -> conv2+ReLU -> Gram, fully fused."""
    (w1, b1), (w2, b2) = params
    B2, H, W, Cin = images_nhwc.shape
    C1 = w1.shape[-1]                      # conv1 out channels (= conv2 in)
    C2 = w2.shape[-1]                      # conv2 out channels (gram size)
    Hp, Wp = H + 2, W + 2
    hw_out = H * Wp                        # conv2 output rows (incl. border cols)
    g_rows = _round_up(hw_out + 2 * Wp + 2, 8)   # conv1 buffer rows (+halo)
    chunk = _pick_row_chunk(hw_out)
    inv_scale = 1.0 / float(H * W * C2)

    # ---- tiny XLA glue: normalization folded into the conv1 im2col ----
    mean = jnp.asarray(IMAGENET_MEAN, jnp.float32).reshape(1, 1, 1, Cin)
    inv_std = 1.0 / jnp.asarray(IMAGENET_STD, jnp.float32).reshape(1, 1, 1, Cin)
    xn = images_nhwc.astype(jnp.float32) * (0.5 * inv_std) + (0.5 - mean) * inv_std
    xp2 = jnp.pad(xn, ((0, 0), (2, 2), (2, 2), (0, 0)))
    taps1 = jnp.concatenate(
        [xp2[:, dy:dy + Hp, dx:dx + Wp, :].reshape(B2, Hp * Wp, Cin)
         for dy in range(3) for dx in range(3)], axis=-1)    # (B2, Hp*Wp, 9*Cin)
    taps1 = jnp.pad(taps1, ((0, 0), (0, g_rows - Hp * Wp), (0, 0)))
    taps1 = taps1.astype(compute_dtype)

    idx = jnp.arange(g_rows)
    rp, cp = idx // Wp, idx % Wp
    mask1 = ((rp >= 1) & (rp <= H) & (cp >= 1) & (cp <= W)
             ).astype(jnp.float32)[:, None]                  # (g_rows, 1)
    mask2 = ((jnp.arange(hw_out) % Wp) < W
             ).astype(jnp.float32)[:, None]                  # (hw_out, 1)

    w1m = w1.reshape(9 * Cin, C1).astype(compute_dtype)      # (27, 64)
    w2m = w2.reshape(9 * C1, C2).astype(compute_dtype)       # (576, 64)
    b1m = b1.reshape(1, C1).astype(jnp.float32)
    b2m = b2.reshape(1, C2).astype(jnp.float32)

    kernel = _make_fused_kernel(Wp=Wp, hw_out=hw_out, chunk=chunk,
                                cout=C2, inv_scale=inv_scale)
    return pl.pallas_call(
        kernel,
        out_shape=jax.ShapeDtypeStruct((B2, C2, C2), jnp.float32),
        grid=(B2,),
        in_specs=[
            pl.BlockSpec((1, g_rows, 9 * Cin), lambda b: (b, 0, 0)),
            pl.BlockSpec((g_rows, 1), lambda b: (0, 0)),
            pl.BlockSpec((hw_out, 1), lambda b: (0, 0)),
            pl.BlockSpec((9 * Cin, C1), lambda b: (0, 0)),
            pl.BlockSpec((1, C1), lambda b: (0, 0)),
            pl.BlockSpec((9 * C1, C2), lambda b: (0, 0)),
            pl.BlockSpec((1, C2), lambda b: (0, 0)),
        ],
        out_specs=pl.BlockSpec((1, C2, C2), lambda b: (b, 0, 0)),
        scratch_shapes=[pltpu.VMEM((g_rows, C1), compute_dtype)],
        compiler_params=pltpu.CompilerParams(
            dimension_semantics=("parallel",)),
    )(taps1, mask1, mask2, w1m, b1m, w2m, b2m)


# ----------------------------------------------------------------------------
# L1 loss (mean reduction) * lambda_style  -> scalar written to SMEM.
# Accepted as a separate tiny call: the Gram tensors are only (B, 64, 64).
# ----------------------------------------------------------------------------
def _l1_kernel(a_ref, b_ref, o_ref, *, scale):
    o_ref[0, 0] = jnp.sum(jnp.abs(a_ref[...] - b_ref[...])) * scale


def l1_scaled(a, b, lambda_style):
    scale = float(lambda_style) / float(a.size)
    out = pl.pallas_call(
        functools.partial(_l1_kernel, scale=scale),
        out_shape=jax.ShapeDtypeStruct((1, 1), jnp.float32),
        in_specs=[
            pl.BlockSpec(memory_space=pltpu.MemorySpace.VMEM),
            pl.BlockSpec(memory_space=pltpu.MemorySpace.VMEM),
        ],
        out_specs=pl.BlockSpec(memory_space=pltpu.MemorySpace.SMEM),
    )(a, b)
    return out[0, 0]


# ----------------------------------------------------------------------------
# StyleLoss forward
# ----------------------------------------------------------------------------
def init_vgg_params(key):
    """VGG19.features truncated at perceptual_layers=3 (two 3x3 convs)."""
    k1, k2, k3, k4 = jax.random.split(key, 4)
    w1 = jax.random.normal(k1, (3, 3, 3, 64), jnp.float32) * 0.10   # HWIO
    b1 = jax.random.normal(k2, (64,), jnp.float32) * 0.10
    w2 = jax.random.normal(k3, (3, 3, 64, 64), jnp.float32) * 0.05  # HWIO
    b2 = jax.random.normal(k4, (64,), jnp.float32) * 0.05
    return (w1, b1), (w2, b2)


def style_loss(inputs_nchw, targets_nchw, params, lambda_style, *,
               compute_dtype=jnp.float32):
    if lambda_style == 0:
        return jnp.asarray(0.0, jnp.float32)  # scalar, consistent with main path
    B = inputs_nchw.shape[0]
    # Batch-concatenate inputs and targets -> one fused pass over 2B images
    # (also provides a "parallel" grid axis >= 2 for v7x's two TensorCores).
    x = jnp.concatenate([inputs_nchw, targets_nchw], axis=0)
    x = jnp.transpose(x, (0, 2, 3, 1)).astype(jnp.float32)   # NCHW -> NHWC
    grams = gram_features(x, params, compute_dtype=compute_dtype)
    gx = grams[:B]
    gy = jax.lax.stop_gradient(grams[B:])   # mirrors .detach() on targets
    return l1_scaled(gx, gy, lambda_style)


if __name__ == "__main__":
    key = jax.random.PRNGKey(0)
    kp, ki, kt = jax.random.split(key, 3)
    params = init_vgg_params(kp)

    B, C, H, W = 2, 3, 16, 16
    inputs = jax.random.uniform(ki, (B, C, H, W), jnp.float32, -1.0, 1.0)
    targets = jax.random.uniform(kt, (B, C, H, W), jnp.float32, -1.0, 1.0)

    loss_fn = jax.jit(functools.partial(style_loss, params=params,
                                        lambda_style=10.0))
    loss = loss_fn(inputs, targets)
    jax.block_until_ready(loss)
    print("KERNEL_OK")
</pallas_src>

<mosaic_0001>
module attributes {stable_mosaic.version = 11 : i64} {
  func.func @_l1_kernel(%arg0: memref<2x64x64xf32, #tpu.memory_space<vmem>>, %arg1: memref<2x64x64xf32, #tpu.memory_space<vmem>>, %arg2: memref<1x1xf32, #tpu.memory_space<smem>>) attributes {dimension_semantics = [], scalar_prefetch = 0 : i64, scratch_operands = 0 : i64, tpu.core_type = #tpu.core_type<tc>} {
    %c0 = arith.constant 0 : index
    %c0_0 = arith.constant 0 : index
    %c0_1 = arith.constant 0 : index
    %0 = vector.load %arg0[%c0, %c0_0, %c0_1] : memref<2x64x64xf32, #tpu.memory_space<vmem>>, vector<2x64x64xf32>
    %c0_2 = arith.constant 0 : index
    %c0_3 = arith.constant 0 : index
    %c0_4 = arith.constant 0 : index
    %1 = vector.load %arg1[%c0_2, %c0_3, %c0_4] : memref<2x64x64xf32, #tpu.memory_space<vmem>>, vector<2x64x64xf32>
    %2 = arith.subf %0, %1 : vector<2x64x64xf32>
    %3 = math.absf %2 : vector<2x64x64xf32>
    %4 = vector.shape_cast %3 : vector<2x64x64xf32> to vector<1x2x64x64xf32>
    %cst = arith.constant dense<0.000000e+00> : vector<1xf32>
    %5 = vector.multi_reduction <add>, %4, %cst [1, 2, 3] : vector<1x2x64x64xf32> to vector<1xf32>
    %6 = vector.shape_cast %5 : vector<1xf32> to vector<1x1x1x1xf32>
    %7 = vector.extract %6[0, 0, 0, 0] : f32 from vector<1x1x1x1xf32>
    %cst_5 = arith.constant 0.00122070313 : f32
    %8 = arith.mulf %7, %cst_5 : f32
    %c0_6 = arith.constant 0 : index
    %c0_7 = arith.constant 0 : index
    %9 = memref.load %arg2[%c0_6, %c0_7] : memref<1x1xf32, #tpu.memory_space<smem>>
    memref.store %8, %arg2[%c0_6, %c0_7] : memref<1x1xf32, #tpu.memory_space<smem>>
    return
  }
}

module attributes {stable_mosaic.version = 11 : i64} {
  func.func @kernel(%arg0: i32, %arg1: memref<1x328x27xf32, #tpu.memory_space<vmem>>, %arg2: memref<328x1xf32, #tpu.memory_space<vmem>>, %arg3: memref<288x1xf32, #tpu.memory_space<vmem>>, %arg4: memref<27x64xf32, #tpu.memory_space<vmem>>, %arg5: memref<1x64xf32, #tpu.memory_space<vmem>>, %arg6: memref<576x64xf32, #tpu.memory_space<vmem>>, %arg7: memref<1x64xf32, #tpu.memory_space<vmem>>, %arg8: memref<1x64x64xf32, #tpu.memory_space<vmem>>, %arg9: memref<328x64xf32, #tpu.memory_space<vmem>>) attributes {dimension_semantics = [#tpu.dimension_semantics<parallel>], iteration_bounds = array<i64: 4>, scalar_prefetch = 0 : i64, scratch_operands = 1 : i64, tpu.core_type = #tpu.core_type<tc>, window_params = [{transform_indices = @transform_0, window_bounds = array<i64: 1, 328, 27>}, {pipeline_mode = #tpu.pipeline_mode<synchronous>, transform_indices = @transform_1, window_bounds = array<i64: 328, 1>}, {pipeline_mode = #tpu.pipeline_mode<synchronous>, transform_indices = @transform_2, window_bounds = array<i64: 288, 1>}, {pipeline_mode = #tpu.pipeline_mode<synchronous>, transform_indices = @transform_3, window_bounds = array<i64: 27, 64>}, {pipeline_mode = #tpu.pipeline_mode<synchronous>, transform_indices = @transform_4, window_bounds = array<i64: 1, 64>}, {pipeline_mode = #tpu.pipeline_mode<synchronous>, transform_indices = @transform_5, window_bounds = array<i64: 576, 64>}, {pipeline_mode = #tpu.pipeline_mode<synchronous>, transform_indices = @transform_6, window_bounds = array<i64: 1, 64>}, {transform_indices = @transform_7, window_bounds = array<i64: 1, 64, 64>}]} {
    %c0 = arith.constant 0 : index
    %c0_0 = arith.constant 0 : index
    %c0_1 = arith.constant 0 : index
    %0 = vector.load %arg1[%c0, %c0_0, %c0_1] : memref<1x328x27xf32, #tpu.memory_space<vmem>>, vector<1x328x27xf32>
    %1 = vector.shape_cast %0 : vector<1x328x27xf32> to vector<328x27xf32>
    %c0_2 = arith.constant 0 : index
    %c0_3 = arith.constant 0 : index
    %2 = vector.load %arg4[%c0_2, %c0_3] : memref<27x64xf32, #tpu.memory_space<vmem>>, vector<27x64xf32>
    %cst = arith.constant dense<0.000000e+00> : vector<328x64xf32>
    %3 = tpu.matmul %1, %2, %cst {dimension_numbers = #tpu.dot_dimension_numbers<[1], [0], [0], [1], [0, 0, 1, 1], [], []>} : vector<328x27xf32>, vector<27x64xf32>, vector<328x64xf32> -> vector<328x64xf32>
    %c0_4 = arith.constant 0 : index
    %c0_5 = arith.constant 0 : index
    %4 = vector.load %arg5[%c0_4, %c0_5] : memref<1x64xf32, #tpu.memory_space<vmem>>, vector<1x64xf32>
    %5 = vector.broadcast %4 : vector<1x64xf32> to vector<328x64xf32>
    %6 = arith.addf %3, %5 : vector<328x64xf32>
    %cst_6 = arith.constant 0.000000e+00 : f32
    %7 = vector.broadcast %cst_6 : f32 to vector<328x64xf32>
    %8 = arith.maximumf %6, %7 : vector<328x64xf32>
    %c0_7 = arith.constant 0 : index
    %c0_8 = arith.constant 0 : index
    %9 = vector.load %arg2[%c0_7, %c0_8] : memref<328x1xf32, #tpu.memory_space<vmem>>, vector<328x1xf32>
    %10 = vector.broadcast %9 : vector<328x1xf32> to vector<328x64xf32>
    %11 = arith.mulf %8, %10 : vector<328x64xf32>
    %c0_9 = arith.constant 0 : index
    %c0_10 = arith.constant 0 : index
    %12 = vector.load %arg9[%c0_9, %c0_10] : memref<328x64xf32, #tpu.memory_space<vmem>>, vector<328x64xf32>
    tpu.vector_store %arg9[%c0_9, %c0_10], %11 {strides = array<i32>} : memref<328x64xf32, #tpu.memory_space<vmem>>, vector<328x64xf32>,
    %cst_11 = arith.constant 0.000000e+00 : f32
    %13 = vector.broadcast %cst_11 : f32 to vector<64x64xf32>
    %c0_12 = arith.constant 0 : index
    %c0_13 = arith.constant 0 : index
    %14 = vector.load %arg9[%c0_12, %c0_13] : memref<328x64xf32, #tpu.memory_space<vmem>>, vector<48x64xf32>
    %c1 = arith.constant 1 : index
    %c0_14 = arith.constant 0 : index
    %15 = vector.load %arg9[%c1, %c0_14] : memref<328x64xf32, #tpu.memory_space<vmem>>, vector<48x64xf32>
    %c2 = arith.constant 2 : index
    %c0_15 = arith.constant 0 : index
    %16 = vector.load %arg9[%c2, %c0_15] : memref<328x64xf32, #tpu.memory_space<vmem>>, vector<48x64xf32>
    %c18 = arith.constant 18 : index
    %c0_16 = arith.constant 0 : index
    %17 = vector.load %arg9[%c18, %c0_16] : memref<328x64xf32, #tpu.memory_space<vmem>>, vector<48x64xf32>
    %c19 = arith.constant 19 : index
    %c0_17 = arith.constant 0 : index
    %18 = vector.load %arg9[%c19, %c0_17] : memref<328x64xf32, #tpu.memory_space<vmem>>, vector<48x64xf32>
    %c20 = arith.constant 20 : index
    %c0_18 = arith.constant 0 : index
    %19 = vector.load %arg9[%c20, %c0_18] : memref<328x64xf32, #tpu.memory_space<vmem>>, vector<48x64xf32>
    %c36 = arith.constant 36 : index
    %c0_19 = arith.constant 0 : index
    %20 = vector.load %arg9[%c36, %c0_19] : memref<328x64xf32, #tpu.memory_space<vmem>>, vector<48x64xf32>
    %c37 = arith.constant 37 : index
    %c0_20 = arith.constant 0 : index
    %21 = vector.load %arg9[%c37, %c0_20] : memref<328x64xf32, #tpu.memory_space<vmem>>, vector<48x64xf32>
    %c38 = arith.constant 38 : index
    %c0_21 = arith.constant 0 : index
    %22 = vector.load %arg9[%c38, %c0_21] : memref<328x64xf32, #tpu.memory_space<vmem>>, vector<48x64xf32>
    %23 = tpu.concatenate %14, %15, %16, %17, %18, %19, %20, %21, %22 in 1 : vector<48x64xf32>, vector<48x64xf32>, vector<48x64xf32>, vector<48x64xf32>, vector<48x64xf32>, vector<48x64xf32>, vector<48x64xf32>, vector<48x64xf32>, vector<48x64xf32> -> vector<48x576xf32>
    %c0_22 = arith.constant 0 : index
    %c0_23 = arith.constant 0 : index
    %24 = vector.load %arg6[%c0_22, %c0_23] : memref<576x64xf32, #tpu.memory_space<vmem>>, vector<576x64xf32>
    %cst_24 = arith.constant dense<0.000000e+00> : vector<48x64xf32>
    %25 = tpu.matmul %23, %24, %cst_24 {dimension_numbers = #tpu.dot_dimension_numbers<[1], [0], [0], [1], [0, 0, 1, 1], [], []>} : vector<48x576xf32>, vector<576x64xf32>, vector<48x64xf32> -> vector<48x64xf32>
    %c0_25 = arith.constant 0 : index
    %c0_26 = arith.constant 0 : index
    %26 = vector.load %arg7[%c0_25, %c0_26] : memref<1x64xf32, #tpu.memory_space<vmem>>, vector<1x64xf32>
    %27 = vector.broadcast %26 : vector<1x64xf32> to vector<48x64xf32>
    %28 = arith.addf %25, %27 : vector<48x64xf32>
    %cst_27 = arith.constant 0.000000e+00 : f32
    %29 = vector.broadcast %cst_27 : f32 to vector<48x64xf32>
    %30 = arith.maximumf %28, %29 : vector<48x64xf32>
    %c0_28 = arith.constant 0 : index
    %c0_29 = arith.constant 0 : index
    %31 = vector.load %arg3[%c0_28, %c0_29] : memref<288x1xf32, #tpu.memory_space<vmem>>, vector<48x1xf32>
    %32 = vector.broadcast %31 : vector<48x1xf32> to vector<48x64xf32>
    %33 = arith.mulf %30, %32 : vector<48x64xf32>
    %cst_30 = arith.constant dense<0.000000e+00> : vector<64x64xf32>
    %34 = tpu.matmul %33, %33, %cst_30 {dimension_numbers = #tpu.dot_dimension_numbers<[0], [0], [1], [1], [0, 1, 1, 1], [], []>} : vector<48x64xf32>, vector<48x64xf32>, vector<64x64xf32> -> vector<64x64xf32>
    %35 = arith.addf %13, %34 : vector<64x64xf32>
    %c48 = arith.constant 48 : index
    %c0_31 = arith.constant 0 : index
    %36 = vector.load %arg9[%c48, %c0_31] : memref<328x64xf32, #tpu.memory_space<vmem>>, vector<48x64xf32>
    %c49 = arith.constant 49 : index
    %c0_32 = arith.constant 0 : index
    %37 = vector.load %arg9[%c49, %c0_32] : memref<328x64xf32, #tpu.memory_space<vmem>>, vector<48x64xf32>
    %c50 = arith.constant 50 : index
    %c0_33 = arith.constant 0 : index
    %38 = vector.load %arg9[%c50, %c0_33] : memref<328x64xf32, #tpu.memory_space<vmem>>, vector<48x64xf32>
    %c66 = arith.constant 66 : index
    %c0_34 = arith.constant 0 : index
    %39 = vector.load %arg9[%c66, %c0_34] : memref<328x64xf32, #tpu.memory_space<vmem>>, vector<48x64xf32>
    %c67 = arith.constant 67 : index
    %c0_35 = arith.constant 0 : index
    %40 = vector.load %arg9[%c67, %c0_35] : memref<328x64xf32, #tpu.memory_space<vmem>>, vector<48x64xf32>
    %c68 = arith.constant 68 : index
    %c0_36 = arith.constant 0 : index
    %41 = vector.load %arg9[%c68, %c0_36] : memref<328x64xf32, #tpu.memory_space<vmem>>, vector<48x64xf32>
    %c84 = arith.constant 84 : index
    %c0_37 = arith.constant 0 : index
    %42 = vector.load %arg9[%c84, %c0_37] : memref<328x64xf32, #tpu.memory_space<vmem>>, vector<48x64xf32>
    %c85 = arith.constant 85 : index
    %c0_38 = arith.constant 0 : index
    %43 = vector.load %arg9[%c85, %c0_38] : memref<328x64xf32, #tpu.memory_space<vmem>>, vector<48x64xf32>
    %c86 = arith.constant 86 : index
    %c0_39 = arith.constant 0 : index
    %44 = vector.load %arg9[%c86, %c0_39] : memref<328x64xf32, #tpu.memory_space<vmem>>, vector<48x64xf32>
    %45 = tpu.concatenate %36, %37, %38, %39, %40, %41, %42, %43, %44 in 1 : vector<48x64xf32>, vector<48x64xf32>, vector<48x64xf32>, vector<48x64xf32>, vector<48x64xf32>, vector<48x64xf32>, vector<48x64xf32>, vector<48x64xf32>, vector<48x64xf32> -> vector<48x576xf32>
    %c0_40 = arith.constant 0 : index
    %c0_41 = arith.constant 0 : index
    %46 = vector.load %arg6[%c0_40, %c0_41] : memref<576x64xf32, #tpu.memory_space<vmem>>, vector<576x64xf32>
    %cst_42 = arith.constant dense<0.000000e+00> : vector<48x64xf32>
    %47 = tpu.matmul %45, %46, %cst_42 {dimension_numbers = #tpu.dot_dimension_numbers<[1], [0], [0], [1], [0, 0, 1, 1], [], []>} : vector<48x576xf32>, vector<576x64xf32>, vector<48x64xf32> -> vector<48x64xf32>
    %c0_43 = arith.constant 0 : index
    %c0_44 = arith.constant 0 : index
    %48 = vector.load %arg7[%c0_43, %c0_44] : memref<1x64xf32, #tpu.memory_space<vmem>>, vector<1x64xf32>
    %49 = vector.broadcast %48 : vector<1x64xf32> to vector<48x64xf32>
    %50 = arith.addf %47, %49 : vector<48x64xf32>
    %cst_45 = arith.constant 0.000000e+00 : f32
    %51 = vector.broadcast %cst_45 : f32 to vector<48x64xf32>
    %52 = arith.maximumf %50, %51 : vector<48x64xf32>
    %c48_46 = arith.constant 48 : index
    %c0_47 = arith.constant 0 : index
    %53 = vector.load %arg3[%c48_46, %c0_47] : memref<288x1xf32, #tpu.memory_space<vmem>>, vector<48x1xf32>
    %54 = vector.broadcast %53 : vector<48x1xf32> to vector<48x64xf32>
    %55 = arith.mulf %52, %54 : vector<48x64xf32>
    %cst_48 = arith.constant dense<0.000000e+00> : vector<64x64xf32>
    %56 = tpu.matmul %55, %55, %cst_48 {dimension_numbers = #tpu.dot_dimension_numbers<[0], [0], [1], [1], [0, 1, 1, 1], [], []>} : vector<48x64xf32>, vector<48x64xf32>, vector<64x64xf32> -> vector<64x64xf32>
    %57 = arith.addf %35, %56 : vector<64x64xf32>
    %c96 = arith.constant 96 : index
    %c0_49 = arith.constant 0 : index
    %58 = vector.load %arg9[%c96, %c0_49] : memref<328x64xf32, #tpu.memory_space<vmem>>, vector<48x64xf32>
    %c97 = arith.constant 97 : index
    %c0_50 = arith.constant 0 : index
    %59 = vector.load %arg9[%c97, %c0_50] : memref<328x64xf32, #tpu.memory_space<vmem>>, vector<48x64xf32>
    %c98 = arith.constant 98 : index
    %c0_51 = arith.constant 0 : index
    %60 = vector.load %arg9[%c98, %c0_51] : memref<328x64xf32, #tpu.memory_space<vmem>>, vector<48x64xf32>
    %c114 = arith.constant 114 : index
    %c0_52 = arith.constant 0 : index
    %61 = vector.load %arg9[%c114, %c0_52] : memref<328x64xf32, #tpu.memory_space<vmem>>, vector<48x64xf32>
    %c115 = arith.constant 115 : index
    %c0_53 = arith.constant 0 : index
    %62 = vector.load %arg9[%c115, %c0_53] : memref<328x64xf32, #tpu.memory_space<vmem>>, vector<48x64xf32>
    %c116 = arith.constant 116 : index
    %c0_54 = arith.constant 0 : index
    %63 = vector.load %arg9[%c116, %c0_54] : memref<328x64xf32, #tpu.memory_space<vmem>>, vector<48x64xf32>
    %c132 = arith.constant 132 : index
    %c0_55 = arith.constant 0 : index
    %64 = vector.load %arg9[%c132, %c0_55] : memref<328x64xf32, #tpu.memory_space<vmem>>, vector<48x64xf32>
    %c133 = arith.constant 133 : index
    %c0_56 = arith.constant 0 : index
    %65 = vector.load %arg9[%c133, %c0_56] : memref<328x64xf32, #tpu.memory_space<vmem>>, vector<48x64xf32>
    %c134 = arith.constant 134 : index
    %c0_57 = arith.constant 0 : index
    %66 = vector.load %arg9[%c134, %c0_57] : memref<328x64xf32, #tpu.memory_space<vmem>>, vector<48x64xf32>
    %67 = tpu.concatenate %58, %59, %60, %61, %62, %63, %64, %65, %66 in 1 : vector<48x64xf32>, vector<48x64xf32>, vector<48x64xf32>, vector<48x64xf32>, vector<48x64xf32>, vector<48x64xf32>, vector<48x64xf32>, vector<48x64xf32>, vector<48x64xf32> -> vector<48x576xf32>
    %c0_58 = arith.constant 0 : index
    %c0_59 = arith.constant 0 : index
    %68 = vector.load %arg6[%c0_58, %c0_59] : memref<576x64xf32, #tpu.memory_space<vmem>>, vector<576x64xf32>
    %cst_60 = arith.constant dense<0.000000e+00> : vector<48x64xf32>
    %69 = tpu.matmul %67, %68, %cst_60 {dimension_numbers = #tpu.dot_dimension_numbers<[1], [0], [0], [1], [0, 0, 1, 1], [], []>} : vector<48x576xf32>, vector<576x64xf32>, vector<48x64xf32> -> vector<48x64xf32>
    %c0_61 = arith.constant 0 : index
    %c0_62 = arith.constant 0 : index
    %70 = vector.load %arg7[%c0_61, %c0_62] : memref<1x64xf32, #tpu.memory_space<vmem>>, vector<1x64xf32>
    %71 = vector.broadcast %70 : vector<1x64xf32> to vector<48x64xf32>
    %72 = arith.addf %69, %71 : vector<48x64xf32>
    %cst_63 = arith.constant 0.000000e+00 : f32
    %73 = vector.broadcast %cst_63 : f32 to vector<48x64xf32>
    %74 = arith.maximumf %72, %73 : vector<48x64xf32>
    %c96_64 = arith.constant 96 : index
    %c0_65 = arith.constant 0 : index
    %75 = vector.load %arg3[%c96_64, %c0_65] : memref<288x1xf32, #tpu.memory_space<vmem>>, vector<48x1xf32>
    %76 = vector.broadcast %75 : vector<48x1xf32> to vector<48x64xf32>
    %77 = arith.mulf %74, %76 : vector<48x64xf32>
    %cst_66 = arith.constant dense<0.000000e+00> : vector<64x64xf32>
    %78 = tpu.matmul %77, %77, %cst_66 {dimension_numbers = #tpu.dot_dimension_numbers<[0], [0], [1], [1], [0, 1, 1, 1], [], []>} : vector<48x64xf32>, vector<48x64xf32>, vector<64x64xf32> -> vector<64x64xf32>
    %79 = arith.addf %57, %78 : vector<64x64xf32>
    %c144 = arith.constant 144 : index
    %c0_67 = arith.constant 0 : index
    %80 = vector.load %arg9[%c144, %c0_67] : memref<328x64xf32, #tpu.memory_space<vmem>>, vector<48x64xf32>
    %c145 = arith.constant 145 : index
    %c0_68 = arith.constant 0 : index
    %81 = vector.load %arg9[%c145, %c0_68] : memref<328x64xf32, #tpu.memory_space<vmem>>, vector<48x64xf32>
    %c146 = arith.constant 146 : index
    %c0_69 = arith.constant 0 : index
    %82 = vector.load %arg9[%c146, %c0_69] : memref<328x64xf32, #tpu.memory_space<vmem>>, vector<48x64xf32>
    %c162 = arith.constant 162 : index
    %c0_70 = arith.constant 0 : index
    %83 = vector.load %arg9[%c162, %c0_70] : memref<328x64xf32, #tpu.memory_space<vmem>>, vector<48x64xf32>
    %c163 = arith.constant 163 : index
    %c0_71 = arith.constant 0 : index
    %84 = vector.load %arg9[%c163, %c0_71] : memref<328x64xf32, #tpu.memory_space<vmem>>, vector<48x64xf32>
    %c164 = arith.constant 164 : index
    %c0_72 = arith.constant 0 : index
    %85 = vector.load %arg9[%c164, %c0_72] : memref<328x64xf32, #tpu.memory_space<vmem>>, vector<48x64xf32>
    %c180 = arith.constant 180 : index
    %c0_73 = arith.constant 0 : index
    %86 = vector.load %arg9[%c180, %c0_73] : memref<328x64xf32, #tpu.memory_space<vmem>>, vector<48x64xf32>
    %c181 = arith.constant 181 : index
    %c0_74 = arith.constant 0 : index
    %87 = vector.load %arg9[%c181, %c0_74] : memref<328x64xf32, #tpu.memory_space<vmem>>, vector<48x64xf32>
    %c182 = arith.constant 182 : index
    %c0_75 = arith.constant 0 : index
    %88 = vector.load %arg9[%c182, %c0_75] : memref<328x64xf32, #tpu.memory_space<vmem>>, vector<48x64xf32>
    %89 = tpu.concatenate %80, %81, %82, %83, %84, %85, %86, %87, %88 in 1 : vector<48x64xf32>, vector<48x64xf32>, vector<48x64xf32>, vector<48x64xf32>, vector<48x64xf32>, vector<48x64xf32>, vector<48x64xf32>, vector<48x64xf32>, vector<48x64xf32> -> vector<48x576xf32>
    %c0_76 = arith.constant 0 : index
    %c0_77 = arith.constant 0 : index
    %90 = vector.load %arg6[%c0_76, %c0_77] : memref<576x64xf32, #tpu.memory_space<vmem>>, vector<576x64xf32>
    %cst_78 = arith.constant dense<0.000000e+00> : vector<48x64xf32>
    %91 = tpu.matmul %89, %90, %cst_78 {dimension_numbers = #tpu.dot_dimension_numbers<[1], [0], [0], [1], [0, 0, 1, 1], [], []>} : vector<48x576xf32>, vector<576x64xf32>, vector<48x64xf32> -> vector<48x64xf32>
    %c0_79 = arith.constant 0 : index
    %c0_80 = arith.constant 0 : index
    %92 = vector.load %arg7[%c0_79, %c0_80] : memref<1x64xf32, #tpu.memory_space<vmem>>, vector<1x64xf32>
    %93 = vector.broadcast %92 : vector<1x64xf32> to vector<48x64xf32>
    %94 = arith.addf %91, %93 : vector<48x64xf32>
    %cst_81 = arith.constant 0.000000e+00 : f32
    %95 = vector.broadcast %cst_81 : f32 to vector<48x64xf32>
    %96 = arith.maximumf %94, %95 : vector<48x64xf32>
    %c144_82 = arith.constant 144 : index
    %c0_83 = arith.constant 0 : index
    %97 = vector.load %arg3[%c144_82, %c0_83] : memref<288x1xf32, #tpu.memory_space<vmem>>, vector<48x1xf32>
    %98 = vector.broadcast %97 : vector<48x1xf32> to vector<48x64xf32>
    %99 = arith.mulf %96, %98 : vector<48x64xf32>
    %cst_84 = arith.constant dense<0.000000e+00> : vector<64x64xf32>
    %100 = tpu.matmul %99, %99, %cst_84 {dimension_numbers = #tpu.dot_dimension_numbers<[0], [0], [1], [1], [0, 1, 1, 1], [], []>} : vector<48x64xf32>, vector<48x64xf32>, vector<64x64xf32> -> vector<64x64xf32>
    %101 = arith.addf %79, %100 : vector<64x64xf32>
    %c192 = arith.constant 192 : index
    %c0_85 = arith.constant 0 : index
    %102 = vector.load %arg9[%c192, %c0_85] : memref<328x64xf32, #tpu.memory_space<vmem>>, vector<48x64xf32>
    %c193 = arith.constant 193 : index
    %c0_86 = arith.constant 0 : index
    %103 = vector.load %arg9[%c193, %c0_86] : memref<328x64xf32, #tpu.memory_space<vmem>>, vector<48x64xf32>
    %c194 = arith.constant 194 : index
    %c0_87 = arith.constant 0 : index
    %104 = vector.load %arg9[%c194, %c0_87] : memref<328x64xf32, #tpu.memory_space<vmem>>, vector<48x64xf32>
    %c210 = arith.constant 210 : index
    %c0_88 = arith.constant 0 : index
    %105 = vector.load %arg9[%c210, %c0_88] : memref<328x64xf32, #tpu.memory_space<vmem>>, vector<48x64xf32>
    %c211 = arith.constant 211 : index
    %c0_89 = arith.constant 0 : index
    %106 = vector.load %arg9[%c211, %c0_89] : memref<328x64xf32, #tpu.memory_space<vmem>>, vector<48x64xf32>
    %c212 = arith.constant 212 : index
    %c0_90 = arith.constant 0 : index
    %107 = vector.load %arg9[%c212, %c0_90] : memref<328x64xf32, #tpu.memory_space<vmem>>, vector<48x64xf32>
    %c228 = arith.constant 228 : index
    %c0_91 = arith.constant 0 : index
    %108 = vector.load %arg9[%c228, %c0_91] : memref<328x64xf32, #tpu.memory_space<vmem>>, vector<48x64xf32>
    %c229 = arith.constant 229 : index
    %c0_92 = arith.constant 0 : index
    %109 = vector.load %arg9[%c229, %c0_92] : memref<328x64xf32, #tpu.memory_space<vmem>>, vector<48x64xf32>
    %c230 = arith.constant 230 : index
    %c0_93 = arith.constant 0 : index
    %110 = vector.load %arg9[%c230, %c0_93] : memref<328x64xf32, #tpu.memory_space<vmem>>, vector<48x64xf32>
    %111 = tpu.concatenate %102, %103, %104, %105, %106, %107, %108, %109, %110 in 1 : vector<48x64xf32>, vector<48x64xf32>, vector<48x64xf32>, vector<48x64xf32>, vector<48x64xf32>, vector<48x64xf32>, vector<48x64xf32>, vector<48x64xf32>, vector<48x64xf32> -> vector<48x576xf32>
    %c0_94 = arith.constant 0 : index
    %c0_95 = arith.constant 0 : index
    %112 = vector.load %arg6[%c0_94, %c0_95] : memref<576x64xf32, #tpu.memory_space<vmem>>, vector<576x64xf32>
    %cst_96 = arith.constant dense<0.000000e+00> : vector<48x64xf32>
    %113 = tpu.matmul %111, %112, %cst_96 {dimension_numbers = #tpu.dot_dimension_numbers<[1], [0], [0], [1], [0, 0, 1, 1], [], []>} : vector<48x576xf32>, vector<576x64xf32>, vector<48x64xf32> -> vector<48x64xf32>
    %c0_97 = arith.constant 0 : index
    %c0_98 = arith.constant 0 : index
    %114 = vector.load %arg7[%c0_97, %c0_98] : memref<1x64xf32, #tpu.memory_space<vmem>>, vector<1x64xf32>
    %115 = vector.broadcast %114 : vector<1x64xf32> to vector<48x64xf32>
    %116 = arith.addf %113, %115 : vector<48x64xf32>
    %cst_99 = arith.constant 0.000000e+00 : f32
    %117 = vector.broadcast %cst_99 : f32 to vector<48x64xf32>
    %118 = arith.maximumf %116, %117 : vector<48x64xf32>
    %c192_100 = arith.constant 192 : index
    %c0_101 = arith.constant 0 : index
    %119 = vector.load %arg3[%c192_100, %c0_101] : memref<288x1xf32, #tpu.memory_space<vmem>>, vector<48x1xf32>
    %120 = vector.broadcast %119 : vector<48x1xf32> to vector<48x64xf32>
    %121 = arith.mulf %118, %120 : vector<48x64xf32>
    %cst_102 = arith.constant dense<0.000000e+00> : vector<64x64xf32>
    %122 = tpu.matmul %121, %121, %cst_102 {dimension_numbers = #tpu.dot_dimension_numbers<[0], [0], [1], [1], [0, 1, 1, 1], [], []>} : vector<48x64xf32>, vector<48x64xf32>, vector<64x64xf32> -> vector<64x64xf32>
    %123 = arith.addf %101, %122 : vector<64x64xf32>
    %c240 = arith.constant 240 : index
    %c0_103 = arith.constant 0 : index
    %124 = vector.load %arg9[%c240, %c0_103] : memref<328x64xf32, #tpu.memory_space<vmem>>, vector<48x64xf32>
    %c241 = arith.constant 241 : index
    %c0_104 = arith.constant 0 : index
    %125 = vector.load %arg9[%c241, %c0_104] : memref<328x64xf32, #tpu.memory_space<vmem>>, vector<48x64xf32>
    %c242 = arith.constant 242 : index
    %c0_105 = arith.constant 0 : index
    %126 = vector.load %arg9[%c242, %c0_105] : memref<328x64xf32, #tpu.memory_space<vmem>>, vector<48x64xf32>
    %c258 = arith.constant 258 : index
    %c0_106 = arith.constant 0 : index
    %127 = vector.load %arg9[%c258, %c0_106] : memref<328x64xf32, #tpu.memory_space<vmem>>, vector<48x64xf32>
    %c259 = arith.constant 259 : index
    %c0_107 = arith.constant 0 : index
    %128 = vector.load %arg9[%c259, %c0_107] : memref<328x64xf32, #tpu.memory_space<vmem>>, vector<48x64xf32>
    %c260 = arith.constant 260 : index
    %c0_108 = arith.constant 0 : index
    %129 = vector.load %arg9[%c260, %c0_108] : memref<328x64xf32, #tpu.memory_space<vmem>>, vector<48x64xf32>
    %c276 = arith.constant 276 : index
    %c0_109 = arith.constant 0 : index
    %130 = vector.load %arg9[%c276, %c0_109] : memref<328x64xf32, #tpu.memory_space<vmem>>, vector<48x64xf32>
    %c277 = arith.constant 277 : index
    %c0_110 = arith.constant 0 : index
    %131 = vector.load %arg9[%c277, %c0_110] : memref<328x64xf32, #tpu.memory_space<vmem>>, vector<48x64xf32>
    %c278 = arith.constant 278 : index
    %c0_111 = arith.constant 0 : index
    %132 = vector.load %arg9[%c278, %c0_111] : memref<328x64xf32, #tpu.memory_space<vmem>>, vector<48x64xf32>
    %133 = tpu.concatenate %124, %125, %126, %127, %128, %129, %130, %131, %132 in 1 : vector<48x64xf32>, vector<48x64xf32>, vector<48x64xf32>, vector<48x64xf32>, vector<48x64xf32>, vector<48x64xf32>, vector<48x64xf32>, vector<48x64xf32>, vector<48x64xf32> -> vector<48x576xf32>
    %c0_112 = arith.constant 0 : index
    %c0_113 = arith.constant 0 : index
    %134 = vector.load %arg6[%c0_112, %c0_113] : memref<576x64xf32, #tpu.memory_space<vmem>>, vector<576x64xf32>
    %cst_114 = arith.constant dense<0.000000e+00> : vector<48x64xf32>
    %135 = tpu.matmul %133, %134, %cst_114 {dimension_numbers = #tpu.dot_dimension_numbers<[1], [0], [0], [1], [0, 0, 1, 1], [], []>} : vector<48x576xf32>, vector<576x64xf32>, vector<48x64xf32> -> vector<48x64xf32>
    %c0_115 = arith.constant 0 : index
    %c0_116 = arith.constant 0 : index
    %136 = vector.load %arg7[%c0_115, %c0_116] : memref<1x64xf32, #tpu.memory_space<vmem>>, vector<1x64xf32>
    %137 = vector.broadcast %136 : vector<1x64xf32> to vector<48x64xf32>
    %138 = arith.addf %135, %137 : vector<48x64xf32>
    %cst_117 = arith.constant 0.000000e+00 : f32
    %139 = vector.broadcast %cst_117 : f32 to vector<48x64xf32>
    %140 = arith.maximumf %138, %139 : vector<48x64xf32>
    %c240_118 = arith.constant 240 : index
    %c0_119 = arith.constant 0 : index
    %141 = vector.load %arg3[%c240_118, %c0_119] : memref<288x1xf32, #tpu.memory_space<vmem>>, vector<48x1xf32>
    %142 = vector.broadcast %141 : vector<48x1xf32> to vector<48x64xf32>
    %143 = arith.mulf %140, %142 : vector<48x64xf32>
    %cst_120 = arith.constant dense<0.000000e+00> : vector<64x64xf32>
    %144 = tpu.matmul %143, %143, %cst_120 {dimension_numbers = #tpu.dot_dimension_numbers<[0], [0], [1], [1], [0, 1, 1, 1], [], []>} : vector<48x64xf32>, vector<48x64xf32>, vector<64x64xf32> -> vector<64x64xf32>
    %145 = arith.addf %123, %144 : vector<64x64xf32>
    %cst_121 = arith.constant 6.10351563E-5 : f32
    %146 = vector.broadcast %cst_121 : f32 to vector<64x64xf32>
    %147 = arith.mulf %145, %146 : vector<64x64xf32>
    %c0_122 = arith.constant 0 : index
    %c0_123 = arith.constant 0 : index
    %c0_124 = arith.constant 0 : index
    %148 = vector.load %arg8[%c0_122, %c0_123, %c0_124] : memref<1x64x64xf32, #tpu.memory_space<vmem>>, vector<1x64x64xf32>
    %149 = vector.shape_cast %148 : vector<1x64x64xf32> to vector<64x64xf32>
    %150 = vector.shape_cast %147 : vector<64x64xf32> to vector<1x64x64xf32>
    tpu.vector_store %arg8[%c0_122, %c0_123, %c0_124], %150 {strides = array<i32>} : memref<1x64x64xf32, #tpu.memory_space<vmem>>, vector<1x64x64xf32>,
    return
  }
  func.func @transform_0(%arg0: i32) -> (i32, i32, i32) {
    %c0_i32 = arith.constant 0 : i32
    %c0_i32_0 = arith.constant 0 : i32
    %c0_i32_1 = arith.constant 0 : i32
    return %arg0, %c0_i32, %c0_i32_0 : i32, i32, i32
  }
  func.func @transform_1(%arg0: i32) -> (i32, i32) {
    %c0_i32 = arith.constant 0 : i32
    %c0_i32_0 = arith.constant 0 : i32
    %c0_i32_1 = arith.constant 0 : i32
    return %c0_i32, %c0_i32_0 : i32, i32
  }
  func.func @transform_2(%arg0: i32) -> (i32, i32) {
    %c0_i32 = arith.constant 0 : i32
    %c0_i32_0 = arith.constant 0 : i32
    %c0_i32_1 = arith.constant 0 : i32
    return %c0_i32, %c0_i32_0 : i32, i32
  }
  func.func @transform_3(%arg0: i32) -> (i32, i32) {
    %c0_i32 = arith.constant 0 : i32
    %c0_i32_0 = arith.constant 0 : i32
    %c0_i32_1 = arith.constant 0 : i32
    return %c0_i32, %c0_i32_0 : i32, i32
  }
  func.func @transform_4(%arg0: i32) -> (i32, i32) {
    %c0_i32 = arith.constant 0 : i32
    %c0_i32_0 = arith.constant 0 : i32
    %c0_i32_1 = arith.constant 0 : i32
    return %c0_i32, %c0_i32_0 : i32, i32
  }
  func.func @transform_5(%arg0: i32) -> (i32, i32) {
    %c0_i32 = arith.constant 0 : i32
    %c0_i32_0 = arith.constant 0 : i32
    %c0_i32_1 = arith.constant 0 : i32
    return %c0_i32, %c0_i32_0 : i32, i32
  }
  func.func @transform_6(%arg0: i32) -> (i32, i32) {
    %c0_i32 = arith.constant 0 : i32
    %c0_i32_0 = arith.constant 0 : i32
    %c0_i32_1 = arith.constant 0 : i32
    return %c0_i32, %c0_i32_0 : i32, i32
  }
  func.func @transform_7(%arg0: i32) -> (i32, i32, i32) {
    %c0_i32 = arith.constant 0 : i32
    %c0_i32_0 = arith.constant 0 : i32
    %c0_i32_1 = arith.constant 0 : i32
    return %arg0, %c0_i32, %c0_i32_0 : i32, i32, i32
  }
}

</mosaic_0001>

<bundles_post_ra>
// kernel: style_loss.3
= control target key start
LH: loop header
LB: loop body
LE: loop exit
PB: predicated region body
PF: predicated region fallthrough
CT: control target
= control target key end

     0   :  { %s283_s0 = inlined_call_operand.vmem [shape: f32[2,64,64], index: 0, kind: input, shape index: {}]   ;;  %s284_s1 = inlined_call_operand.vmem [shape: f32[2,64,64], index: 1, kind: input, shape index: {}]   ;;  %s285_s2 = inlined_call_operand.hbm [shape: f32[1,1], index: 2, kind: output, shape index: {}]  }
   0x1   :  { %v12_v0 = vld [vmem:[%s283_s0] sm:$0xff]  ;;  %v13_v1 = vld [vmem:[%s283_s0 + $0x8] sm:$0xff]  ;;  %v14_v2 = vld [vmem:[%s283_s0 + $0x10] sm:$0xff] }
   0x2   :  { %v28_v3 = vld [vmem:[%s284_s1] sm:$0xff]  ;;  %v29_v4 = vld [vmem:[%s284_s1 + $0x8] sm:$0xff]  ;;  %v15_v5 = vld [vmem:[%s283_s0 + $0x18] sm:$0xff] }
   0x3   :  { %v30_v6 = vld [vmem:[%s284_s1 + $0x10] sm:$0xff]  ;;  %v31_v7 = vld [vmem:[%s284_s1 + $0x18] sm:$0xff]  ;;  %v44_v8 = vsub.f32 %v12_v0, %v28_v3  ;;  %v45_v9 = vsub.f32 %v13_v1, %v29_v4  ;;  %v16_v10 = vld [vmem:[%s283_s0 + $0x20] sm:$0xff] }
   0x4   :  { %v32_v11 = vld [vmem:[%s284_s1 + $0x20] sm:$0xff]  ;;  %v46_v12 = vsub.f32 %v14_v2, %v30_v6  ;;  %v47_v13 = vsub.f32 %v15_v5, %v31_v7  ;;  %v17_v14 = vld [vmem:[%s283_s0 + $0x28] sm:$0xff] }
   0x5   :  { %v33_v15 = vld [vmem:[%s284_s1 + $0x28] sm:$0xff] }
   0x6   :  { %7 = vsyncpa [#allocation3], 0  ;;  %v48_v16 = vsub.f32 %v16_v10, %v32_v11  ;;  %v60_v17 = vand.u32 2147483647, %v44_v8  ;;  %v61_v18 = vand.u32 2147483647, %v45_v9  ;;  %v49_v22 = vsub.f32 %v17_v14, %v33_v15 }
   0x7   :  { %v18_v19 = vld [vmem:[%s283_s0 + $0x30] sm:$0xff]  ;;  %v62_v21 = vand.u32 2147483647, %v46_v12  ;;  %vm76_vm0 = vcmask 523264   ;;  %v63_v23 = vand.u32 2147483647, %v47_v13 }
   0x8   :  { %v34_v20 = vld [vmem:[%s284_s1 + $0x30] sm:$0xff]  ;;  %v19_v24 = vld [vmem:[%s283_s0 + $0x38] sm:$0xff]  ;;  %v64_v27 = vand.u32 2147483647, %v48_v16  ;;  %v77_v28 = vsel %vm76_vm0, %v60_v17, 0.0  ;;  %v78_v29 = vsel %vm76_vm0, %v61_v18, 0.0 }
   0x9   :  { %v35_v25 = vld [vmem:[%s284_s1 + $0x38] sm:$0xff]  ;;  %v50_v26 = vsub.f32 %v18_v19, %v34_v20  ;;  %v20_v30 = vld [vmem:[%s283_s0 + $0x40] sm:$0xff]  ;;  %v79_v32 = vadd.f32 %v78_v29, %v77_v28  ;;  %v80_v33 = vsel %vm76_vm0, %v62_v21, 0.0  ;;  %v65_v35 = vand.u32 2147483647, %v49_v22  ;;  %v21_v37 = vld [vmem:[%s283_s0 + $0x48] sm:$0xff] }
   0xa   :  { %v36_v31 = vld [vmem:[%s284_s1 + $0x40] sm:$0xff]  ;;  %v51_v34 = vsub.f32 %v19_v24, %v35_v25  ;;  %v82_v36 = vsel %vm76_vm0, %v63_v23, 0.0  ;;  %v37_v38 = vld [vmem:[%s284_s1 + $0x48] sm:$0xff]  ;;  %v84_v42 = vsel %vm76_vm0, %v64_v27, 0.0  ;;  %v22_v43 = vld [vmem:[%s283_s0 + $0x50] sm:$0xff]  ;;  %s125_s17 = sshll.u32 %s285_s2, 4  ;;  %s126_s17 = int_to_ptr.hbm [resolvable:$true] %s125_s17 }
   0xb   :  { %v81_v39 = vadd.f32 %v80_v33, %v79_v32  ;;  %v52_v40 = vsub.f32 %v20_v30, %v36_v31  ;;  %v66_v41 = vand.u32 2147483647, %v50_v26  ;;  %v38_v44 = vld [vmem:[%s284_s1 + $0x50] sm:$0xff]  ;;  %v53_v46 = vsub.f32 %v21_v37, %v37_v38  ;;  %v23_v49 = vld [vmem:[%s283_s0 + $0x58] sm:$0xff]  ;;  %v24_v55 = vld [vmem:[%s283_s0 + $0x60] sm:$0xff]  ;;  %s152_s20 = smov [#allocation2]  }
   0xc   :  { %v67_v47 = vand.u32 2147483647, %v51_v34  ;;  %v86_v48 = vsel %vm76_vm0, %v65_v35, 0.0  ;;  %v39_v50 = vld [vmem:[%s284_s1 + $0x58] sm:$0xff]  ;;  %v54_v52 = vsub.f32 %v22_v43, %v38_v44  ;;  %v40_v56 = vld [vmem:[%s284_s1 + $0x60] sm:$0xff]  ;;  %v25_v61 = vld [vmem:[%s283_s0 + $0x68] sm:$0xff] }
   0xd   :  { %v83_v45 = vadd.f32 %v82_v36, %v81_v39  ;;  %v68_v53 = vand.u32 2147483647, %v52_v40  ;;  %v88_v54 = vsel %vm76_vm0, %v66_v41, 0.0  ;;  %v55_v58 = vsub.f32 %v23_v49, %v39_v50  ;;  %v41_v62 = vld [vmem:[%s284_s1 + $0x68] sm:$0xff]  ;;  %v26_v3 = vld [vmem:[%s283_s0 + $0x70] sm:$0xff]  ;;  %v27_v9 = vld [vmem:[%s283_s0 + $0x78] sm:$0xff] }
   0xe   :  { %v69_v59 = vand.u32 2147483647, %v53_v46  ;;  %v90_v60 = vsel %vm76_vm0, %v67_v47, 0.0  ;;  %v56_v0 = vsub.f32 %v24_v55, %v40_v56  ;;  %v70_v1 = vand.u32 2147483647, %v54_v52  ;;  %v42_v4 = vld [vmem:[%s284_s1 + $0x70] sm:$0xff] }
   0xf   :  { %v85_v51 = vadd.f32 %v84_v42, %v83_v45  ;;  %v92_v2 = vsel %vm76_vm0, %v68_v53, 0.0  ;;  %v57_v6 = vsub.f32 %v25_v61, %v41_v62  ;;  %v71_v7 = vand.u32 2147483647, %v55_v58  ;;  %v43_v10 = vld [vmem:[%s284_s1 + $0x78] sm:$0xff] }
  0x10   :  { %v94_v8 = vsel %vm76_vm0, %v69_v59, 0.0  ;;  %v58_v12 = vsub.f32 %v26_v3, %v42_v4  ;;  %v72_v13 = vand.u32 2147483647, %v56_v0  ;;  %v96_v14 = vsel %vm76_vm0, %v70_v1, 0.0 }
  0x11   :  { %v87_v57 = vadd.f32 %v86_v48, %v85_v51  ;;  %v59_v16 = vsub.f32 %v27_v9, %v43_v10  ;;  %v73_v17 = vand.u32 2147483647, %v57_v6  ;;  %v98_v18 = vsel %vm76_vm0, %v71_v7, 0.0 }
  0x12   :  { %v74_v20 = vand.u32 2147483647, %v58_v12  ;;  %v100_v21 = vsel %vm76_vm0, %v72_v13, 0.0 }
  0x13   :  { %v89_v63 = vadd.f32 %v88_v54, %v87_v57  ;;  %v75_v23 = vand.u32 2147483647, %v59_v16  ;;  %v102_v24 = vsel %vm76_vm0, %v73_v17, 0.0 }
  0x14   :  { %v104_v26 = vsel %vm76_vm0, %v74_v20, 0.0 }
  0x15   :  { %v91_v5 = vadd.f32 %v90_v60, %v89_v63  ;;  %v106_v28 = vsel %vm76_vm0, %v75_v23, 0.0 }
  0x17   :  { %v93_v11 = vadd.f32 %v92_v2, %v91_v5 }
  0x19   :  { %v95_v15 = vadd.f32 %v94_v8, %v93_v11 }
  0x1b   :  { %v97_v19 = vadd.f32 %v96_v14, %v95_v15 }
  0x1d   :  { %v99_v22 = vadd.f32 %v98_v18, %v97_v19 }
  0x1f   :  { %v101_v25 = vadd.f32 %v100_v21, %v99_v22 }
  0x21   :  { %v103_v27 = vadd.f32 %v102_v24, %v101_v25 }
  0x23   :  { %v105_v29 = vadd.f32 %v104_v26, %v103_v27 }
  0x25   :  { %v107_v30 = vadd.f32 %v106_v28, %v105_v29 }
  0x27   :  { %108 = vadd.xlane.f32.xlu0 %v107_v30 }
  0x9a   :  { %v109_v31 = vpop.xlane.xlu0 %108 }
  0x9b   :  { %v110_v32 = vrot.slane %v109_v31, 4 }
  0x9d   :  { %v111_v33 = vadd.f32 %v110_v32, %v109_v31 }
  0x9f   :  { %v112_v34 = vrot.slane %v111_v33, 2 }
  0xa1   :  { %v113_v35 = vadd.f32 %v112_v34, %v111_v33 }
  0xa3   :  { %v114_v36 = vrot.slane %v113_v35, 1 }
  0xa5   :  { %v115_v37 = vadd.f32 %v114_v36, %v113_v35 }
  0xa7   :  { %135 = vpush %v115_v37 }
  0xd8   :  { %s136_s18 = spop %135 }
  0xd9   :  { %s117_s19 = smul.f32 0.0012207031, %s136_s18 }
  0xdb   :  { %119 = sst [smem:[#allocation2]] %s117_s19 }
  0xdc   :  { %128 = dma.smem_to_hbm %s152_s20, 16, %s126_s17, [#allocation3]  }
  0xdd   :  { %150 = dma.done.wait [#allocation3], 16  }
  0xde   :  { %151 = vsyncadd [#allocation3], 4294967280 }
  0xdf   :  { %133 = sfence }
  0xe0   :  { %134 = vsyncpa [#allocation3], 1 }

// kernel: style_loss.2
= control target key start
LH: loop header
LB: loop body
LE: loop exit
PB: predicated region body
PF: predicated region fallthrough
CT: control target
= control target key end

     0   :  { %s4836_s24 = smov 0   ;;  %s7571_s0 = inlined_call_operand.vmem [shape: f32[4,328,27], index: 0, kind: input, shape index: {}]   ;;  %s7572_s1 = inlined_call_operand.vmem [shape: f32[328,1], index: 1, kind: input, shape index: {}]   ;;  %s7573_s2 = inlined_call_operand.vmem [shape: f32[288,1], index: 2, kind: input, shape index: {}]   ;;  %s7574_s3 = inlined_call_operand.vmem [shape: f32[27,64], index: 3, kind: input, shape index: {}]   ;;  %s7575_s4 = inlined_call_operand.vmem [shape: f32[1,64], index: 4, kind: input, shape index: {}]   ;;  %s7576_s5 = inlined_call_operand.vmem [shape: f32[576,64], index: 5, kind: input, shape index: {}]   ;;  %s7577_s6 = inlined_call_operand.vmem [shape: f32[1,64], index: 6, kind: input, shape index: {}]   ;;  %s7578_s7 = inlined_call_operand.vmem [shape: f32[4,64,64], index: 7, kind: output, shape index: {}]  }
   0x1 LB: > { %s4170_s25 = sadd.s32 4294967295, %s4792_s24   ;;  %p4174_p0 = scmp.ge.s32.totalorder %s4792_s24, 1  ;;  %s4792_s24 = sphi %s4836_s24, %s17_s24  }
   0x2   : > { %p237_p1 = scmp.lt.s32.totalorder %s4792_s24, 5 }
   0x4   : > { %p238_p2 = pnand %p4174_p0, %p237_p1 }
   0x6   : > { %241 = sbr.rel (%p238_p2) target bundleno = 2673 (0xa71), region = 48 }
   0xb   : > { %v323_v0 = vld [vmem:[%s7574_s3 + $0x18] sm:$0x7]  ;;  %vm452_vm0 = vcmask 1042432   ;;  %v322_v1 = vld [vmem:[%s7574_s3 + $0x10] sm:$0xff]  ;;  %p269_p3 = scmp.lt.s32.totalorder %s4170_s25, 3  ;;  %v637_v2 = vld [vmem:[%s7572_s1] sm:$0xff] }
   0xc   : > { %4178 = vmatpush.msk.msra.mxu0 %vm452_vm0, %v323_v0  ;;  %v321_v3 = vld [vmem:[%s7574_s3 + $0x8] sm:$0xff]  ;;  %v4794_v4 = vmov 0   ;;  %v639_v5 = vld [vmem:[%s7572_s1 + $0x10] sm:$0xff]  ;;  %v320_v6 = vld [vmem:[%s7574_s3] sm:$0xff]  ;;  %vm328_vm1 = vcmask 220160   ;;  %vm924_vm2 = vcmask 523264  }
   0xd   : > { %s7662_s25 = smov (!%p269_p3, %s4170_s25), 3  ;;  %4325 = vset.pattern.permute.xlu0 %v4794_v4  ;;  %4326 = vset.pattern.permute.xlu1 %v4794_v4  ;;  %v638_v8 = vld [vmem:[%s7572_s1 + $0x8] sm:$0xff]  ;;  %v640_v9 = vld [vmem:[%s7572_s1 + $0x18] sm:$0xff]  ;;  %v643_v11 = vld [vmem:[%s7572_s1 + $0x30] sm:$0xff]  ;;  %s4795_s14 = smov 64   ;;  %vm1888_vm3 = vcmask 392192  }
   0xe   : > { %469 = vmatpush.msra.mxu0 %v322_v1  ;;  %680 = vperm.xlu0 %4325, %v637_v2   ;;  %s4313_s15 = smul.u32 328, %s7662_s25  ;;  %v641_v15 = vld [vmem:[%s7572_s1 + $0x20] sm:$0xff]  ;;  %v642_v17 = vld [vmem:[%s7572_s1 + $0x28] sm:$0xff]  ;;  %v644_v19 = vld [vmem:[%s7572_s1 + $0x38] sm:$0xff]  ;;  %s4306_s26 = sshll.u32 %s7662_s25, 6 }
   0xf   : > { %690 = vperm.xlu1 %4326, %v639_v5   ;;  %4327 = vset.pattern.permute.xlu2 %v4794_v4  ;;  %v646_v21 = vld [vmem:[%s7572_s1 + $0x48] sm:$0xff]  ;;  %v4914_v24 = vld [vmem:[%s7575_s4] ss:$0 sm:$0xff]  ;;  %v647_v1 = vld [vmem:[%s7572_s1 + $0x50] sm:$0xff]  ;;  %s278_s29 = scalar_lea.vmem %s7578_s7, %s4306_s26 }
  0x10   : > { %470 = vmatpush.msra.mxu0 %v321_v3  ;;  %s4868_s18 = scalar_lea.vmem %s7571_s0, %s4313_s15  ;;  %700 = vperm.xlu2 %4327, %v641_v15   ;;  %v645_v56 = vld [vmem:[%s7572_s1 + $0x40] sm:$0xff] }
  0x11   : > { %v279_v7 = vld [vmem:[%s4868_s18] sm:$0xff]  ;;  %v280_v10 = vld [vmem:[%s4868_s18 + $0x8] sm:$0xff]  ;;  %v281_v12 = vld [vmem:[%s4868_s18 + $0x10] sm:$0xff] }
  0x12   : > { %471 = vmatpush.msra.mxu0 %v320_v6  ;;  %v282_v13 = vld [vmem:[%s4868_s18 + $0x18] sm:$0xff]  ;;  %v283_v14 = vld [vmem:[%s4868_s18 + $0x20] sm:$0xff]  ;;  %v284_v16 = vld [vmem:[%s4868_s18 + $0x28] sm:$0xff] }
  0x13   : > { %4179 = vmatmul.msk.f32.vlgmr.msra.gmra.mxu0 %vm328_vm1, %v279_v7  ;;  %v285_v18 = vld [vmem:[%s4868_s18 + $0x30] sm:$0xff]  ;;  %v286_v20 = vld [vmem:[%s4868_s18 + $0x38] sm:$0xff]  ;;  %v287_v22 = vld [vmem:[%s4868_s18 + $0x40] sm:$0xff] }
  0x14   : > { %v288_v23 = vld [vmem:[%s4868_s18 + $0x48] sm:$0xff]  ;;  %v289_v27 = vld [vmem:[%s4868_s18 + $0x50] sm:$0xff]  ;;  %v290_v38 = vld [vmem:[%s4868_s18 + $0x58] sm:$0xff] }
  0x15   : > { %v291_v53 = vld [vmem:[%s4868_s18 + $0x60] sm:$0xff]  ;;  %v292_v60 = vld [vmem:[%s4868_s18 + $0x68] sm:$0xff] }
  0x16   : > { %685 = vperm.xlu0 %4325, %v638_v8  }
  0x17   : > { %695 = vperm.xlu1 %4326, %v640_v9  }
  0x18   : > { %705 = vperm.xlu2 %4327, %v642_v17   ;;  %v4963_v17 = vld [vmem:[%s7576_s5 + $0x70] sm:$0xff] }
  0x1b   : > { %4180 = vmatmul.msk.f32.gmra.mxu0 %vm328_vm1, %v280_v10 }
  0x1e   : > { %710 = vperm.xlu0 %4325, %v643_v11  }
  0x20   : > { %715 = vperm.xlu2 %4327, %v644_v19   ;;  %v4969_v19 = vld [vmem:[%s7576_s5 + $0x68] sm:$0xff] }
  0x23   : > { %4181 = vmatmul.msk.f32.gmra.mxu0 %vm328_vm1, %v281_v12 }
  0x28   : > { %725 = vperm.xlu2 %4327, %v646_v21   ;;  %v4979_v21 = vld [vmem:[%s7576_s5 + $0x170] sm:$0xff] }
  0x2b   : > { %4182 = vmatmul.msk.f32.gmra.mxu0 %vm328_vm1, %v282_v13 }
  0x33   : > { %4183 = vmatmul.msk.f32.gmra.mxu0 %vm328_vm1, %v283_v14 }
  0x3b   : > { %4184 = vmatmul.msk.f32.gmra.mxu0 %vm328_vm1, %v284_v16  ;;  %v4958_v16 = vld [vmem:[%s7576_s5 + $0x78] sm:$0xff] }
  0x3c   : > { %1226 = vmatpush.msra.mxu1 %v4958_v16 }
  0x3e   : > { %1227 = vmatpush.msra.mxu1 %v4963_v17 }
  0x40   : > { %1228 = vmatpush.msra.mxu1 %v4969_v19 }
  0x43   : > { %4185 = vmatmul.msk.f32.gmra.mxu0 %vm328_vm1, %v285_v18 }
  0x4b   : > { %4186 = vmatmul.msk.f32.gmra.mxu0 %vm328_vm1, %v286_v20  ;;  %v4974_v20 = vld [vmem:[%s7576_s5 + $0x178] sm:$0xff] }
  0x4c   : > { %1296 = vmatpush.msra.mxu3 %v4974_v20 }
  0x4e   : > { %1297 = vmatpush.msra.mxu3 %v4979_v21 }
  0x53   : > { %4187 = vmatmul.msk.f32.gmra.mxu0 %vm328_vm1, %v287_v22 }
  0x5b   : > { %4188 = vmatmul.msk.f32.gmra.mxu0 %vm328_vm1, %v288_v23 }
  0x63   : > { %4189 = vmatmul.msk.f32.gmra.mxu0 %vm328_vm1, %v289_v27  ;;  %v4988_v27 = vld [vmem:[%s7576_s5 + $0x60] sm:$0xff] }
  0x64   : > { %1229 = vmatpush.msra.mxu1 %v4988_v27 }
  0x6a   : > { %v701_v51 = vpop.permute.xlu2 %700 }
  0x6b   : > { %4190 = vmatmul.msk.f32.gmra.mxu0 %vm328_vm1, %v290_v38  ;;  %v5022_v38 = vld [vmem:[%s7576_s5 + $0x50] sm:$0xff] }
  0x72   : > { %v706_v59 = vpop.permute.xlu2 %705 }
  0x73   : > { %4191 = vmatmul.msk.f32.gmra.mxu0 %vm328_vm1, %v291_v53 }
  0x7a   : > { %v716_v22 = vpop.permute.xlu2 %715 }
  0x7b   : > { %4192 = vmatmul.msk.f32.gmra.mxu0 %vm328_vm1, %v292_v60 }
  0x80   : > { %v681_v28 = vpop.permute.xlu0 %680 }
  0x81   : > { %v691_v39 = vpop.permute.xlu1 %690 }
  0x82   : > { %v726_v60 = vpop.permute.xlu2 %725 }
  0x88   : > { %v686_v34 = vpop.permute.xlu0 %685 }
  0x89   : > { %v696_v45 = vpop.permute.xlu1 %695 }
  0x90   : > { %v473_v25 = vpop.f32.mrf.mxu0  ;;  %v711_v6 = vpop.permute.xlu0 %710 }
  0x91   : > { %v474_v26 = vadd.f32 %v4914_v24, %v473_v25 }
  0x93   : > { %v596_v29 = vmax.f32 %v474_v26, 0.0 }
  0x95   : > { %v883_v30 = vmul.f32 %v681_v28, %v596_v29  ;;  %v4993_v28 = vld [vmem:[%s7576_s5 + $0x168] sm:$0xff] }
  0x96   : > { %1298 = vmatpush.msra.mxu3 %v4993_v28 }
  0x97   : > { %925 = vst.msk [vmem:[#allocation2] sm:$0xff] %vm924_vm2, %v883_v30 }
  0x98   : > { %v476_v31 = vpop.f32.mrf.mxu0 }
  0x99   : > { %v477_v32 = vadd.f32 %v4914_v24, %v476_v31 }
  0x9b   : > { %v597_v33 = vmax.f32 %v477_v32, 0.0 }
  0x9d   : > { %v884_v35 = vmul.f32 %v686_v34, %v597_v33  ;;  %v648_v33 = vld [vmem:[%s7572_s1 + $0x58] sm:$0xff] }
  0x9e   : > { %v5005_v34 = vld [vmem:[%s7576_s5 + $0x58] sm:$0xff] }
  0x9f   : > { %926 = vst.msk [vmem:[#allocation2 + $0x8] sm:$0xff] %vm924_vm2, %v884_v35  ;;  %1230 = vmatpush.msra.mxu1 %v5005_v34 }
  0xa0   : > { %v479_v36 = vpop.f32.mrf.mxu0 }
  0xa1   : > { %v480_v37 = vadd.f32 %v4914_v24, %v479_v36  ;;  %v5014_v36 = vld [vmem:[%s7576_s5 + $0x160] sm:$0xff]  ;;  %1231 = vmatpush.msra.mxu1 %v5022_v38 }
  0xa2   : > { %1299 = vmatpush.msra.mxu3 %v5014_v36 }
  0xa3   : > { %v598_v40 = vmax.f32 %v480_v37, 0.0  ;;  %v293_v37 = vld [vmem:[%s4868_s18 + $0x70] sm:$0xff] }
  0xa4   : > { %4193 = vmatmul.msk.f32.gmra.mxu0 %vm328_vm1, %v293_v37  ;;  %v5257_v37 = vld [vmem:[%s7576_s5 + $0xa8] sm:$0xff] }
  0xa5   : > { %v885_v41 = vmul.f32 %v691_v39, %v598_v40  ;;  %v5030_v40 = vld [vmem:[%s7576_s5 + $0x158] sm:$0xff] }
  0xa6   : > { %v972_v47 = vld [vmem:[#allocation2 + $0x1] sm:$0xff]  ;;  %1300 = vmatpush.msra.mxu3 %v5030_v40 }
  0xa7   : > { %927 = vst.msk [vmem:[#allocation2 + $0x10] sm:$0xff] %vm924_vm2, %v885_v41  ;;  %v5035_v41 = vld [vmem:[%s7576_s5 + $0xf8] sm:$0xff] }
  0xa8   : > { %v482_v42 = vpop.f32.mrf.mxu0  ;;  %1261 = vmatpush.msra.mxu2 %v5035_v41  ;;  %2782 = vmatpush.msrb.mxu0 %v5035_v41 }
  0xa9   : > { %v483_v43 = vadd.f32 %v4914_v24, %v482_v42 }
  0xab   : > { %v599_v44 = vmax.f32 %v483_v43, 0.0  ;;  %v5040_v43 = vld [vmem:[%s7576_s5 + $0x48] sm:$0xff] }
  0xac   : > { %1232 = vmatpush.msra.mxu1 %v5040_v43 }
  0xad   : > { %v886_v46 = vmul.f32 %v696_v45, %v599_v44  ;;  %v5047_v44 = vld [vmem:[%s7576_s5 + $0xf0] sm:$0xff] }
  0xae   : > { %v973_v48 = vld [vmem:[#allocation2 + $0x9] sm:$0xff]  ;;  %1262 = vmatpush.msra.mxu2 %v5047_v44  ;;  %2783 = vmatpush.msrb.mxu0 %v5047_v44 }
  0xaf   : > { %928 = vst.msk [vmem:[#allocation2 + $0x18] sm:$0xff] %vm924_vm2, %v886_v46  ;;  %v4328_v49 = vpack.i.bf16 %v973_v48, %v972_v47  ;;  %v5057_v47 = vld [vmem:[%s7576_s5 + $0x150] sm:$0xff]  ;;  %v5063_v48 = vld [vmem:[%s7576_s5 + $0x40] sm:$0xff] }
  0xb0   : > { %v485_v50 = vpop.f32.mrf.mxu0  ;;  %1301 = vmatpush.msra.mxu3 %v5057_v47  ;;  %1233 = vmatpush.msra.mxu1 %v5063_v48 }
  0xb1   : > { %v486_v52 = vadd.f32 %v4914_v24, %v485_v50  ;;  %4329 = vrot.lane.b32.xlu1 %v4328_v49, %s4795_s14 }
  0xb3   : > { %v600_v54 = vmax.f32 %v486_v52, 0.0  ;;  %v5081_v52 = vld [vmem:[%s7576_s5 + $0x148] sm:$0xff] }
  0xb4   : > { %1302 = vmatpush.msra.mxu3 %v5081_v52 }
  0xb5   : > { %v887_v55 = vmul.f32 %v701_v51, %v600_v54  ;;  %v5075_v51 = vld [vmem:[%s7576_s5 + $0x38] sm:$0xff] }
  0xb6   : > { %v974_v63 = vld [vmem:[#allocation2 + $0x11] sm:$0xff]  ;;  %7597 = vst [vmem:[#allocation3_spill] sm:$0xff] %v5075_v51  ;;  %1234 = vmatpush.msra.mxu1 %v5075_v51 }
  0xb7   : > { %929 = vst.msk [vmem:[#allocation2 + $0x20] sm:$0xff] %vm924_vm2, %v887_v55  ;;  %v4945_v8 = vld [vmem:[#allocation2 + $0x12] sm:$0xff] }
  0xb8   : > { %v488_v57 = vpop.f32.mrf.mxu0  ;;  %v992_v30 = vld [vmem:[#allocation2 + $0x14] sm:$0xff] }
  0xb9   : > { %v489_v58 = vadd.f32 %v4914_v24, %v488_v57  ;;  %720 = vperm.xlu1 %4326, %v645_v56   ;;  %v5091_v55 = vld [vmem:[%s7576_s5 + $0x30] sm:$0xff]  ;;  %v5096_v56 = vld [vmem:[%s7576_s5 + $0x140] sm:$0xff] }
  0xba   : > { %1235 = vmatpush.msra.mxu1 %v5091_v55  ;;  %1303 = vmatpush.msra.mxu3 %v5096_v56 }
  0xbb   : > { %v601_v61 = vmax.f32 %v489_v58, 0.0  ;;  %v5103_v58 = vld [vmem:[%s7576_s5 + $0x28] sm:$0xff] }
  0xbc   : > { %7598 = vst [vmem:[#allocation4_spill] sm:$0xff] %v5103_v58  ;;  %1236 = vmatpush.msra.mxu1 %v5103_v58 }
  0xbd   : > { %v888_v62 = vmul.f32 %v706_v59, %v601_v61  ;;  %v5108_v59 = vld [vmem:[%s7576_s5 + $0x138] sm:$0xff] }
  0xbe   : > { %v975_v0 = vld [vmem:[#allocation2 + $0x19] sm:$0xff]  ;;  %1304 = vmatpush.msra.mxu3 %v5108_v59 }
  0xbf   : > { %930 = vst.msk [vmem:[#allocation2 + $0x28] sm:$0xff] %vm924_vm2, %v888_v62  ;;  %v4333_v2 = vpack.i.bf16 %v975_v0, %v974_v63  ;;  %v4981_v23 = vld [vmem:[#allocation2 + $0x1a] sm:$0xff] }
  0xc0   : > { %v491_v3 = vpop.f32.mrf.mxu0  ;;  %v993_v25 = vld [vmem:[#allocation2 + $0x1c] sm:$0xff] }
  0xc1   : > { %v492_v4 = vadd.f32 %v4914_v24, %v491_v3  ;;  %4334 = vrot.lane.b32.xlu0 %v4333_v2, %s4795_s14  ;;  %730 = vperm.xlu1 %4326, %v647_v1   ;;  %v4348_v32 = vpack.i.bf16 %v993_v25, %v4981_v23  ;;  %v5117_v0 = vld [vmem:[%s7576_s5 + $0x20] sm:$0xff]  ;;  %v5122_v1 = vld [vmem:[%s7576_s5 + $0x130] sm:$0xff] }
  0xc2   : > { %7600 = vst [vmem:[#allocation6_spill] sm:$0xff] %v5117_v0  ;;  %v649_v2 = vld [vmem:[%s7572_s1 + $0x60] sm:$0xff]  ;;  %1237 = vmatpush.msra.mxu1 %v5117_v0  ;;  %1305 = vmatpush.msra.mxu3 %v5122_v1  ;;  %v5206_v25 = vld [vmem:[%s7576_s5 + $0x110] sm:$0xff] }
  0xc3   : > { %v602_v5 = vmax.f32 %v492_v4, 0.0  ;;  %v5134_v4 = vld [vmem:[%s7576_s5 + $0x18] sm:$0xff] }
  0xc4   : > { %7601 = vst [vmem:[#allocation7_spill] sm:$0xff] %v5134_v4  ;;  %1238 = vmatpush.msra.mxu1 %v5134_v4 }
  0xc5   : > { %v889_v7 = vmul.f32 %v711_v6, %v602_v5  ;;  %v5142_v5 = vld [vmem:[%s7576_s5 + $0x10] sm:$0xff]  ;;  %v650_v6 = vld [vmem:[%s7572_s1 + $0x68] sm:$0xff] }
  0xc6   : > { %v976_v9 = vld [vmem:[#allocation2 + $0x21] sm:$0xff]  ;;  %7602 = vst [vmem:[#allocation8_spill] sm:$0xff] %v5142_v5  ;;  %1239 = vmatpush.msra.mxu1 %v5142_v5 }
  0xc7   : > { %v4947_v10 = vld [vmem:[#allocation2 + $0x22] sm:$0xff]  ;;  %931 = vst.msk [vmem:[#allocation2 + $0x30] sm:$0xff] %vm924_vm2, %v889_v7  ;;  %v4338_v12 = vpack.i.bf16 %v4945_v8, %v976_v9 }
  0xc8   : > { %v1000_v11 = vld [vmem:[#allocation2 + $0x25] sm:$0xff]  ;;  %v494_v14 = vpop.f32.mrf.mxu0 }
  0xc9   : > { %v4353_v13 = vpack.i.bf16 %v4947_v10, %v1000_v11  ;;  %v495_v15 = vadd.f32 %v4914_v24, %v494_v14  ;;  %4339 = vrot.lane.b32.xlu0 %v4338_v12, %s4795_s14  ;;  %v5024_v39 = vld [vmem:[#allocation2 + $0x24] sm:$0xff] }
  0xca   : > { %v5152_v7 = vld [vmem:[%s7576_s5 + $0x8] sm:$0xff]  ;;  %v5169_v12 = vld [vmem:[%s7576_s5] sm:$0xff] }
  0xcb   : > { %4354 = vrot.lane.b32.xlu1 %v4353_v13, %s4795_s14  ;;  %v603_v18 = vmax.f32 %v495_v15, 0.0  ;;  %7603 = vst [vmem:[#allocation9_spill] sm:$0xff] %v5152_v7  ;;  %v5157_v9 = vld [vmem:[%s7576_s5 + $0xe8] sm:$0xff]  ;;  %1240 = vmatpush.msra.mxu1 %v5152_v7  ;;  %v5174_v13 = vld [vmem:[%s7576_s5 + $0xe0] sm:$0xff]  ;;  %v5188_v15 = vld [vmem:[%s7576_s5 + $0xd8] sm:$0xff] }
  0xcc   : > { %v5162_v11 = vld [vmem:[%s7576_s5 + $0x128] sm:$0xff]  ;;  %1263 = vmatpush.msra.mxu2 %v5157_v9  ;;  %7604 = vst [vmem:[#allocation10_spill] sm:$0xff] %v5169_v12  ;;  %v5179_v14 = vld [vmem:[%s7576_s5 + $0x120] sm:$0xff]  ;;  %2784 = vmatpush.msrb.mxu0 %v5157_v9 }
  0xcd   : > { %v890_v26 = vmul.f32 %v716_v22, %v603_v18  ;;  %1306 = vmatpush.msra.mxu3 %v5162_v11  ;;  %1241 = vmatpush.msra.mxu1 %v5169_v12  ;;  %v5193_v18 = vld [vmem:[%s7576_s5 + $0x118] sm:$0xff]  ;;  %v5199_v22 = vld [vmem:[%s7576_s5 + $0xd0] sm:$0xff] }
  0xce   : > { %v977_v29 = vld [vmem:[#allocation2 + $0x29] sm:$0xff]  ;;  %1264 = vmatpush.msra.mxu2 %v5174_v13  ;;  %2785 = vmatpush.msrb.mxu0 %v5174_v13 }
  0xcf   : > { %932 = vst.msk [vmem:[#allocation2 + $0x38] sm:$0xff] %vm924_vm2, %v890_v26  ;;  %v4343_v31 = vpack.i.bf16 %v992_v30, %v977_v29  ;;  %v1001_v42 = vld [vmem:[#allocation2 + $0x2d] sm:$0xff]  ;;  %1307 = vmatpush.msra.mxu3 %v5179_v14  ;;  %v5228_v30 = vld [vmem:[%s7576_s5 + $0xc0] sm:$0xff] }
  0xd0   : > { %v5007_v35 = vpop.f32.mrf.mxu0  ;;  %v5049_v45 = vld [vmem:[#allocation2 + $0x2a] sm:$0xff]  ;;  %v4358_v49 = vpack.i.bf16 %v1001_v42, %v5024_v39  ;;  %1265 = vmatpush.msra.mxu2 %v5188_v15  ;;  %2786 = vmatpush.msrb.mxu0 %v5188_v15  ;;  %v5277_v42 = vld [vmem:[%s7576_s5 + $0x1f8] sm:$0xff] }
  0xd1   : > { %4344 = vrot.lane.b32.xlu2 %v4343_v31, %s4795_s14  ;;  %4349 = vrot.lane.b32.xlu0 %v4348_v32, %s4795_s14  ;;  %v5051_v46 = vld [vmem:[#allocation2 + $0x2c] sm:$0xff]  ;;  %v5233_v31 = vld [vmem:[%s7576_s5 + $0x100] sm:$0xff]  ;;  %v5240_v32 = vld [vmem:[%s7576_s5 + $0xb8] sm:$0xff]  ;;  %7607 = vst [vmem:[#allocation13_spill] sm:$0xff] %v5277_v42 }
  0xd2   : > { %v4363_v50 = vpack.i.bf16 %v5051_v46, %v5049_v45  ;;  %1308 = vmatpush.msra.mxu3 %v5193_v18  ;;  %1266 = vmatpush.msra.mxu2 %v5199_v22  ;;  %v5215_v26 = vld [vmem:[%s7576_s5 + $0xc8] sm:$0xff]  ;;  %7606 = vst [vmem:[#allocation12_spill] sm:$0xff] %v5233_v31 }
  0xd3   : > { %735 = vperm.xlu1 %4326, %v648_v33   ;;  %v5220_v29 = vld [vmem:[%s7576_s5 + $0x108] sm:$0xff]  ;;  %2787 = vmatpush.msrb.mxu0 %v5199_v22  ;;  %v5246_v33 = vld [vmem:[%s7576_s5 + $0xb0] sm:$0xff] }
  0xd4   : > { %1309 = vmatpush.msra.mxu3 %v5206_v25  ;;  %7605 = vst [vmem:[#allocation11_spill] sm:$0xff] %v5220_v29  ;;  %1267 = vmatpush.msra.mxu2 %v5215_v26 }
  0xd5   : > { %2788 = vmatpush.msrb.mxu0 %v5215_v26  ;;  %1331 = vmatpush.msrb.mxu1 %v5277_v42 }
  0xd6   : > { %v5110_v61 = vld [vmem:[#allocation2 + $0x32] sm:$0xff]  ;;  %1310 = vmatpush.msra.mxu3 %v5220_v29  ;;  %1268 = vmatpush.msra.mxu2 %v5228_v30 }
  0xd7   : > { %7599 = vst [vmem:[#allocation5_spill] sm:$0xff] %v5110_v61  ;;  %v1002_v62 = vld [vmem:[#allocation2 + $0x35] sm:$0xff]  ;;  %2789 = vmatpush.msrb.mxu0 %v5228_v30 }
  0xd8   : > { %v500_v53 = vpop.f32.mrf.mxu0  ;;  %v4368_v3 = vpack.i.bf16 %v5110_v61, %v1002_v62  ;;  %1311 = vmatpush.msra.mxu3 %v5233_v31  ;;  %1269 = vmatpush.msra.mxu2 %v5240_v32  ;;  %v5347_v62 = vld [vmem:[%s7576_s5 + $0x1c8] sm:$0xff]  ;;  %v986_v31 = vld [vmem:[#allocation2 + $0x13] sm:$0xff] }
  0xd9   : > { %v501_v54 = vadd.f32 %v4914_v24, %v500_v53  ;;  %4359 = vrot.lane.b32.xlu2 %v4358_v49, %s4795_s14  ;;  %4364 = vrot.lane.b32.xlu0 %v4363_v50, %s4795_s14  ;;  %v5289_v49 = vld [vmem:[%s7576_s5 + $0x1f0] sm:$0xff]  ;;  %v5306_v50 = vld [vmem:[%s7576_s5 + $0x1e8] sm:$0xff] }
  0xda   : > { %1633 = vmatpush.msrb.mxu3 %v4958_v16  ;;  %2790 = vmatpush.msrb.mxu0 %v5240_v32  ;;  %v5265_v16 = vld [vmem:[%s7576_s5 + $0xa0] sm:$0xff]  ;;  %7608 = vst [vmem:[#allocation14_spill] sm:$0xff] %v5289_v49  ;;  %v5328_v53 = vld [vmem:[%s7576_s5 + $0x1d8] sm:$0xff]  ;;  %v967_v61 = vld [vmem:[#allocation2 + $0x8] sm:$0xff] }
  0xdb   : > { %v605_v57 = vmax.f32 %v501_v54, 0.0  ;;  %1270 = vmatpush.msra.mxu2 %v5246_v33  ;;  %1332 = vmatpush.msrb.mxu1 %v5289_v49  ;;  %7609 = vst [vmem:[#allocation15_spill] sm:$0xff] %v5306_v50  ;;  %v294_v54 = vld [vmem:[%s4868_s18 + $0x78] sm:$0xff] }
  0xdc   : > { %1634 = vmatpush.msrb.mxu3 %v4963_v17  ;;  %2791 = vmatpush.msrb.mxu0 %v5246_v33  ;;  %v5272_v17 = vld [vmem:[%s7576_s5 + $0x98] sm:$0xff]  ;;  %7611 = vst [vmem:[#allocation17_spill] sm:$0xff] %v5328_v53 }
  0xdd   : > { %v892_v63 = vmul.f32 %v726_v60, %v605_v57  ;;  %1271 = vmatpush.msra.mxu2 %v5257_v37  ;;  %1333 = vmatpush.msrb.mxu1 %v5306_v50 }
  0xde   : > { %1635 = vmatpush.msrb.mxu3 %v4969_v19  ;;  %2792 = vmatpush.msrb.mxu0 %v5257_v37  ;;  %v5284_v19 = vld [vmem:[%s7576_s5 + $0x90] sm:$0xff] }
  0xdf   : > { %934 = vst.msk [vmem:[#allocation2 + $0x48] sm:$0xff] %vm924_vm2, %v892_v63  ;;  %1272 = vmatpush.msra.mxu2 %v5265_v16  ;;  %4194 = vmatmul.msk.f32.gmra.mxu0 %vm328_vm1, %v294_v54  ;;  %v966_v63 = vld [vmem:[#allocation2] sm:$0xff]  ;;  %v5369_v54 = vld [vmem:[%s7576_s5 + $0x1b0] sm:$0xff] }
  0xe0   : > { %1636 = vmatpush.msrb.mxu3 %v4988_v27  ;;  %2793 = vmatpush.msrb.mxu0 %v5265_v16  ;;  %v5301_v27 = vld [vmem:[%s7576_s5 + $0x88] sm:$0xff] }
  0xe1   : > { %4369 = vrot.lane.b32.xlu2 %v4368_v3, %s4795_s14  ;;  %740 = vperm.xlu0 %4325, %v649_v2   ;;  %v5355_v3 = vld [vmem:[%s7576_s5 + $0x1c0] sm:$0xff] }
  0xe2   : > { %1273 = vmatpush.msra.mxu2 %v5272_v17  ;;  %1637 = vmatpush.msrb.mxu3 %v5005_v34  ;;  %v5314_v34 = vld [vmem:[%s7576_s5 + $0x80] sm:$0xff] }
  0xe3   : > { %2794 = vmatpush.msrb.mxu0 %v5272_v17 }
  0xe4   : > { %1274 = vmatpush.msra.mxu2 %v5284_v19  ;;  %1638 = vmatpush.msrb.mxu3 %v5022_v38  ;;  %v5319_v38 = vld [vmem:[%s7576_s5 + $0x1e0] sm:$0xff] }
  0xe5   : > { %2795 = vmatpush.msrb.mxu0 %v5284_v19  ;;  %7610 = vst [vmem:[#allocation16_spill] sm:$0xff] %v5319_v38  ;;  %1334 = vmatpush.msrb.mxu1 %v5319_v38 }
  0xe6   : > { %1275 = vmatpush.msra.mxu2 %v5301_v27  ;;  %1639 = vmatpush.msrb.mxu3 %v5040_v43  ;;  %v5337_v43 = vld [vmem:[%s7576_s5 + $0x1d0] sm:$0xff] }
  0xe7   : > { %2796 = vmatpush.msrb.mxu0 %v5301_v27  ;;  %1335 = vmatpush.msrb.mxu1 %v5328_v53  ;;  %7612 = vst [vmem:[#allocation18_spill] sm:$0xff] %v5337_v43 }
  0xe8   : > { %1276 = vmatpush.msra.mxu2 %v5314_v34  ;;  %1640 = vmatpush.msrb.mxu3 %v5063_v48  ;;  %v498_v48 = vadd.f32 %v4914_v24, %v5007_v35 }
  0xe9   : > { %745 = vperm.xlu0 %4325, %v650_v6   ;;  %2797 = vmatpush.msrb.mxu0 %v5314_v34  ;;  %v295_v6 = vld [vmem:[%s4868_s18 + $0x80] sm:$0xff] }
  0xea   : > { %1641 = vmatpush.msrb.mxu3 %v5075_v51  ;;  %1336 = vmatpush.msrb.mxu1 %v5337_v43  ;;  %v604_v35 = vmax.f32 %v498_v48, 0.0  ;;  %v5381_v51 = vld [vmem:[%s7576_s5 + $0x1a8] sm:$0xff] }
  0xeb   : > { %4195 = vmatmul.msk.f32.gmra.mxu0 %vm328_vm1, %v295_v6  ;;  %v5387_v6 = vld [vmem:[%s7576_s5 + $0x1a0] sm:$0xff] }
  0xec   : > { %1642 = vmatpush.msrb.mxu3 %v5091_v55  ;;  %1337 = vmatpush.msrb.mxu1 %v5347_v62  ;;  %v5362_v55 = vld [vmem:[%s7576_s5 + $0x1b8] sm:$0xff] }
  0xee   : > { %1643 = vmatpush.msrb.mxu3 %v5103_v58  ;;  %1338 = vmatpush.msrb.mxu1 %v5355_v3 }
  0xf0   : > { %1644 = vmatpush.msrb.mxu3 %v5117_v0  ;;  %1339 = vmatpush.msrb.mxu1 %v5362_v55 }
  0xf2   : > { %1645 = vmatpush.msrb.mxu3 %v5134_v4  ;;  %1340 = vmatpush.msrb.mxu1 %v5369_v54 }
  0xf4   : > { %1646 = vmatpush.msrb.mxu3 %v5142_v5  ;;  %1341 = vmatpush.msrb.mxu1 %v5381_v51 }
  0xf6   : > { %1342 = vmatpush.msrb.mxu1 %v5387_v6  ;;  %1647 = vmatpush.msrb.mxu3 %v5152_v7 }
  0xf8   : > { %1648 = vmatpush.msrb.mxu3 %v5169_v12 }
 0x123   : > { %v4330_v57 = vpop.permute.xlu1 %4329 }
 0x124   : > { %v4331_v60 = vunpack.i.l.bf16 %v4330_v57 }
 0x126   : > { %v1108_v2 = vsel %vm924_vm2, %v966_v63, %v4331_v60  ;;  %v4332_v60 = vunpack.i.h.bf16 %v4330_v57  ;;  %v503_v63 = vpop.f32.mrf.mxu0 }
 0x127   : > { %1242 = vmatmul.f32.vlgmr.msra.gmra.mxu1 %v1108_v2  ;;  %v504_v57 = vadd.f32 %v4914_v24, %v503_v63  ;;  %v5398_v63 = vld [vmem:[%s7576_s5 + $0x198] sm:$0xff] }
 0x128   : > { %1343 = vmatpush.msrb.mxu1 %v5398_v63 }
 0x129   : > { %v606_v5 = vmax.f32 %v504_v57, 0.0 }
 0x12b   : > { %v5373_v48 = vpop.permute.xlu2 %4344  ;;  %v721_v2 = vpop.permute.xlu1 %720 }
 0x12c   : > { %v4347_v58 = vunpack.i.h.bf16 %v5373_v48  ;;  %v891_v0 = vmul.f32 %v721_v2, %v604_v35  ;;  %v1109_v35 = vsel %vm924_vm2, %v967_v61, %v4332_v60  ;;  %v5404_v61 = vld [vmem:[%s7576_s5 + $0x190] sm:$0xff] }
 0x12d   : > { %v968_v60 = vld [vmem:[#allocation2 + $0x10] sm:$0xff]  ;;  %1344 = vmatpush.msrb.mxu1 %v5404_v61 }
 0x12e   : > { %933 = vst.msk [vmem:[#allocation2 + $0x40] sm:$0xff] %vm924_vm2, %v891_v0  ;;  %v1120_v2 = vsel %vm924_vm2, %v986_v31, %v4347_v58 }
 0x12f   : > { %1245 = vmatmul.f32.gmra.mxu1 %v1109_v35  ;;  %1312 = vmatmul.f32.vlgmr.msra.gmra.mxu3 %v1120_v2  ;;  %v5409_v35 = vld [vmem:[#allocation2 + $0x34] sm:$0xff] }
 0x130   : > { %1738 = vmatpush.msra.mxu3 %v5277_v42 }
 0x132   : > { %1739 = vmatpush.msra.mxu3 %v5289_v49 }
 0x133   : > { %v4335_v58 = vpop.permute.xlu0 %4334  ;;  %v731_v31 = vpop.permute.xlu1 %730 }
 0x134   : > { %v4336_v0 = vunpack.i.l.bf16 %v4335_v58  ;;  %v893_v57 = vmul.f32 %v731_v31, %v606_v5  ;;  %v5425_v5 = vld [vmem:[%s7576_s5 + $0x188] sm:$0xff]  ;;  %1740 = vmatpush.msra.mxu3 %v5306_v50  ;;  %v506_v31 = vpop.f32.mrf.mxu0 }
 0x135   : > { %v1003_v2 = vld [vmem:[#allocation2 + $0x3d] sm:$0xff]  ;;  %1345 = vmatpush.msrb.mxu1 %v5425_v5 }
 0x136   : > { %v5412_v7 = vld [vmem:[#allocation2 + $0x3a] sm:$0xff]  ;;  %v1110_v12 = vsel %vm924_vm2, %v968_v60, %v4336_v0  ;;  %v4373_v29 = vpack.i.bf16 %v1003_v2, %v5409_v35  ;;  %935 = vst.msk [vmem:[#allocation2 + $0x50] sm:$0xff] %vm924_vm2, %v893_v57  ;;  %1741 = vmatpush.msra.mxu3 %v5319_v38  ;;  %v978_v50 = vld [vmem:[#allocation2 + $0x2] sm:$0xff]  ;;  %v651_v38 = vld [vmem:[%s7572_s1 + $0x70] sm:$0xff] }
 0x137   : > { %7613 = vst [vmem:[#allocation19_spill] sm:$0xff] %v5412_v7  ;;  %v5414_v4 = vld [vmem:[#allocation2 + $0x3c] sm:$0xff]  ;;  %1248 = vmatmul.f32.gmra.mxu1 %v1110_v12  ;;  %v4337_v12 = vunpack.i.h.bf16 %v4335_v58 }
 0x138   : > { %7614 = vst [vmem:[#allocation20_spill] sm:$0xff] %v5414_v4  ;;  %v4378_v42 = vpack.i.bf16 %v5414_v4, %v5412_v7  ;;  %4374 = vrot.lane.b32.xlu1 %v4373_v29, %s4795_s14  ;;  %v5433_v0 = vld [vmem:[%s7576_s5 + $0x180] sm:$0xff]  ;;  %1742 = vmatpush.msra.mxu3 %v5328_v53  ;;  %v969_v2 = vld [vmem:[#allocation2 + $0x18] sm:$0xff] }
 0x139   : > { %1346 = vmatpush.msrb.mxu1 %v5433_v0  ;;  %v1111_v58 = vsel %vm924_vm2, %v969_v2, %v4337_v12  ;;  %v1455_v7 = vld [vmem:[#allocation2 + $0x31] sm:$0xff]  ;;  %v1456_v12 = vld [vmem:[#allocation2 + $0x39] sm:$0xff] }
 0x13a   : > { %4379 = vrot.lane.b32.xlu2 %v4378_v42, %s4795_s14  ;;  %v507_v42 = vadd.f32 %v4914_v24, %v506_v31  ;;  %1743 = vmatpush.msra.mxu3 %v5337_v43  ;;  %v979_v2 = vld [vmem:[#allocation2 + $0xa] sm:$0xff] }
 0x13b   : > { %v4340_v60 = vpop.permute.xlu0 %4339  ;;  %1668 = vmatpush.msra.mxu1 %v5035_v41  ;;  %v1004_v41 = vld [vmem:[#allocation2 + $0x45] sm:$0xff] }
 0x13c   : > { %v4342_v57 = vunpack.i.h.bf16 %v4340_v60  ;;  %v607_v4 = vmax.f32 %v507_v42, 0.0  ;;  %v4341_v43 = vunpack.i.l.bf16 %v4340_v60  ;;  %1744 = vmatpush.msra.mxu3 %v5347_v62  ;;  %v970_v42 = vld [vmem:[#allocation2 + $0x20] sm:$0xff] }
 0x13d   : > { %v5439_v29 = vpop.permute.xlu1 %4354  ;;  %v1005_v53 = vld [vmem:[#allocation2 + $0x4d] sm:$0xff]  ;;  %1669 = vmatpush.msra.mxu1 %v5047_v44 }
 0x13e   : > { %v1114_v49 = vsel %vm924_vm2, %v978_v50, %v4342_v57  ;;  %v4383_v31 = vpack.i.bf16 %v1455_v7, %v1005_v53  ;;  %v5454_v57 = vld [vmem:[#allocation2 + $0x42] sm:$0xff]  ;;  %v5457_v53 = vld [vmem:[#allocation2 + $0x4a] sm:$0xff]  ;;  %1745 = vmatpush.msra.mxu3 %v5355_v3  ;;  %v1112_v60 = vsel %vm924_vm2, %v970_v42, %v4341_v43  ;;  %v4357_v43 = vunpack.i.h.bf16 %v5439_v29 }
 0x13f   : > { %1251 = vmatmul.f32.gmra.mxu1 %v1111_v58  ;;  %1277 = vmatmul.f32.vlgmr.msra.gmra.mxu2 %v1114_v49 }
 0x140   : > { %1098 = vrot.lane.b32.xlu1 %v1004_v41, %s4795_s14  ;;  %4384 = vrot.lane.b32.xlu0 %v4383_v31, %s4795_s14  ;;  %v1457_v31 = vld [vmem:[#allocation2 + $0x41] sm:$0xff]  ;;  %v1116_v42 = vsel %vm924_vm2, %v4945_v8, %v4357_v43  ;;  %v1202_v8 = vld [vmem:[%s7576_s5 + $0x230] sm:$0xff] }
 0x141   : > { %1670 = vmatpush.msra.mxu1 %v5157_v9  ;;  %v987_v9 = vld [vmem:[#allocation2 + $0x1b] sm:$0xff]  ;;  %1746 = vmatpush.msra.mxu3 %v5362_v55 }
 0x142   : > { %750 = vperm.xlu2 %4327, %v651_v38  }
 0x143   : > { %v4350_v50 = vpop.permute.xlu0 %4349  ;;  %1671 = vmatpush.msra.mxu1 %v5174_v13  ;;  %v4388_v13 = vpack.i.bf16 %v5454_v57, %v1456_v12  ;;  %1747 = vmatpush.msra.mxu3 %v5369_v54 }
 0x144   : > { %v4352_v44 = vunpack.i.h.bf16 %v4350_v50  ;;  %v4351_v49 = vunpack.i.l.bf16 %v4350_v50  ;;  %v509_v50 = vpop.f32.mrf.mxu0 }
 0x145   : > { %v736_v7 = vpop.permute.xlu1 %735  ;;  %1672 = vmatpush.msra.mxu1 %v5188_v15  ;;  %v4346_v15 = vunpack.i.l.bf16 %v5373_v48  ;;  %1748 = vmatpush.msra.mxu3 %v5381_v51 }
 0x146   : > { %v894_v38 = vmul.f32 %v736_v7, %v607_v4  ;;  %v1115_v58 = vsel %vm924_vm2, %v979_v2, %v4351_v49  ;;  %v1121_v41 = vsel %vm924_vm2, %v987_v9, %v4352_v44  ;;  %v4393_v4 = vpack.i.bf16 %v5457_v53, %v1457_v31  ;;  %v5468_v7 = vpop.permute.xlu2 %4359  ;;  %v988_v2 = vld [vmem:[#allocation2 + $0x23] sm:$0xff] }
 0x147   : > { %1254 = vmatmul.f32.gmra.mxu1 %v1112_v60  ;;  %1280 = vmatmul.f32.gmra.mxu2 %v1115_v58  ;;  %v4361_v12 = vunpack.i.l.bf16 %v5468_v7  ;;  %v510_v49 = vadd.f32 %v4914_v24, %v509_v50  ;;  %v1458_v9 = vld [vmem:[#allocation2 + $0x49] sm:$0xff]  ;;  %v4356_v31 = vunpack.i.l.bf16 %v5439_v29 }
 0x148   : > { %936 = vst.msk [vmem:[#allocation2 + $0x58] sm:$0xff] %vm924_vm2, %v894_v38  ;;  %1315 = vmatmul.f32.gmra.mxu3 %v1121_v41  ;;  %4389 = vrot.lane.b32.xlu1 %v4388_v13, %s4795_s14  ;;  %v971_v38 = vld [vmem:[#allocation2 + $0x28] sm:$0xff] }
 0x149   : > { %1673 = vmatpush.msra.mxu1 %v5199_v22  ;;  %v652_v22 = vld [vmem:[%s7572_s1 + $0x78] sm:$0xff]  ;;  %v1113_v48 = vsel %vm924_vm2, %v971_v38, %v4346_v15  ;;  %1749 = vmatpush.msra.mxu3 %v5387_v6  ;;  %v608_v41 = vmax.f32 %v510_v49, 0.0  ;;  %v989_v49 = vld [vmem:[#allocation2 + $0x2b] sm:$0xff] }
 0x14a   : > { %4394 = vrot.lane.b32.xlu2 %v4393_v4, %s4795_s14 }
 0x14b   : > { %v4365_v44 = vpop.permute.xlu0 %4364  ;;  %1674 = vmatpush.msra.mxu1 %v5215_v26  ;;  %v1122_v26 = vsel %vm924_vm2, %v988_v2, %v4361_v12  ;;  %1750 = vmatpush.msra.mxu3 %v5398_v63 }
 0x14c   : > { %v512_v13 = vpop.f32.mrf.mxu0  ;;  %v4366_v4 = vunpack.i.l.bf16 %v4365_v44  ;;  %v4367_v50 = vunpack.i.h.bf16 %v4365_v44  ;;  %v653_v44 = vld [vmem:[%s7572_s1 + $0x80] sm:$0xff] }
 0x14d   : > { %1675 = vmatpush.msra.mxu1 %v5228_v30  ;;  %v1203_v30 = vld [vmem:[%s7576_s5 + $0x238] sm:$0xff]  ;;  %v513_v12 = vadd.f32 %v4914_v24, %v512_v13  ;;  %1751 = vmatpush.msra.mxu3 %v5404_v61 }
 0x14e   : > { %1374 = vmatpush.msrb.mxu2 %v1203_v30  ;;  %v1117_v29 = vsel %vm924_vm2, %v4981_v23, %v4366_v4  ;;  %v1123_v38 = vsel %vm924_vm2, %v989_v49, %v4367_v50  ;;  %v4362_v23 = vunpack.i.h.bf16 %v5468_v7  ;;  %v1196_v4 = vld [vmem:[%s7576_s5 + $0x200] sm:$0xff] }
 0x14f   : > { %v5487_v60 = vld [vmem:[#allocation2 + $0x52] sm:$0xff]  ;;  %1257 = vmatmul.f32.gmra.mxu1 %v1113_v48  ;;  %1283 = vmatmul.f32.gmra.mxu2 %v1116_v42 }
 0x150   : > { %v4398_v58 = vpack.i.bf16 %v5487_v60, %v1458_v9  ;;  %1318 = vmatmul.f32.gmra.mxu3 %v1122_v26  ;;  %755 = vperm.xlu1 %4326, %v652_v22   ;;  %v609_v22 = vmax.f32 %v513_v12, 0.0  ;;  %v1459_v42 = vld [vmem:[#allocation2 + $0x51] sm:$0xff]  ;;  %v1127_v9 = vsel %vm924_vm2, %v5051_v46, %v4362_v23 }
 0x151   : > { %1676 = vmatpush.msra.mxu1 %v5240_v32  ;;  %1375 = vmatpush.msrb.mxu2 %v1202_v8  ;;  %v1126_v32 = vsel %vm924_vm2, %v5024_v39, %v4356_v31  ;;  %v1197_v31 = vld [vmem:[%s7576_s5 + $0x208] sm:$0xff] }
 0x152   : > { %4399 = vrot.lane.b32.xlu0 %v4398_v58, %s4795_s14  ;;  %1752 = vmatpush.msra.mxu3 %v5425_v5 }
 0x153   : > { %v741_v15 = vpop.permute.xlu0 %740  ;;  %1677 = vmatpush.msra.mxu1 %v5246_v33  ;;  %v4370_v33 = vpop.permute.xlu2 %4369 }
 0x154   : > { %v895_v43 = vmul.f32 %v741_v15, %v608_v41  ;;  %1753 = vmatpush.msra.mxu3 %v5433_v0  ;;  %v4372_v39 = vunpack.i.h.bf16 %v4370_v33  ;;  %v5536_v41 = vld [vmem:[#allocation2 + $0x4c] sm:$0xff]  ;;  %v515_v50 = vpop.f32.mrf.mxu0 }
 0x155   : > { %1678 = vmatpush.msra.mxu1 %v5257_v37 }
 0x156   : > { %937 = vst.msk [vmem:[#allocation2 + $0x60] sm:$0xff] %vm924_vm2, %v895_v43  ;;  %v1007_v43 = vld [vmem:[#allocation2 + $0x2e] sm:$0xff] }
 0x157   : > { %1286 = vmatmul.f32.gmra.mxu2 %v1117_v29  ;;  %1347 = vmatmul.f32.vlgmr.msrb.gmra.mxu1 %v1126_v32  ;;  %v298_v29 = vld [vmem:[%s4868_s18 + $0x98] sm:$0xff] }
 0x158   : > { %1321 = vmatmul.f32.gmra.mxu3 %v1123_v38  ;;  %1679 = vmatpush.msra.mxu1 %v5265_v16  ;;  %v1118_v16 = vsel %vm924_vm2, %v4947_v10, %v4372_v39  ;;  %v990_v38 = vld [vmem:[#allocation2 + $0x33] sm:$0xff] }
 0x159   : > { %v7617_v39 = vld [vmem:[#allocation20_spill] sm:$0xff] }
 0x15a   : > { %760 = vperm.xlu0 %4325, %v653_v44   ;;  %1680 = vmatpush.msra.mxu1 %v5272_v17  ;;  %v1483_v17 = vld [vmem:[#allocation2 + $0x55] sm:$0xff] }
 0x15b   : > { %v746_v37 = vpop.permute.xlu0 %745 }
 0x15c   : > { %v896_v48 = vmul.f32 %v746_v37, %v609_v22  ;;  %1681 = vmatpush.msra.mxu1 %v5284_v19  ;;  %v4371_v19 = vunpack.i.l.bf16 %v4370_v33  ;;  %v1814_v22 = vld [vmem:[%s7573_s2 + $0x30] sm:$0xff] }
 0x15d   : > { %v5521_v2 = vld [vmem:[#allocation2 + $0x5a] sm:$0xff] }
 0x15e   : > { %938 = vst.msk [vmem:[#allocation2 + $0x68] sm:$0xff] %vm924_vm2, %v896_v48  ;;  %v4403_v7 = vpack.i.bf16 %v5521_v2, %v1459_v42  ;;  %1682 = vmatpush.msra.mxu1 %v5301_v27  ;;  %v1460_v10 = vld [vmem:[#allocation2 + $0x59] sm:$0xff]  ;;  %v1128_v46 = vsel %vm924_vm2, %v5409_v35, %v4371_v19 }
 0x15f   : > { %1289 = vmatmul.f32.gmra.mxu2 %v1118_v16  ;;  %1350 = vmatmul.f32.gmra.mxu1 %v1127_v9  ;;  %v1484_v27 = vld [vmem:[#allocation2 + $0x5d] sm:$0xff]  ;;  %v5597_v48 = vld [vmem:[#allocation2 + $0x54] sm:$0xff] }
 0x160   : > { %4404 = vrot.lane.b32.xlu2 %v4403_v7, %s4795_s14  ;;  %1683 = vmatpush.msra.mxu1 %v5314_v34  ;;  %v4418_v13 = vpack.i.bf16 %v1484_v27, %v5536_v41  ;;  %v1201_v34 = vld [vmem:[%s7576_s5 + $0x228] sm:$0xff]  ;;  %v1199_v35 = vld [vmem:[%s7576_s5 + $0x218] sm:$0xff]  ;;  %v299_v9 = vld [vmem:[%s4868_s18 + $0xa0] sm:$0xff] }
 0x161   : > { %1376 = vmatpush.msrb.mxu2 %v1201_v34  ;;  %v1008_v42 = vld [vmem:[#allocation2 + $0x36] sm:$0xff]  ;;  %v1009_v27 = vld [vmem:[#allocation2 + $0x3e] sm:$0xff] }
 0x162   : > { %1573 = vrot.lane.b32.xlu0 %v1483_v17, %s4795_s14  ;;  %1781 = vmatpush.msrb.mxu1 %v1203_v30  ;;  %v1200_v30 = vld [vmem:[%s7576_s5 + $0x220] sm:$0xff] }
 0x163   : > { %1377 = vmatpush.msrb.mxu2 %v1200_v30  ;;  %v991_v19 = vld [vmem:[#allocation2 + $0x3b] sm:$0xff] }
 0x164   : > { %1782 = vmatpush.msrb.mxu1 %v1202_v8  ;;  %v1198_v8 = vld [vmem:[%s7576_s5 + $0x210] sm:$0xff] }
 0x165   : > { %v1467_v26 = vld [vmem:[#allocation2 + $0x62] sm:$0xff]  ;;  %1378 = vmatpush.msrb.mxu2 %v1199_v35 }
 0x166   : > { %v4408_v58 = vpack.i.bf16 %v1467_v26, %v1460_v10  ;;  %1783 = vmatpush.msrb.mxu1 %v1201_v34  ;;  %v1485_v33 = vld [vmem:[#allocation2 + $0x65] sm:$0xff] }
 0x167   : > { %1353 = vmatmul.f32.gmra.mxu1 %v1128_v46  ;;  %1379 = vmatpush.msrb.mxu2 %v1198_v8  ;;  %v4423_v16 = vpack.i.bf16 %v1485_v33, %v5597_v48  ;;  %v1817_v10 = vld [vmem:[%s7573_s2 + $0x48] sm:$0xff] }
 0x168   : > { %4409 = vrot.lane.b32.xlu1 %v4408_v58, %s4795_s14  ;;  %1784 = vmatpush.msrb.mxu1 %v1200_v30 }
 0x169   : > { %1380 = vmatpush.msrb.mxu2 %v1197_v31 }
 0x16a   : > { %1785 = vmatpush.msrb.mxu1 %v1199_v35 }
 0x16b   : > { %1381 = vmatpush.msrb.mxu2 %v1196_v4 }
 0x16c   : > { %1786 = vmatpush.msrb.mxu1 %v1198_v8  ;;  %v5613_v8 = vld [vmem:[%s7575_s4] ss:$0 sm:$0xff] }
 0x16d   : > { %1703 = vmatpush.msra.mxu2 %v4974_v20 }
 0x16e   : > { %1787 = vmatpush.msrb.mxu1 %v1197_v31 }
 0x16f   : > { %1704 = vmatpush.msra.mxu2 %v4979_v21  ;;  %v516_v21 = vadd.f32 %v4914_v24, %v515_v50  ;;  %v1006_v24 = vld [vmem:[#allocation2 + $0x26] sm:$0xff] }
 0x170   : > { %4419 = vrot.lane.b32.xlu1 %v4418_v13, %s4795_s14  ;;  %1788 = vmatpush.msrb.mxu1 %v1196_v4  ;;  %v518_v13 = vpop.f32.mrf.mxu0  ;;  %v1449_v4 = vld [vmem:[#allocation2 + $0x30] sm:$0xff]  ;;  %v1407_v50 = vld [vmem:[%s7573_s2] sm:$0xff] }
 0x171   : > { %1705 = vmatpush.msra.mxu2 %v4993_v28  ;;  %v519_v31 = vadd.f32 %v5613_v8, %v518_v13  ;;  %v1815_v13 = vld [vmem:[%s7573_s2 + $0x38] sm:$0xff] }
 0x173   : > { %1706 = vmatpush.msra.mxu2 %v5014_v36  ;;  %v610_v36 = vmax.f32 %v516_v21, 0.0  ;;  %v1010_v21 = vld [vmem:[#allocation2 + $0x46] sm:$0xff] }
 0x175   : > { %1707 = vmatpush.msra.mxu2 %v5030_v40  ;;  %v296_v40 = vld [vmem:[%s4868_s18 + $0x88] sm:$0xff] }
 0x176   : > { %4196 = vmatmul.msk.f32.gmra.mxu0 %vm328_vm1, %v296_v40 }
 0x177   : > { %1708 = vmatpush.msra.mxu2 %v5057_v47 }
 0x179   : > { %1709 = vmatpush.msra.mxu2 %v5081_v52 }
 0x17b   : > { %1710 = vmatpush.msra.mxu2 %v5096_v56  ;;  %v7615_v56 = vld [vmem:[#allocation11_spill] sm:$0xff] }
 0x17d   : > { %1711 = vmatpush.msra.mxu2 %v5108_v59  ;;  %v7616_v59 = vld [vmem:[#allocation12_spill] sm:$0xff] }
 0x17f   : > { %1712 = vmatpush.msra.mxu2 %v5122_v1  ;;  %v1475_v1 = vld [vmem:[#allocation2 + $0x44] sm:$0xff] }
 0x181   : > { %1713 = vmatpush.msra.mxu2 %v5162_v11  ;;  %v5583_v11 = vld [vmem:[#allocation2 + $0x5c] sm:$0xff] }
 0x183   : > { %1714 = vmatpush.msra.mxu2 %v5179_v14 }
 0x185   : > { %1715 = vmatpush.msra.mxu2 %v5193_v18 }
 0x187   : > { %1716 = vmatpush.msra.mxu2 %v5206_v25 }
 0x189   : > { %1717 = vmatpush.msra.mxu2 %v7615_v56 }
 0x18b   : > { %1718 = vmatpush.msra.mxu2 %v7616_v59  ;;  %v1450_v59 = vld [vmem:[#allocation2 + $0x38] sm:$0xff] }
 0x194   : > { %v4380_v15 = vpop.permute.xlu2 %4379 }
 0x195   : > { %v4381_v20 = vunpack.i.l.bf16 %v4380_v15  ;;  %v4382_v7 = vunpack.i.h.bf16 %v4380_v15 }
 0x197   : > { %v1119_v28 = vsel %vm924_vm2, %v5049_v45, %v4381_v20  ;;  %v297_v45 = vld [vmem:[%s4868_s18 + $0x90] sm:$0xff]  ;;  %v1125_v26 = vsel %vm924_vm2, %v991_v19, %v4382_v7  ;;  %v5664_v19 = vld [vmem:[%s7576_s5 + $0x60] sm:$0xff] }
 0x198   : > { %1292 = vmatmul.f32.gmra.mxu2 %v1119_v28  ;;  %4197 = vmatmul.msk.f32.gmra.mxu0 %vm328_vm1, %v297_v45  ;;  %v611_v28 = vmax.f32 %v519_v31, 0.0 }
 0x19c   : > { %v751_v47 = vpop.permute.xlu2 %750 }
 0x19d   : > { %v897_v52 = vmul.f32 %v751_v47, %v610_v36  ;;  %v521_v47 = vpop.f32.mrf.mxu0 }
 0x19e   : > { %v522_v45 = vadd.f32 %v5613_v8, %v521_v47  ;;  %v657_v47 = vld [vmem:[%s7572_s1 + $0xa0] sm:$0xff] }
 0x19f   : > { %939 = vst.msk [vmem:[#allocation2 + $0x70] sm:$0xff] %vm924_vm2, %v897_v52 }
 0x1a0   : > { %4220 = vmatmul.msk.f32.vlgmr.msrb.gmra.mxu2 %vm924_vm2, %v1006_v24  ;;  %4198 = vmatmul.msk.f32.gmra.mxu0 %vm328_vm1, %v298_v29  ;;  %v5635_v29 = vld [vmem:[%s7576_s5 + $0x78] sm:$0xff] }
 0x1a6   : > { %v1486_v14 = vld [vmem:[#allocation2 + $0x6d] sm:$0xff] }
 0x1a7   : > { %v1468_v18 = vld [vmem:[#allocation2 + $0x6a] sm:$0xff]  ;;  %v4428_v25 = vpack.i.bf16 %v1486_v14, %v5583_v11  ;;  %v7618_v14 = vld [vmem:[#allocation5_spill] sm:$0xff] }
 0x1a8   : > { %v4413_v12 = vpack.i.bf16 %v1468_v18, %v1475_v1  ;;  %4221 = vmatmul.msk.f32.gmra.mxu2 %vm924_vm2, %v1007_v43  ;;  %4199 = vmatmul.msk.f32.gmra.mxu0 %vm328_vm1, %v299_v9  ;;  %v4395_v43 = vpop.permute.xlu2 %4394  ;;  %v7619_v9 = vld [vmem:[#allocation19_spill] sm:$0xff] }
 0x1a9   : > { %4429 = vrot.lane.b32.xlu0 %v4428_v25, %s4795_s14  ;;  %v1011_v25 = vld [vmem:[#allocation2 + $0x4e] sm:$0xff] }
 0x1aa   : > { %4414 = vrot.lane.b32.xlu2 %v4413_v12, %s4795_s14  ;;  %v4375_v49 = vpop.permute.xlu1 %4374  ;;  %v612_v12 = vmax.f32 %v522_v45, 0.0  ;;  %v5688_v31 = vld [vmem:[#allocation2 + $0x6c] sm:$0xff] }
 0x1ab   : > { %v4377_v32 = vunpack.i.h.bf16 %v4375_v49  ;;  %v4376_v44 = vunpack.i.l.bf16 %v4375_v49  ;;  %v4397_v49 = vunpack.i.h.bf16 %v4395_v43 }
 0x1ad   : > { %v1124_v23 = vsel %vm924_vm2, %v990_v38, %v4376_v44  ;;  %v1129_v37 = vsel %vm924_vm2, %v7617_v39, %v4377_v32  ;;  %v4396_v32 = vunpack.i.l.bf16 %v4395_v43  ;;  %v5641_v44 = vld [vmem:[%s7576_s5 + $0x70] sm:$0xff]  ;;  %v1451_v38 = vld [vmem:[#allocation2 + $0x40] sm:$0xff]  ;;  %v1598_v7 = vsel %vm924_vm2, %v7619_v9, %v4397_v49  ;;  %v1408_v49 = vld [vmem:[%s7573_s2 + $0x8] sm:$0xff] }
 0x1ae   : > { %1324 = vmatmul.f32.gmra.mxu3 %v1124_v23  ;;  %1356 = vmatmul.f32.gmra.mxu1 %v1129_v37  ;;  %v1412_v23 = vld [vmem:[%s7573_s2 + $0x28] sm:$0xff]  ;;  %v5724_v43 = vld [vmem:[%s7576_s5 + $0x30] sm:$0xff] }
 0x1af   : > { %v5647_v39 = vld [vmem:[#allocation2 + $0x64] sm:$0xff] }
 0x1b0   : > { %4222 = vmatmul.msk.f32.gmra.mxu2 %vm924_vm2, %v1008_v42  ;;  %v5652_v42 = vld [vmem:[%s7576_s5 + $0x68] sm:$0xff] }
 0x1b1   : > { %1822 = vperm.xlu0 %4325, %v1814_v22  }
 0x1b2   : > { %4424 = vrot.lane.b32.xlu2 %v4423_v16, %s4795_s14  ;;  %v1099_v17 = vpop.permute.xlu1 %1098  ;;  %v4385_v58 = vpop.permute.xlu0 %4384  ;;  %v1593_v16 = vsel %vm924_vm2, %v1451_v38, %v4396_v32  ;;  %v1819_v38 = vld [vmem:[%s7573_s2 + $0x58] sm:$0xff] }
 0x1b3   : > { %v1130_v46 = vsel %vm924_vm2, %v1475_v1, %v1099_v17  ;;  %v4387_v34 = vunpack.i.h.bf16 %v4385_v58  ;;  %v4386_v30 = vunpack.i.l.bf16 %v4385_v58  ;;  %v1452_v58 = vld [vmem:[#allocation2 + $0x48] sm:$0xff] }
 0x1b5   : > { %v1131_v15 = vsel %vm924_vm2, %v5536_v41, %v4386_v30  ;;  %v1591_v20 = vsel %vm924_vm2, %v1449_v4, %v4387_v34  ;;  %v1410_v41 = vld [vmem:[%s7573_s2 + $0x18] sm:$0xff]  ;;  %v5682_v34 = vld [vmem:[%s7576_s5 + $0x50] sm:$0xff] }
 0x1b6   : > { %1327 = vmatmul.f32.gmra.mxu3 %v1125_v26  ;;  %1359 = vmatmul.f32.gmra.mxu1 %v1130_v46  ;;  %v5670_v46 = vld [vmem:[%s7576_s5 + $0x58] sm:$0xff] }
 0x1b8   : > { %4223 = vmatmul.msk.f32.gmra.mxu2 %vm924_vm2, %v1009_v27  ;;  %v655_v27 = vld [vmem:[%s7572_s1 + $0x90] sm:$0xff] }
 0x1b9   : > { %1837 = vperm.xlu0 %4325, %v1817_v10  }
 0x1ba   : > { %v4390_v35 = vpop.permute.xlu1 %4389 }
 0x1bb   : > { %v4392_v36 = vunpack.i.h.bf16 %v4390_v35  ;;  %v4391_v40 = vunpack.i.l.bf16 %v4390_v35 }
 0x1bd   : > { %v1592_v1 = vsel %vm924_vm2, %v1450_v59, %v4391_v40  ;;  %v1597_v18 = vsel %vm924_vm2, %v7618_v14, %v4392_v36  ;;  %v5703_v36 = vld [vmem:[%s7576_s5 + $0x40] sm:$0xff]  ;;  %v1453_v40 = vld [vmem:[#allocation2 + $0x50] sm:$0xff] }
 0x1be   : > { %1362 = vmatmul.f32.gmra.mxu1 %v1131_v15  ;;  %1649 = vmatmul.f32.vlgmr.msrb.gmra.mxu3 %v1591_v20  ;;  %v5695_v20 = vld [vmem:[%s7576_s5 + $0x48] sm:$0xff]  ;;  %v1816_v59 = vld [vmem:[%s7573_s2 + $0x40] sm:$0xff] }
 0x1c0   : > { %4224 = vmatmul.msk.f32.gmra.mxu2 %vm924_vm2, %v1010_v21 }
 0x1c1   : > { %1415 = vperm.xlu0 %4325, %v1407_v50   ;;  %v4405_v50 = vpop.permute.xlu2 %4404 }
 0x1c2   : > { %v756_v52 = vpop.permute.xlu1 %755  ;;  %v4406_v21 = vunpack.i.l.bf16 %v4405_v50 }
 0x1c3   : > { %v898_v56 = vmul.f32 %v756_v52, %v611_v28  ;;  %v5698_v28 = vpop.f32.mrf.mxu1  ;;  %v1818_v52 = vld [vmem:[%s7573_s2 + $0x50] sm:$0xff] }
 0x1c4   : > { %v4400_v24 = vpop.permute.xlu0 %4399 }
 0x1c5   : > { %940 = vst.msk [vmem:[#allocation2 + $0x78] sm:$0xff] %vm924_vm2, %v898_v56  ;;  %v4402_v10 = vunpack.i.h.bf16 %v4400_v24  ;;  %v4401_v26 = vunpack.i.l.bf16 %v4400_v24  ;;  %v7620_v24 = vld [vmem:[#allocation3_spill] sm:$0xff]  ;;  %v1595_v56 = vsel %vm924_vm2, %v1453_v40, %v4406_v21 }
 0x1c6   : > { %1652 = vmatmul.f32.gmra.mxu3 %v1592_v1  ;;  %1684 = vmatmul.f32.vlgmr.msra.gmra.mxu1 %v1597_v18  ;;  %v300_v1 = vld [vmem:[%s4868_s18 + $0xa8] sm:$0xff] }
 0x1c7   : > { %2235 = vmatpush.msra.mxu1 %v5635_v29  ;;  %v1594_v30 = vsel %vm924_vm2, %v1452_v58, %v4401_v26  ;;  %v1599_v35 = vsel %vm924_vm2, %v5454_v57, %v4402_v10  ;;  %v4407_v57 = vunpack.i.h.bf16 %v4405_v50  ;;  %4200 = vmatmul.msk.f32.gmra.mxu0 %vm328_vm1, %v300_v1  ;;  %v1409_v10 = vld [vmem:[%s7573_s2 + $0x10] sm:$0xff]  ;;  %v7626_v26 = vld [vmem:[#allocation10_spill] sm:$0xff]  ;;  %v656_v50 = vld [vmem:[%s7572_s1 + $0x98] sm:$0xff] }
 0x1c8   : > { %4225 = vmatmul.msk.f32.gmra.mxu2 %vm924_vm2, %v1011_v25 }
 0x1c9   : > { %1430 = vperm.xlu0 %4325, %v1410_v41   ;;  %2236 = vmatpush.msra.mxu1 %v5641_v44  ;;  %v1600_v45 = vsel %vm924_vm2, %v5457_v53, %v4407_v57  ;;  %v7621_v53 = vld [vmem:[#allocation4_spill] sm:$0xff] }
 0x1cb   : > { %2237 = vmatpush.msra.mxu1 %v5652_v42  ;;  %v5728_v25 = vpop.f32.mrf.mxu1 }
 0x1cc   : > { %v761_v33 = vpop.permute.xlu0 %760  ;;  %v1487_v37 = vld [vmem:[#allocation2 + $0x75] sm:$0xff] }
 0x1cd   : > { %v899_v22 = vmul.f32 %v761_v33, %v612_v12  ;;  %v4433_v17 = vpack.i.bf16 %v1487_v37, %v5647_v39  ;;  %2238 = vmatpush.msra.mxu1 %v5664_v19  ;;  %v1454_v12 = vld [vmem:[#allocation2 + $0x58] sm:$0xff]  ;;  %v5741_v37 = vpop.f32.mrf.mxu2 }
 0x1ce   : > { %1655 = vmatmul.f32.gmra.mxu3 %v1593_v16  ;;  %1687 = vmatmul.f32.gmra.mxu1 %v1598_v7  ;;  %v7624_v16 = vld [vmem:[#allocation8_spill] sm:$0xff]  ;;  %v7625_v7 = vld [vmem:[#allocation9_spill] sm:$0xff] }
 0x1cf   : > { %941 = vst.msk [vmem:[#allocation2 + $0x80] sm:$0xff] %vm924_vm2, %v899_v22  ;;  %4434 = vrot.lane.b32.xlu1 %v4433_v17, %s4795_s14  ;;  %2239 = vmatpush.msra.mxu1 %v5670_v46  ;;  %v7622_v22 = vld [vmem:[#allocation6_spill] sm:$0xff] }
 0x1d1   : > { %1440 = vperm.xlu0 %4325, %v1412_v23   ;;  %2240 = vmatpush.msra.mxu1 %v5682_v34  ;;  %v7623_v23 = vld [vmem:[#allocation7_spill] sm:$0xff] }
 0x1d3   : > { %2241 = vmatpush.msra.mxu1 %v5695_v20  ;;  %v5754_v58 = vpop.f32.mrf.mxu1 }
 0x1d4   : > { %v1574_v9 = vpop.permute.xlu0 %1573 }
 0x1d5   : > { %2242 = vmatpush.msra.mxu1 %v5703_v36  ;;  %v1609_v17 = vsel %vm924_vm2, %v5597_v48, %v1574_v9  ;;  %v7629_v9 = vld [vmem:[#allocation15_spill] sm:$0xff] }
 0x1d6   : > { %v1488_v4 = vld [vmem:[#allocation2 + $0x7d] sm:$0xff]  ;;  %1658 = vmatmul.f32.gmra.mxu3 %v1594_v30  ;;  %1690 = vmatmul.f32.gmra.mxu1 %v1599_v35  ;;  %v5756_v30 = vpop.f32.mrf.mxu2  ;;  %v654_v35 = vld [vmem:[%s7572_s1 + $0x88] sm:$0xff] }
 0x1d7   : > { %v4438_v15 = vpack.i.bf16 %v1488_v4, %v5688_v31  ;;  %1827 = vperm.xlu1 %4326, %v1815_v13   ;;  %2243 = vmatpush.msra.mxu1 %v7620_v24  ;;  %v1469_v24 = vld [vmem:[#allocation2 + $0x43] sm:$0xff] }
 0x1d9   : > { %770 = vperm.xlu0 %4325, %v655_v27   ;;  %4439 = vrot.lane.b32.xlu2 %v4438_v15, %s4795_s14 }
 0x1da   : > { %v4410_v41 = vpop.permute.xlu1 %4409  ;;  %2244 = vmatpush.msra.mxu1 %v5724_v43 }
 0x1db   : > { %v4412_v14 = vunpack.i.h.bf16 %v4410_v41  ;;  %v4411_v18 = vunpack.i.l.bf16 %v4410_v41  ;;  %v5763_v4 = vpop.f32.mrf.mxu1 }
 0x1dc   : > { %2245 = vmatpush.msra.mxu1 %v7621_v53  ;;  %v1470_v53 = vld [vmem:[#allocation2 + $0x4b] sm:$0xff] }
 0x1dd   : > { %v1596_v32 = vsel %vm924_vm2, %v1454_v12, %v4411_v18  ;;  %v1601_v33 = vsel %vm924_vm2, %v5487_v60, %v4412_v14  ;;  %v1411_v60 = vld [vmem:[%s7573_s2 + $0x20] sm:$0xff] }
 0x1de   : > { %1661 = vmatmul.f32.gmra.mxu3 %v1595_v56  ;;  %1693 = vmatmul.f32.gmra.mxu1 %v1600_v45  ;;  %v5768_v15 = vpop.f32.mrf.mxu2  ;;  %v2057_v45 = vld [vmem:[#allocation2 + $0x61] sm:$0xff] }
 0x1df   : > { %1842 = vperm.xlu1 %4326, %v1818_v52   ;;  %2246 = vmatpush.msra.mxu1 %v7622_v22  ;;  %v2065_v52 = vld [vmem:[#allocation2 + $0x72] sm:$0xff] }
 0x1e1   : > { %780 = vperm.xlu0 %4325, %v657_v47   ;;  %1832 = vperm.xlu2 %4327, %v1816_v59   ;;  %v4443_v59 = vpack.i.bf16 %v2057_v45, %v2065_v52  ;;  %v5810_v45 = vld [vmem:[%s7577_s6] ss:$0 sm:$0xff] }
 0x1e2   : > { %2247 = vmatpush.msra.mxu1 %v7623_v23  ;;  %v4420_v27 = vpop.permute.xlu1 %4419  ;;  %v7628_v23 = vld [vmem:[#allocation14_spill] sm:$0xff] }
 0x1e3   : > { %v4422_v13 = vunpack.i.h.bf16 %v4420_v27  ;;  %v5770_v21 = vpop.f32.mrf.mxu1  ;;  %v4421_v1 = vunpack.i.l.bf16 %v4420_v27  ;;  %v2066_v27 = vld [vmem:[#allocation2 + $0x7a] sm:$0xff] }
 0x1e4   : > { %2248 = vmatpush.msra.mxu1 %v7624_v16 }
 0x1e5   : > { %v1610_v48 = vsel %vm924_vm2, %v5583_v11, %v4422_v13  ;;  %v7631_v13 = vld [vmem:[#allocation17_spill] sm:$0xff] }
 0x1e6   : > { %1664 = vmatmul.f32.gmra.mxu3 %v1596_v32  ;;  %1696 = vmatmul.f32.gmra.mxu1 %v1601_v33  ;;  %v5775_v41 = vpop.f32.mrf.mxu2  ;;  %v1489_v32 = vld [vmem:[#allocation2 + $0x56] sm:$0xff] }
 0x1e7   : > { %1420 = vperm.xlu1 %4326, %v1408_v49   ;;  %2249 = vmatpush.msra.mxu1 %v7625_v7  ;;  %v1604_v49 = vsel %vm924_vm2, %v1470_v53, %v4421_v1  ;;  %v1471_v7 = vld [vmem:[#allocation2 + $0x53] sm:$0xff] }
 0x1e9   : > { %1847 = vperm.xlu2 %4327, %v1819_v38   ;;  %2250 = vmatpush.msra.mxu1 %v7626_v26  ;;  %v7627_v38 = vld [vmem:[#allocation13_spill] sm:$0xff]  ;;  %v7630_v26 = vld [vmem:[#allocation16_spill] sm:$0xff] }
 0x1eb   : > { %v5778_v12 = vpop.f32.mrf.mxu1 }
 0x1ee   : > { %1754 = vmatmul.f32.vlgmr.msra.gmra.mxu3 %v1609_v17  ;;  %v5789_v16 = vpop.f32.mrf.mxu2 }
 0x1ef   : > { %1435 = vperm.xlu1 %4326, %v1411_v60   ;;  %v1313_v60 = vpop.f32.mrf.mxu3 }
 0x1f1   : > { %1425 = vperm.xlu2 %4327, %v1409_v10   ;;  %v1490_v10 = vld [vmem:[#allocation2 + $0x5e] sm:$0xff] }
 0x1f3   : > { %v5828_v53 = vpop.f32.mrf.mxu0 }
 0x1f6   : > { %1757 = vmatmul.f32.gmra.mxu3 %v1610_v48 }
 0x1f7   : > { %765 = vperm.xlu1 %4326, %v654_v35   ;;  %v7632_v35 = vld [vmem:[#allocation18_spill] sm:$0xff]  ;;  %v5801_v52 = vpop.f32.mrf.mxu3 }
 0x1ff   : > { %775 = vperm.xlu1 %4326, %v656_v50  }
 0x204   : > { %v4415_v57 = vpop.permute.xlu2 %4414 }
 0x205   : > { %v4417_v40 = vunpack.i.h.bf16 %v4415_v57  ;;  %v4416_v47 = vunpack.i.l.bf16 %v4415_v57 }
 0x207   : > { %v1602_v11 = vsel %vm924_vm2, %v5521_v2, %v4417_v40  ;;  %v1603_v56 = vsel %vm924_vm2, %v1469_v24, %v4416_v47  ;;  %4444 = vrot.lane.b32.xlu1 %v4443_v59, %s4795_s14  ;;  %v658_v2 = vld [vmem:[%s7572_s1 + $0xa8] sm:$0xff]  ;;  %v1472_v47 = vld [vmem:[#allocation2 + $0x5b] sm:$0xff] }
 0x208   : > { %1699 = vmatmul.f32.gmra.mxu1 %v1602_v11  ;;  %1719 = vmatmul.f32.vlgmr.msra.gmra.mxu2 %v1603_v56  ;;  %v1491_v56 = vld [vmem:[#allocation2 + $0x66] sm:$0xff] }
 0x20c   : > { %v4425_v14 = vpop.permute.xlu2 %4424 }
 0x20d   : > { %v4427_v18 = vunpack.i.h.bf16 %v4425_v14  ;;  %v4426_v22 = vunpack.i.l.bf16 %v4425_v14  ;;  %v1492_v14 = vld [vmem:[#allocation2 + $0x6e] sm:$0xff] }
 0x20f   : > { %v1611_v33 = vsel %vm924_vm2, %v5647_v39, %v4427_v18  ;;  %785 = vperm.xlu1 %4326, %v658_v2   ;;  %v1605_v17 = vsel %vm924_vm2, %v1471_v7, %v4426_v22  ;;  %v1348_v39 = vpop.f32.mrf.mxu1  ;;  %v5824_v18 = vpop.f32.mrf.mxu3 }
 0x210   : > { %1722 = vmatmul.f32.gmra.mxu2 %v1604_v49  ;;  %4226 = vmatmul.msk.f32.vlgmr.msrb.gmra.mxu1 %vm924_vm2, %v1489_v32 }
 0x211   : > { %1760 = vmatmul.f32.gmra.mxu3 %v1611_v33  ;;  %2340 = vmatpush.msrb.mxu1 %v7627_v38 }
 0x213   : > { %2341 = vmatpush.msrb.mxu1 %v7628_v23 }
 0x215   : > { %2342 = vmatpush.msrb.mxu1 %v7629_v9  ;;  %v527_v22 = vpop.f32.mrf.mxu0 }
 0x217   : > { %2343 = vmatpush.msrb.mxu1 %v7630_v26  ;;  %2129 = vrot.lane.b32.xlu1 %v2066_v27, %s4795_s14 }
 0x218   : > { %1725 = vmatmul.f32.gmra.mxu2 %v1605_v17  ;;  %4227 = vmatmul.msk.f32.gmra.mxu1 %vm924_vm2, %v1490_v10  ;;  %v1259_v10 = vadd.f32 %v5810_v45, %v5778_v12 }
 0x219   : > { %2344 = vmatpush.msrb.mxu1 %v7631_v13  ;;  %v528_v13 = vadd.f32 %v5613_v8, %v527_v22 }
 0x21b   : > { %2345 = vmatpush.msrb.mxu1 %v7632_v35  ;;  %v4430_v48 = vpop.permute.xlu0 %4429  ;;  %v5798_v50 = vpop.f32.mrf.mxu2 }
 0x21c   : > { %v4432_v57 = vunpack.i.h.bf16 %v4430_v48  ;;  %v4431_v40 = vunpack.i.l.bf16 %v4430_v48 }
 0x21d   : > { %2346 = vmatpush.msrb.mxu1 %v5347_v62  ;;  %v5814_v62 = vpop.f32.mrf.mxu1 }
 0x21e   : > { %v1606_v24 = vsel %vm924_vm2, %v1472_v47, %v4431_v40  ;;  %v1612_v11 = vsel %vm924_vm2, %v5688_v31, %v4432_v57  ;;  %v1294_v40 = vadd.f32 %v5798_v50, %v1259_v10  ;;  %v1473_v47 = vld [vmem:[#allocation2 + $0x63] sm:$0xff]  ;;  %v1247_v50 = vadd.f32 %v5810_v45, %v5728_v25 }
 0x21f   : > { %2347 = vmatpush.msrb.mxu1 %v5355_v3  ;;  %1763 = vmatmul.f32.gmra.mxu3 %v1612_v11  ;;  %v1244_v3 = vadd.f32 %v5810_v45, %v5698_v28 }
 0x220   : > { %1728 = vmatmul.f32.gmra.mxu2 %v1606_v24  ;;  %4228 = vmatmul.msk.f32.gmra.mxu1 %vm924_vm2, %v1491_v56  ;;  %v5866_v24 = vld [vmem:[#allocation2 + $0x74] sm:$0xff] }
 0x221   : > { %2348 = vmatpush.msrb.mxu1 %v5362_v55  ;;  %v1279_v31 = vadd.f32 %v5741_v37, %v1244_v3  ;;  %v1493_v37 = vld [vmem:[#allocation2 + $0x76] sm:$0xff]  ;;  %v614_v3 = vmax.f32 %v528_v13, 0.0  ;;  %v1282_v13 = vadd.f32 %v5756_v30, %v1247_v50  ;;  %v1250_v30 = vadd.f32 %v5810_v45, %v5754_v58 }
 0x223   : > { %v5816_v59 = vpop.permute.xlu0 %1822  ;;  %v1383_v1 = vpop.f32.mrf.mxu2  ;;  %2349 = vmatpush.msrb.mxu1 %v5369_v54  ;;  %v1314_v55 = vadd.f32 %v1313_v60, %v1279_v31 }
 0x224   : > { %v5858_v60 = vpop.f32.mrf.mxu0 }
 0x225   : > { %2350 = vmatpush.msrb.mxu1 %v5381_v51  ;;  %v1349_v51 = vadd.f32 %v1348_v39, %v1314_v55  ;;  %v5835_v28 = vpop.f32.mrf.mxu1 }
 0x227   : > { %2351 = vmatpush.msrb.mxu1 %v5387_v6  ;;  %v1384_v6 = vadd.f32 %v1383_v1, %v1349_v51 }
 0x228   : > { %4229 = vmatmul.msk.f32.gmra.mxu1 %vm924_vm2, %v1492_v14 }
 0x229   : > { %2352 = vmatpush.msrb.mxu1 %v5398_v63  ;;  %v5840_v63 = vpop.f32.mrf.mxu3  ;;  %v1401_v32 = vmax.f32 %v1384_v6, 0.0 }
 0x22b   : > { %v5830_v54 = vpop.permute.xlu0 %1837  ;;  %v5832_v49 = vpop.f32.mrf.mxu2  ;;  %2353 = vmatpush.msrb.mxu1 %v5404_v61 }
 0x22c   : > { %v533_v31 = vpop.f32.mrf.mxu0 }
 0x22d   : > { %2354 = vmatpush.msrb.mxu1 %v5425_v5  ;;  %v5842_v33 = vpop.f32.mrf.mxu1  ;;  %v1494_v5 = vld [vmem:[#allocation2 + $0x7e] sm:$0xff]  ;;  %v534_v22 = vadd.f32 %v5613_v8, %v533_v31 }
 0x22f   : > { %2355 = vmatpush.msrb.mxu1 %v5433_v0 }
 0x230   : > { %4230 = vmatmul.msk.f32.gmra.mxu1 %vm924_vm2, %v1493_v37 }
 0x231   : > { %v5850_v23 = vpop.f32.mrf.mxu3 }
 0x233   : > { %v1416_v2 = vpop.permute.xlu0 %1415  ;;  %v5846_v61 = vpop.f32.mrf.mxu2 }
 0x234   : > { %v5844_v38 = vmul.f32 %v1416_v2, %v1401_v32  ;;  %v4440_v17 = vpop.permute.xlu2 %4439 }
 0x235   : > { %v5856_v7 = vpop.f32.mrf.mxu1  ;;  %v4442_v14 = vunpack.i.h.bf16 %v4440_v17  ;;  %v4441_v55 = vunpack.i.l.bf16 %v4440_v17 }
 0x236   : > { %1954 = vxpose.xlu0.b32.start [1/6] (short) (narrow) %v5844_v38, 64 }
 0x238   : > { %4231 = vmatmul.msk.f32.gmra.mxu1 %vm924_vm2, %v1494_v5 }
 0x239   : > { %v1328_v27 = vpop.f32.mrf.mxu3 }
 0x23a   : > { %v1329_v12 = vadd.f32 %v1328_v27, %v1294_v40  ;;  %v5878_v27 = vld [vmem:[#allocation2 + $0x7c] sm:$0xff]  ;;  %v616_v40 = vmax.f32 %v534_v22, 0.0 }
 0x23b   : > { %v5852_v0 = vpop.permute.xlu0 %1430  ;;  %v5854_v9 = vpop.f32.mrf.mxu2  ;;  %v1614_v25 = vsel %vm924_vm2, %v5878_v27, %v4442_v14 }
 0x23c   : > { %v5876_v5 = vpop.permute.xlu2 %1832 }
 0x23d   : > { %v1363_v1 = vpop.f32.mrf.mxu1 }
 0x23e   : > { %v1364_v51 = vadd.f32 %v1363_v1, %v1329_v12  ;;  %v1253_v1 = vadd.f32 %v5810_v45, %v5763_v4 }
 0x240   : > { %v1288_v58 = vadd.f32 %v5775_v41, %v1253_v1 }
 0x241   : > { %v4435_v39 = vpop.permute.xlu1 %4434  ;;  %v5881_v17 = vpop.f32.mrf.mxu3 }
 0x242   : > { %v4437_v35 = vunpack.i.h.bf16 %v4435_v39  ;;  %v4436_v48 = vunpack.i.l.bf16 %v4435_v39  ;;  %v1474_v39 = vld [vmem:[#allocation2 + $0x6b] sm:$0xff] }
 0x243   : > { %v1441_v26 = vpop.permute.xlu0 %1440  ;;  %v5863_v57 = vpop.f32.mrf.mxu2 }
 0x244   : > { %v1607_v11 = vsel %vm924_vm2, %v1473_v47, %v4436_v48  ;;  %v1613_v56 = vsel %vm924_vm2, %v5866_v24, %v4437_v35  ;;  %v1608_v35 = vsel %vm924_vm2, %v1474_v39, %v4441_v55 }
 0x245   : > { %1731 = vmatmul.f32.gmra.mxu2 %v1607_v11  ;;  %1766 = vmatmul.f32.gmra.mxu3 %v1613_v56  ;;  %v1317_v11 = vadd.f32 %v5801_v52, %v1282_v13  ;;  %v1285_v52 = vadd.f32 %v5768_v15, %v1250_v30 }
 0x247   : > { %v1352_v31 = vadd.f32 %v5814_v62, %v1317_v11  ;;  %v1320_v62 = vadd.f32 %v5824_v18, %v1285_v52  ;;  %v531_v11 = vadd.f32 %v5613_v8, %v5858_v60  ;;  %v5944_v60 = vld [vmem:[%s7576_s5 + $0x170] sm:$0xff] }
 0x249   : > { %v5871_v37 = vpop.permute.xlu1 %1827  ;;  %v1355_v41 = vadd.f32 %v5835_v28, %v1320_v62  ;;  %v536_v62 = vpop.f32.mrf.mxu0 }
 0x24b   : > { %v771_v6 = vpop.permute.xlu0 %770  ;;  %v1398_v2 = vpop.f32.mrf.mxu2  ;;  %v1390_v22 = vadd.f32 %v5846_v61, %v1355_v41  ;;  %v5987_v41 = vld [vmem:[%s7576_s5 + $0x148] sm:$0xff] }
 0x24c   : > { %v901_v32 = vmul.f32 %v771_v6, %v614_v3  ;;  %v1399_v10 = vadd.f32 %v1398_v2, %v1364_v51  ;;  %v1256_v3 = vadd.f32 %v5810_v45, %v5770_v21  ;;  %v1387_v51 = vadd.f32 %v5832_v49, %v1352_v31  ;;  %v5907_v6 = vpop.permute.xlu2 %1847  ;;  %v5910_v21 = vpop.f32.mrf.mxu3 }
 0x24d   : > { %1734 = vmatmul.f32.gmra.mxu2 %v1608_v35  ;;  %1769 = vmatmul.f32.gmra.mxu3 %v1614_v25  ;;  %v1403_v13 = vmax.f32 %v1390_v22, 0.0  ;;  %v2051_v22 = vld [vmem:[#allocation2 + $0x60] sm:$0xff] }
 0x24e   : > { %943 = vst.msk [vmem:[#allocation2 + $0x90] sm:$0xff] %vm924_vm2, %v901_v32  ;;  %v1406_v48 = vmax.f32 %v1399_v10, 0.0  ;;  %v1291_v55 = vadd.f32 %v5789_v16, %v1256_v3  ;;  %v1402_v50 = vmax.f32 %v1387_v51, 0.0  ;;  %v1323_v32 = vadd.f32 %v5840_v63, %v1288_v58  ;;  %v5960_v58 = vld [vmem:[%s7576_s5 + $0x160] sm:$0xff] }
 0x250   : > { %v5887_v47 = vmul.f32 %v1441_v26, %v1406_v48  ;;  %v5900_v26 = vpop.f32.mrf.mxu1  ;;  %v1326_v4 = vadd.f32 %v5850_v23, %v1291_v55  ;;  %v1358_v16 = vadd.f32 %v5842_v33, %v1323_v32  ;;  %v525_v33 = vadd.f32 %v5613_v8, %v5828_v53  ;;  %v5938_v53 = vld [vmem:[%s7576_s5 + $0x178] sm:$0xff] }
 0x251   : > { %v5893_v12 = vpop.permute.xlu1 %1842 }
 0x252   : > { %2020 = vmatpush.msrb.mxu3 %v5887_v47  ;;  %v1361_v49 = vadd.f32 %v5856_v7, %v1326_v4  ;;  %v1393_v10 = vadd.f32 %v5854_v9, %v1358_v16  ;;  %v613_v9 = vmax.f32 %v525_v33, 0.0  ;;  %v5970_v4 = vld [vmem:[%s7576_s5 + $0x158] sm:$0xff] }
 0x253   : > { %v781_v56 = vpop.permute.xlu0 %780 }
 0x254   : > { %v903_v14 = vmul.f32 %v781_v56, %v616_v40  ;;  %v1396_v23 = vadd.f32 %v5863_v57, %v1361_v49  ;;  %v1426_v18 = vpop.permute.xlu2 %1425  ;;  %v1404_v63 = vmax.f32 %v1393_v10, 0.0  ;;  %v5922_v25 = vpop.f32.mrf.mxu3  ;;  %v2059_v10 = vld [vmem:[#allocation2 + $0x71] sm:$0xff] }
 0x255   : > { %v1445_v7 = vmul.f32 %v1426_v18, %v1403_v13 }
 0x256   : > { %945 = vst.msk [vmem:[#allocation2 + $0xa0] sm:$0xff] %vm924_vm2, %v903_v14  ;;  %v1405_v35 = vmax.f32 %v1396_v23, 0.0  ;;  %v1446_v61 = vmul.f32 %v5852_v0, %v1404_v63  ;;  %v615_v0 = vmax.f32 %v531_v11, 0.0  ;;  %v2058_v14 = vld [vmem:[#allocation2 + $0x69] sm:$0xff]  ;;  %v5997_v23 = vld [vmem:[%s7576_s5 + $0x140] sm:$0xff] }
 0x257   : > { %v6051_v11 = vld [vmem:[%s7576_s5 + $0x110] sm:$0xff] }
 0x258   : > { %v5920_v39 = vpop.f32.mrf.mxu1 }
 0x259   : > { %v1421_v15 = vpop.permute.xlu1 %1420 }
 0x25a   : > { %v1444_v2 = vmul.f32 %v1421_v15, %v1402_v50  ;;  %v5977_v50 = vld [vmem:[%s7576_s5 + $0x150] sm:$0xff] }
 0x25c   : > { %1955 = vxpose.xlu0.b32.cont [2/6] (short) (narrow) %v1444_v2, 64  ;;  %v5931_v30 = vpop.f32.mrf.mxu3 }
 0x260   : > { %v5927_v57 = vpop.f32.mrf.mxu1 }
 0x261   : > { %v1436_v28 = vpop.permute.xlu1 %1435 }
 0x262   : > { %v1447_v48 = vmul.f32 %v1436_v28, %v1405_v35 }
 0x264   : > { %2021 = vmatpush.msrb.mxu3 %v1447_v48  ;;  %1956 = vxpose.xlu0.b32.cont [3/6] (short) (narrow) %v1445_v7, 64  ;;  %v5963_v55 = vpop.f32.mrf.mxu3 }
 0x266   : > { %2022 = vmatpush.msrb.mxu3 %v1446_v61 }
 0x268   : > { %2023 = vmatpush.msrb.mxu3 %v1445_v7  ;;  %v5947_v1 = vpop.f32.mrf.mxu1  ;;  %v6023_v7 = vld [vmem:[%s7576_s5 + $0x128] sm:$0xff] }
 0x269   : > { %v766_v40 = vpop.permute.xlu1 %765 }
 0x26a   : > { %v900_v56 = vmul.f32 %v766_v40, %v613_v9  ;;  %2024 = vmatpush.msrb.mxu3 %v1444_v2  ;;  %v537_v2 = vadd.f32 %v5613_v8, %v536_v62  ;;  %v6006_v8 = vld [vmem:[%s7576_s5 + $0x138] sm:$0xff] }
 0x26b   : > { %v2060_v9 = vld [vmem:[#allocation2 + $0x79] sm:$0xff] }
 0x26c   : > { %942 = vst.msk [vmem:[#allocation2 + $0x88] sm:$0xff] %vm924_vm2, %v900_v56  ;;  %1957 = vxpose.xlu0.b32.cont [4/6] (short) (narrow) %v1446_v61, 64  ;;  %2025 = vmatpush.msrb.mxu3 %v5844_v38  ;;  %v5952_v38 = vld [vmem:[%s7576_s5 + $0x168] sm:$0xff]  ;;  %v6009_v63 = vpop.f32.mrf.mxu3  ;;  %v617_v35 = vmax.f32 %v537_v2, 0.0  ;;  %v1651_v61 = vadd.f32 %v5810_v45, %v5881_v17 }
 0x26e   : > { %2305 = vmatpush.msra.mxu3 %v5938_v53  ;;  %v1686_v17 = vadd.f32 %v5900_v26, %v1651_v61  ;;  %v1654_v26 = vadd.f32 %v5810_v45, %v5910_v21  ;;  %v6103_v61 = vld [vmem:[%s7576_s5 + $0x18] sm:$0xff] }
 0x270   : > { %2306 = vmatpush.msra.mxu3 %v5944_v60  ;;  %v5990_v16 = vpop.f32.mrf.mxu1  ;;  %v1689_v21 = vadd.f32 %v5920_v39, %v1654_v26  ;;  %v1657_v39 = vadd.f32 %v5810_v45, %v5922_v25 }
 0x271   : > { %v776_v3 = vpop.permute.xlu1 %775 }
 0x272   : > { %2307 = vmatpush.msra.mxu3 %v5952_v38  ;;  %v902_v31 = vmul.f32 %v776_v3, %v615_v0  ;;  %v1692_v25 = vadd.f32 %v5927_v57, %v1657_v39  ;;  %v1660_v57 = vadd.f32 %v5810_v45, %v5931_v30 }
 0x273   : > { %v5955_v52 = vld [vmem:[#allocation2 + $0x82] sm:$0xff]  ;;  %v5982_v15 = vld [vmem:[#allocation2 + $0x8a] sm:$0xff] }
 0x274   : > { %2308 = vmatpush.msra.mxu3 %v5960_v58  ;;  %944 = vst.msk [vmem:[#allocation2 + $0x98] sm:$0xff] %vm924_vm2, %v902_v31  ;;  %1958 = vxpose.xlu0.b32.cont [5/6] (short) (narrow) %v1447_v48, 64  ;;  %v4448_v51 = vpack.i.bf16 %v5955_v52, %v2058_v14  ;;  %v4453_v13 = vpack.i.bf16 %v5982_v15, %v2059_v10  ;;  %v6058_v31 = vld [vmem:[%s7576_s5 + $0x108] sm:$0xff] }
 0x276   : > { %2309 = vmatpush.msra.mxu3 %v5970_v4  ;;  %4449 = vrot.lane.b32.xlu1 %v4448_v51, %s4795_s14  ;;  %v2061_v51 = vld [vmem:[#allocation2 + $0x81] sm:$0xff] }
 0x278   : > { %2310 = vmatpush.msra.mxu3 %v5977_v50 }
 0x279   : > { %v5980_v32 = vpop.permute.xlu1 %4444 }
 0x27a   : > { %2311 = vmatpush.msra.mxu3 %v5987_v41  ;;  %v4447_v49 = vunpack.i.h.bf16 %v5980_v32 }
 0x27b   : > { %v2069_v33 = vld [vmem:[#allocation2 + $0x92] sm:$0xff]  ;;  %v2070_v3 = vld [vmem:[#allocation2 + $0x9a] sm:$0xff] }
 0x27c   : > { %2312 = vmatpush.msra.mxu3 %v5997_v23  ;;  %1959 = vxpose.xlu0.b32.end [6/6] (short) (narrow) %v5887_v47, 64  ;;  %v2193_v18 = vsel %vm924_vm2, %v2051_v22, %v4447_v49  ;;  %v6016_v47 = vld [vmem:[%s7576_s5 + $0x130] sm:$0xff]  ;;  %v4458_v40 = vpack.i.bf16 %v2069_v33, %v2060_v9  ;;  %v4463_v62 = vpack.i.bf16 %v2070_v3, %v2061_v51  ;;  %v6119_v3 = vld [vmem:[%s7576_s5 + $0x8] sm:$0xff] }
 0x27d   : > { %2251 = vmatmul.f32.vlgmr.msra.gmra.mxu1 %v2193_v18 }
 0x27e   : > { %2313 = vmatpush.msra.mxu3 %v6006_v8  ;;  %4454 = vrot.lane.b32.xlu1 %v4453_v13, %s4795_s14 }
 0x27f   : > { %2747 = vmatpush.msra.mxu1 %v5635_v29 }
 0x280   : > { %2314 = vmatpush.msra.mxu3 %v6016_v47 }
 0x281   : > { %2748 = vmatpush.msra.mxu1 %v5641_v44  ;;  %v786_v28 = vpop.permute.xlu1 %785  ;;  %v6034_v44 = vld [vmem:[%s7576_s5 + $0x120] sm:$0xff] }
 0x282   : > { %2315 = vmatpush.msra.mxu3 %v6023_v7  ;;  %v904_v48 = vmul.f32 %v786_v28, %v617_v35  ;;  %v6086_v28 = vld [vmem:[%s7576_s5 + $0x28] sm:$0xff] }
 0x283   : > { %2749 = vmatpush.msra.mxu1 %v5652_v42  ;;  %v6042_v42 = vld [vmem:[%s7576_s5 + $0x118] sm:$0xff] }
 0x284   : > { %2316 = vmatpush.msra.mxu3 %v6034_v44  ;;  %946 = vst.msk [vmem:[#allocation2 + $0xa8] sm:$0xff] %vm924_vm2, %v904_v48 }
 0x285   : > { %v6026_v29 = vpop.f32.mrf.mxu1  ;;  %2750 = vmatpush.msra.mxu1 %v5664_v19  ;;  %v1755_v19 = vpop.f32.mrf.mxu3 }
 0x286   : > { %2317 = vmatpush.msra.mxu3 %v6042_v42  ;;  %4459 = vrot.lane.b32.xlu1 %v4458_v40, %s4795_s14  ;;  %v6110_v40 = vld [vmem:[%s7576_s5 + $0x10] sm:$0xff] }
 0x287   : > { %2751 = vmatpush.msra.mxu1 %v5670_v46 }
 0x288   : > { %2318 = vmatpush.msra.mxu3 %v6051_v11 }
 0x289   : > { %2752 = vmatpush.msra.mxu1 %v5682_v34  ;;  %v6067_v34 = vld [vmem:[%s7576_s5 + $0x100] sm:$0xff] }
 0x28a   : > { %2319 = vmatpush.msra.mxu3 %v6058_v31 }
 0x28b   : > { %v1720_v56 = vpop.f32.mrf.mxu2  ;;  %2753 = vmatpush.msra.mxu1 %v5695_v20  ;;  %v6075_v20 = vld [vmem:[%s7576_s5 + $0x38] sm:$0xff] }
 0x28c   : > { %v1721_v0 = vadd.f32 %v1720_v56, %v1686_v17  ;;  %2320 = vmatpush.msra.mxu3 %v6067_v34  ;;  %v2085_v56 = vld [vmem:[#allocation2 + $0x85] sm:$0xff] }
 0x28d   : > { %v1790_v46 = vpop.f32.mrf.mxu1  ;;  %2754 = vmatpush.msra.mxu1 %v5703_v36  ;;  %v2062_v36 = vld [vmem:[#allocation2 + $0x89] sm:$0xff]  ;;  %v1758_v13 = vpop.f32.mrf.mxu3 }
 0x28e   : > { %v1756_v14 = vadd.f32 %v1755_v19, %v1721_v0  ;;  %4464 = vrot.lane.b32.xlu1 %v4463_v62, %s4795_s14  ;;  %v1695_v62 = vadd.f32 %v5947_v1, %v1660_v57  ;;  %v304_v57 = vld [vmem:[%s4868_s18 + $0xc8] sm:$0xff] }
 0x28f   : > { %2755 = vmatpush.msra.mxu1 %v6075_v20 }
 0x290   : > { %v1791_v49 = vadd.f32 %v1790_v46, %v1756_v14  ;;  %v6129_v14 = vld [vmem:[%s7576_s5] sm:$0xff] }
 0x291   : > { %2756 = vmatpush.msra.mxu1 %v5724_v43  ;;  %v4468_v43 = vpack.i.bf16 %v5866_v24, %v2062_v36 }
 0x292   : > { %v1808_v2 = vmax.f32 %v1791_v49, 0.0 }
 0x293   : > { %v1723_v22 = vpop.f32.mrf.mxu2  ;;  %2757 = vmatpush.msra.mxu1 %v6086_v28 }
 0x294   : > { %v1724_v10 = vadd.f32 %v1723_v22, %v1689_v21  ;;  %v6081_v18 = vmul.f32 %v5816_v59, %v1808_v2  ;;  %v6096_v59 = vld [vmem:[%s7576_s5 + $0x20] sm:$0xff] }
 0x295   : > { %v1793_v35 = vpop.f32.mrf.mxu1  ;;  %2758 = vmatpush.msra.mxu1 %v6096_v59  ;;  %v1761_v0 = vpop.f32.mrf.mxu3  ;;  %v6135_v22 = vld [vmem:[#allocation2 + $0x84] sm:$0xff] }
 0x296   : > { %v1759_v33 = vadd.f32 %v1758_v13, %v1724_v10  ;;  %1856 = vxpose.xlu2.b32.start [1/6] (short) (narrow) %v6081_v18, 64  ;;  %4469 = vrot.lane.b32.xlu1 %v4468_v43, %s4795_s14  ;;  %v6140_v43 = vld [vmem:[#allocation2 + $0x8c] sm:$0xff] }
 0x297   : > { %2759 = vmatpush.msra.mxu1 %v6103_v61 }
 0x298   : > { %v1794_v48 = vadd.f32 %v1793_v35, %v1759_v33 }
 0x299   : > { %2760 = vmatpush.msra.mxu1 %v6110_v40 }
 0x29a   : > { %v1809_v24 = vmax.f32 %v1794_v48, 0.0 }
 0x29b   : > { %v1726_v9 = vpop.f32.mrf.mxu2  ;;  %2761 = vmatpush.msra.mxu1 %v6119_v3 }
 0x29c   : > { %v6114_v17 = vmul.f32 %v5871_v37, %v1809_v24  ;;  %v1727_v19 = vadd.f32 %v1726_v9, %v1692_v25  ;;  %v4473_v37 = vpack.i.bf16 %v2085_v56, %v5878_v27  ;;  %v2086_v27 = vld [vmem:[#allocation2 + $0x8d] sm:$0xff]  ;;  %v2089_v24 = vld [vmem:[#allocation2 + $0xa5] sm:$0xff]  ;;  %v6146_v9 = vld [vmem:[#allocation2 + $0x9c] sm:$0xff] }
 0x29d   : > { %v1796_v26 = vpop.f32.mrf.mxu1  ;;  %2762 = vmatpush.msra.mxu1 %v6129_v14  ;;  %v4478_v35 = vpack.i.bf16 %v2086_v27, %v6135_v22  ;;  %v301_v25 = vld [vmem:[%s4868_s18 + $0xb0] sm:$0xff]  ;;  %v303_v56 = vld [vmem:[%s4868_s18 + $0xc0] sm:$0xff] }
 0x29e   : > { %v1762_v46 = vadd.f32 %v1761_v0, %v1727_v19  ;;  %1857 = vxpose.xlu2.b32.cont [2/6] (short) (narrow) %v6114_v17, 64  ;;  %4474 = vrot.lane.b32.xlu1 %v4473_v37, %s4795_s14  ;;  %v4493_v19 = vpack.i.bf16 %v2089_v24, %v6146_v9  ;;  %v1663_v0 = vadd.f32 %v5810_v45, %v5963_v55  ;;  %v305_v27 = vld [vmem:[%s4868_s18 + $0xd0] sm:$0xff]  ;;  %v2052_v24 = vld [vmem:[#allocation2 + $0x68] sm:$0xff] }
 0x29f   : > { %4201 = vmatmul.msk.f32.gmra.mxu0 %vm328_vm1, %v301_v25 }
 0x2a0   : > { %v1797_v51 = vadd.f32 %v1796_v26, %v1762_v46  ;;  %v1698_v46 = vadd.f32 %v5990_v16, %v1663_v0  ;;  %v4688_v0 = vld [vmem:[%s7576_s5 + $0xd0] sm:$0xff] }
 0x2a2   : > { %v1810_v49 = vmax.f32 %v1797_v51, 0.0  ;;  %v1764_v10 = vpop.f32.mrf.mxu3 }
 0x2a3   : > { %v1729_v30 = vpop.f32.mrf.mxu2 }
 0x2a4   : > { %v1852_v21 = vmul.f32 %v5876_v5, %v1810_v49  ;;  %v1730_v2 = vadd.f32 %v1729_v30, %v1695_v62  ;;  %v2087_v5 = vld [vmem:[#allocation2 + $0x95] sm:$0xff]  ;;  %v1666_v30 = vadd.f32 %v5810_v45, %v6009_v63  ;;  %v307_v63 = vld [vmem:[%s4868_s18 + $0xe0] sm:$0xff] }
 0x2a5   : > { %v1799_v13 = vpop.f32.mrf.mxu1  ;;  %v4483_v48 = vpack.i.bf16 %v2087_v5, %v6140_v43 }
 0x2a6   : > { %v1765_v36 = vadd.f32 %v1764_v10, %v1730_v2  ;;  %1858 = vxpose.xlu2.b32.cont [3/6] (short) (narrow) %v1852_v21, 64  ;;  %4479 = vrot.lane.b32.xlu1 %v4478_v35, %s4795_s14  ;;  %v1701_v10 = vadd.f32 %v6026_v29, %v1666_v30  ;;  %v4691_v30 = vld [vmem:[%s7576_s5 + $0xb8] sm:$0xff] }
 0x2a8   : > { %v1800_v39 = vadd.f32 %v1799_v13, %v1765_v36 }
 0x2aa   : > { %v1811_v1 = vmax.f32 %v1800_v39, 0.0 }
 0x2ac   : > { %v1853_v33 = vmul.f32 %v5830_v54, %v1811_v1  ;;  %v302_v54 = vld [vmem:[%s4868_s18 + $0xb8] sm:$0xff] }
 0x2ad   : > { %4202 = vmatmul.msk.f32.gmra.mxu0 %vm328_vm1, %v302_v54  ;;  %v1802_v62 = vpop.f32.mrf.mxu1  ;;  %v4687_v54 = vld [vmem:[%s7576_s5 + $0xd8] sm:$0xff] }
 0x2ae   : > { %1859 = vxpose.xlu2.b32.cont [4/6] (short) (narrow) %v1853_v33, 64  ;;  %4484 = vrot.lane.b32.xlu1 %v4483_v48, %s4795_s14  ;;  %v306_v48 = vld [vmem:[%s4868_s18 + $0xd8] sm:$0xff] }
 0x2b5   : > { %4203 = vmatmul.msk.f32.gmra.mxu0 %vm328_vm1, %v303_v56  ;;  %v1805_v1 = vpop.f32.mrf.mxu1 }
 0x2b6   : > { %4494 = vrot.lane.b32.xlu1 %v4493_v19, %s4795_s14  ;;  %v4686_v19 = vld [vmem:[%s7576_s5 + $0xe0] sm:$0xff] }
 0x2bd   : > { %4204 = vmatmul.msk.f32.gmra.mxu0 %vm328_vm1, %v304_v57 }
 0x2c5   : > { %4205 = vmatmul.msk.f32.gmra.mxu0 %vm328_vm1, %v305_v27 }
 0x2c8   : > { %v1732_v26 = vpop.f32.mrf.mxu2  ;;  %v1767_v37 = vpop.f32.mrf.mxu3 }
 0x2c9   : > { %v1733_v51 = vadd.f32 %v1732_v26, %v1698_v46  ;;  %v2053_v46 = vld [vmem:[#allocation2 + $0x70] sm:$0xff]  ;;  %v4689_v26 = vld [vmem:[%s7576_s5 + $0xc8] sm:$0xff] }
 0x2cb   : > { %v1768_v49 = vadd.f32 %v1767_v37, %v1733_v51  ;;  %v4690_v51 = vld [vmem:[%s7576_s5 + $0xc0] sm:$0xff] }
 0x2cd   : > { %v1803_v2 = vadd.f32 %v1802_v62, %v1768_v49  ;;  %4206 = vmatmul.msk.f32.gmra.mxu0 %vm328_vm1, %v306_v48  ;;  %v6206_v62 = vld [vmem:[#allocation2 + $0x94] sm:$0xff]  ;;  %v2088_v49 = vld [vmem:[#allocation2 + $0x9d] sm:$0xff] }
 0x2cf   : > { %v1812_v36 = vmax.f32 %v1803_v2, 0.0 }
 0x2d0   : > { %v1735_v55 = vpop.f32.mrf.mxu2  ;;  %v1770_v35 = vpop.f32.mrf.mxu3 }
 0x2d1   : > { %v1854_v16 = vmul.f32 %v5893_v12, %v1812_v36  ;;  %v1736_v13 = vadd.f32 %v1735_v55, %v1701_v10  ;;  %v6169_v12 = vpop.permute.xlu1 %2129  ;;  %v4488_v10 = vpack.i.bf16 %v2088_v49, %v6206_v62  ;;  %v4692_v36 = vld [vmem:[%s7576_s5 + $0xb0] sm:$0xff]  ;;  %v4699_v49 = vld [vmem:[%s7576_s5 + $0x238] sm:$0xff] }
 0x2d3   : > { %v1771_v39 = vadd.f32 %v1770_v35, %v1736_v13  ;;  %1860 = vxpose.xlu2.b32.cont [5/6] (short) (narrow) %v1854_v16, 64  ;;  %v4693_v13 = vld [vmem:[%s7576_s5 + $0xa8] sm:$0xff] }
 0x2d5   : > { %v1806_v5 = vadd.f32 %v1805_v1, %v1771_v39  ;;  %4207 = vmatmul.msk.f32.gmra.mxu0 %vm328_vm1, %v307_v63  ;;  %v4694_v39 = vld [vmem:[%s7576_s5 + $0xa0] sm:$0xff]  ;;  %v4695_v1 = vld [vmem:[%s7576_s5 + $0x98] sm:$0xff] }
 0x2d7   : > { %v1813_v25 = vmax.f32 %v1806_v5, 0.0  ;;  %v664_v5 = vld [vmem:[%s7572_s1 + $0xd8] sm:$0xff] }
 0x2d9   : > { %v1855_v45 = vmul.f32 %v5907_v6, %v1813_v25  ;;  %v4683_v6 = vld [vmem:[%s7576_s5 + $0xf8] sm:$0xff] }
 0x2db   : > { %1923 = vmatpush.msrb.mxu2 %v1855_v45  ;;  %1861 = vxpose.xlu2.b32.end [6/6] (short) (narrow) %v1855_v45, 64  ;;  %v4696_v45 = vld [vmem:[%s7576_s5 + $0x90] sm:$0xff] }
 0x2dd   : > { %1924 = vmatpush.msrb.mxu2 %v1854_v16  ;;  %v2054_v16 = vld [vmem:[#allocation2 + $0x78] sm:$0xff] }
 0x2df   : > { %1925 = vmatpush.msrb.mxu2 %v1853_v33  ;;  %v4684_v33 = vld [vmem:[%s7576_s5 + $0xf0] sm:$0xff] }
 0x2e1   : > { %1926 = vmatpush.msrb.mxu2 %v1852_v21 }
 0x2e3   : > { %1927 = vmatpush.msrb.mxu2 %v6114_v17  ;;  %v4685_v17 = vld [vmem:[%s7576_s5 + $0xe8] sm:$0xff] }
 0x2e5   : > { %1928 = vmatpush.msrb.mxu2 %v6081_v18 }
 0x2e7   : > { %2270 = vmatpush.msra.mxu2 %v4683_v6  ;;  %v2055_v6 = vld [vmem:[#allocation2 + $0x80] sm:$0xff] }
 0x2e8   : > { %v6177_v29 = vpop.permute.xlu1 %4449 }
 0x2e9   : > { %2271 = vmatpush.msra.mxu2 %v4684_v33  ;;  %v4451_v21 = vunpack.i.l.bf16 %v6177_v29  ;;  %v4697_v33 = vld [vmem:[%s7576_s5 + $0x88] sm:$0xff] }
 0x2eb   : > { %2272 = vmatpush.msra.mxu2 %v4685_v17  ;;  %v2194_v18 = vsel %vm924_vm2, %v2052_v24, %v4451_v21  ;;  %v4698_v24 = vld [vmem:[%s7576_s5 + $0x80] sm:$0xff] }
 0x2ec   : > { %2254 = vmatmul.f32.gmra.mxu1 %v2194_v18  ;;  %v665_v17 = vld [vmem:[%s7572_s1 + $0xe0] sm:$0xff] }
 0x2ed   : > { %2273 = vmatpush.msra.mxu2 %v4686_v19 }
 0x2ef   : > { %2274 = vmatpush.msra.mxu2 %v4687_v54 }
 0x2f0   : > { %v6193_v56 = vpop.permute.xlu1 %4454 }
 0x2f1   : > { %2275 = vmatpush.msra.mxu2 %v4688_v0  ;;  %v4456_v57 = vunpack.i.l.bf16 %v6193_v56  ;;  %v2056_v0 = vld [vmem:[#allocation2 + $0x88] sm:$0xff] }
 0x2f3   : > { %2276 = vmatpush.msra.mxu2 %v4689_v26  ;;  %v2195_v37 = vsel %vm924_vm2, %v2053_v46, %v4456_v57 }
 0x2f4   : > { %2257 = vmatmul.f32.gmra.mxu1 %v2195_v37 }
 0x2f5   : > { %2277 = vmatpush.msra.mxu2 %v4690_v51 }
 0x2f7   : > { %2278 = vmatpush.msra.mxu2 %v4691_v30  ;;  %v4700_v30 = vld [vmem:[%s7576_s5 + $0x230] sm:$0xff] }
 0x2f8   : > { %v6211_v2 = vpop.permute.xlu1 %4459  ;;  %v1970_v27 = vpop.trf.xlu0 }
 0x2f9   : > { %2279 = vmatpush.msra.mxu2 %v4692_v36  ;;  %v4461_v55 = vunpack.i.l.bf16 %v6211_v2  ;;  %4240 = vmatmul.msk.f32.vlgmr.msrb.gmra.mxu3 %vm1888_vm3, %v1970_v27 }
 0x2fa   : > { %4489 = vrot.lane.b32.xlu0 %v4488_v10, %s4795_s14 }
 0x2fb   : > { %2280 = vmatpush.msra.mxu2 %v4693_v13  ;;  %v2196_v35 = vsel %vm924_vm2, %v2054_v16, %v4461_v55  ;;  %v4702_v16 = vld [vmem:[%s7576_s5 + $0x220] sm:$0xff]  ;;  %v4703_v13 = vld [vmem:[%s7576_s5 + $0x218] sm:$0xff] }
 0x2fc   : > { %2260 = vmatmul.f32.gmra.mxu1 %v2196_v35  ;;  %v4704_v35 = vld [vmem:[%s7576_s5 + $0x210] sm:$0xff] }
 0x2fd   : > { %2281 = vmatpush.msra.mxu2 %v4694_v39 }
 0x2ff   : > { %2282 = vmatpush.msra.mxu2 %v4695_v1 }
 0x300   : > { %v6233_v48 = vpop.permute.xlu1 %4464  ;;  %v1971_v25 = vpop.trf.xlu0 }
 0x301   : > { %2283 = vmatpush.msra.mxu2 %v4696_v45  ;;  %v4466_v63 = vunpack.i.l.bf16 %v6233_v48  ;;  %4241 = vmatmul.msk.f32.gmra.mxu3 %vm1888_vm3, %v1971_v25  ;;  %v4706_v45 = vld [vmem:[%s7576_s5 + $0x200] sm:$0xff] }
 0x302   : > { %815 = vperm.xlu0 %4325, %v664_v5  }
 0x303   : > { %2284 = vmatpush.msra.mxu2 %v4697_v33  ;;  %v2197_v21 = vsel %vm924_vm2, %v2055_v6, %v4466_v63 }
 0x304   : > { %2263 = vmatmul.f32.gmra.mxu1 %v2197_v21 }
 0x305   : > { %2285 = vmatpush.msra.mxu2 %v4698_v24  ;;  %v2071_v24 = vld [vmem:[#allocation2 + $0x73] sm:$0xff] }
 0x308   : > { %v4470_v18 = vpop.permute.xlu1 %4469  ;;  %v1972_v19 = vpop.trf.xlu0 }
 0x309   : > { %v4471_v54 = vunpack.i.l.bf16 %v4470_v18  ;;  %4242 = vmatmul.msk.f32.gmra.mxu3 %vm1888_vm3, %v1972_v19  ;;  %v4472_v33 = vunpack.i.h.bf16 %v4470_v18  ;;  %v2072_v19 = vld [vmem:[#allocation2 + $0x7b] sm:$0xff] }
 0x30a   : > { %820 = vperm.xlu0 %4325, %v665_v17  }
 0x30b   : > { %v2198_v57 = vsel %vm924_vm2, %v2056_v0, %v4471_v54  ;;  %v2205_v17 = vsel %vm924_vm2, %v2071_v24, %v4472_v33  ;;  %v2075_v33 = vld [vmem:[#allocation2 + $0x93] sm:$0xff] }
 0x30c   : > { %2266 = vmatmul.f32.gmra.mxu1 %v2198_v57 }
 0x310   : > { %v4475_v46 = vpop.permute.xlu1 %4474  ;;  %v1973_v26 = vpop.trf.xlu0 }
 0x311   : > { %v4477_v37 = vunpack.i.h.bf16 %v4475_v46  ;;  %4243 = vmatmul.msk.f32.gmra.mxu3 %vm1888_vm3, %v1973_v26  ;;  %v2073_v26 = vld [vmem:[#allocation2 + $0x83] sm:$0xff] }
 0x313   : > { %v2211_v51 = vsel %vm924_vm2, %v6135_v22, %v4477_v37  ;;  %v4701_v22 = vld [vmem:[%s7576_s5 + $0x228] sm:$0xff] }
 0x314   : > { %2356 = vmatmul.f32.vlgmr.msrb.gmra.mxu1 %v2211_v51 }
 0x315   : > { %2895 = vmatpush.msrb.mxu1 %v4699_v49 }
 0x317   : > { %2896 = vmatpush.msrb.mxu1 %v4700_v30 }
 0x318   : > { %v4480_v27 = vpop.permute.xlu1 %4479  ;;  %v1974_v10 = vpop.trf.xlu0 }
 0x319   : > { %v4482_v36 = vunpack.i.h.bf16 %v4480_v27  ;;  %4244 = vmatmul.msk.f32.gmra.mxu3 %vm1888_vm3, %v1974_v10  ;;  %2897 = vmatpush.msrb.mxu1 %v4701_v22  ;;  %v4481_v57 = vunpack.i.l.bf16 %v4480_v27  ;;  %v659_v27 = vld [vmem:[%s7572_s1 + $0xb0] sm:$0xff] }
 0x31b   : > { %v2212_v55 = vsel %vm924_vm2, %v6140_v43, %v4482_v36  ;;  %2898 = vmatpush.msrb.mxu1 %v4702_v16  ;;  %v4705_v43 = vld [vmem:[%s7576_s5 + $0x208] sm:$0xff]  ;;  %v2207_v37 = vsel %vm924_vm2, %v2073_v26, %v4481_v57 }
 0x31c   : > { %2359 = vmatmul.f32.gmra.mxu1 %v2212_v55  ;;  %v6287_v21 = vpop.f32.mrf.mxu0  ;;  %v2074_v36 = vld [vmem:[#allocation2 + $0x8b] sm:$0xff] }
 0x31d   : > { %2899 = vmatpush.msrb.mxu1 %v4703_v13 }
 0x31f   : > { %2900 = vmatpush.msrb.mxu1 %v4704_v35 }
 0x320   : > { %v4485_v39 = vpop.permute.xlu1 %4484  ;;  %v1975_v1 = vpop.trf.xlu0 }
 0x321   : > { %v4487_v5 = vunpack.i.h.bf16 %v4485_v39  ;;  %4245 = vmatmul.msk.f32.gmra.mxu3 %vm1888_vm3, %v1975_v1  ;;  %2901 = vmatpush.msrb.mxu1 %v4705_v43  ;;  %v4486_v18 = vunpack.i.l.bf16 %v4485_v39 }
 0x323   : > { %v2213_v25 = vsel %vm924_vm2, %v6206_v62, %v4487_v5  ;;  %2902 = vmatpush.msrb.mxu1 %v4706_v45  ;;  %v4476_v62 = vunpack.i.l.bf16 %v4475_v46  ;;  %v2208_v46 = vsel %vm924_vm2, %v2074_v36, %v4486_v18 }
 0x324   : > { %2362 = vmatmul.f32.gmra.mxu1 %v2213_v25 }
 0x325   : > { %v2206_v54 = vsel %vm924_vm2, %v2072_v19, %v4476_v62 }
 0x328   : > { %v1976_v63 = vpop.trf.xlu0  ;;  %v4495_v62 = vpop.permute.xlu1 %4494 }
 0x329   : > { %4246 = vmatmul.msk.f32.gmra.mxu3 %vm1888_vm3, %v1976_v63  ;;  %v6317_v63 = vld [vmem:[%s7575_s4] ss:$0 sm:$0xff]  ;;  %v4497_v26 = vunpack.i.h.bf16 %v4495_v62 }
 0x32a   : > { %v6291_v0 = vpop.f32.mrf.mxu0 }
 0x330   : > { %v1977_v6 = vpop.trf.xlu0 }
 0x331   : > { %4247 = vmatmul.msk.f32.gmra.mxu3 %vm1888_vm3, %v1977_v6 }
 0x332   : > { %v6294_v51 = vpop.f32.mrf.mxu0 }
 0x339   : > { %2321 = vmatmul.f32.vlgmr.msra.gmra.mxu3 %v2205_v17 }
 0x33a   : > { %v6301_v1 = vpop.f32.mrf.mxu0 }
 0x341   : > { %2324 = vmatmul.f32.gmra.mxu3 %v2206_v54  ;;  %v663_v54 = vld [vmem:[%s7572_s1 + $0xd0] sm:$0xff] }
 0x342   : > { %v6306_v39 = vpop.f32.mrf.mxu0 }
 0x349   : > { %2327 = vmatmul.f32.gmra.mxu3 %v2207_v37  ;;  %v4496_v37 = vunpack.i.l.bf16 %v4495_v62  ;;  %v4709_v62 = vld [vmem:[#allocation2 + $0x7a] sm:$0xff] }
 0x34c   : > { %v1872_v10 = vpop.trf.xlu2 }
 0x34d   : > { %4232 = vmatmul.msk.f32.vlgmr.msrb.gmra.mxu2 %vm1888_vm3, %v1872_v10 }
 0x34e   : > { %2383 = vmatpush.msrb.mxu2 %v4699_v49  ;;  %v2569_v49 = vld [vmem:[#allocation2 + $0x91] sm:$0xff] }
 0x350   : > { %2384 = vmatpush.msrb.mxu2 %v4700_v30 }
 0x351   : > { %2330 = vmatmul.f32.gmra.mxu3 %v2208_v46 }
 0x352   : > { %2385 = vmatpush.msrb.mxu2 %v4701_v22  ;;  %v662_v22 = vld [vmem:[%s7572_s1 + $0xc8] sm:$0xff] }
 0x354   : > { %790 = vperm.xlu2 %4327, %v659_v27   ;;  %v1873_v55 = vpop.trf.xlu2  ;;  %2386 = vmatpush.msrb.mxu2 %v4702_v16  ;;  %v6328_v27 = vld [vmem:[#allocation2 + $0xa4] sm:$0xff] }
 0x355   : > { %4233 = vmatmul.msk.f32.gmra.mxu2 %vm1888_vm3, %v1873_v55 }
 0x356   : > { %2387 = vmatpush.msrb.mxu2 %v4703_v13  ;;  %v554_v13 = vpop.f32.mrf.mxu0 }
 0x357   : > { %v555_v6 = vadd.f32 %v6317_v63, %v554_v13 }
 0x358   : > { %2388 = vmatpush.msrb.mxu2 %v4704_v35  ;;  %v2570_v35 = vld [vmem:[#allocation2 + $0x99] sm:$0xff] }
 0x359   : > { %v623_v19 = vmax.f32 %v555_v6, 0.0  ;;  %v2064_v6 = vld [vmem:[#allocation2 + $0x6a] sm:$0xff] }
 0x35a   : > { %2389 = vmatpush.msrb.mxu2 %v4705_v43 }
 0x35c   : > { %2615 = vrot.lane.b32.xlu2 %v2569_v49, %s4795_s14  ;;  %v1874_v30 = vpop.trf.xlu2  ;;  %2390 = vmatpush.msrb.mxu2 %v4706_v45  ;;  %v2215_v49 = vsel %vm924_vm2, %v6328_v27, %v4497_v26 }
 0x35d   : > { %4234 = vmatmul.msk.f32.gmra.mxu2 %vm1888_vm3, %v1874_v30 }
 0x35e   : > { %v557_v57 = vpop.f32.mrf.mxu0 }
 0x35f   : > { %v558_v46 = vadd.f32 %v6317_v63, %v557_v57 }
 0x361   : > { %v624_v30 = vmax.f32 %v558_v46, 0.0  ;;  %v2091_v46 = vld [vmem:[#allocation2 + $0x86] sm:$0xff] }
 0x364   : > { %805 = vperm.xlu2 %4327, %v662_v22   ;;  %v1875_v16 = vpop.trf.xlu2  ;;  %v2571_v22 = vld [vmem:[#allocation2 + $0xa1] sm:$0xff] }
 0x365   : > { %4235 = vmatmul.msk.f32.gmra.mxu2 %vm1888_vm3, %v1875_v16 }
 0x36c   : > { %2617 = vrot.lane.b32.xlu2 %v2570_v35, %s4795_s14  ;;  %v1876_v5 = vpop.trf.xlu2  ;;  %v4490_v43 = vpop.permute.xlu0 %4489 }
 0x36d   : > { %v4492_v25 = vunpack.i.h.bf16 %v4490_v43  ;;  %v4491_v45 = vunpack.i.l.bf16 %v4490_v43  ;;  %4236 = vmatmul.msk.f32.gmra.mxu2 %vm1888_vm3, %v1876_v5  ;;  %v4446_v43 = vunpack.i.l.bf16 %v5980_v32  ;;  %v4452_v32 = vunpack.i.h.bf16 %v6177_v29 }
 0x36f   : > { %v2209_v24 = vsel %vm924_vm2, %v2075_v33, %v4491_v45  ;;  %v2214_v17 = vsel %vm924_vm2, %v6146_v9, %v4492_v25  ;;  %v2076_v9 = vld [vmem:[#allocation2 + $0x9b] sm:$0xff]  ;;  %v2200_v33 = vsel %vm924_vm2, %v2064_v6, %v6169_v12  ;;  %v4457_v12 = vunpack.i.h.bf16 %v6193_v56 }
 0x370   : > { %2333 = vmatmul.f32.gmra.mxu3 %v2209_v24  ;;  %2365 = vmatmul.f32.gmra.mxu1 %v2214_v17  ;;  %v2210_v55 = vsel %vm924_vm2, %v2076_v9, %v4496_v37  ;;  %v2063_v25 = vld [vmem:[#allocation2 + $0x62] sm:$0xff]  ;;  %v4708_v24 = vld [vmem:[#allocation2 + $0x72] sm:$0xff] }
 0x371   : > { %v2199_v45 = vsel %vm924_vm2, %v2063_v25, %v4446_v43  ;;  %v2201_v17 = vsel %vm924_vm2, %v4708_v24, %v4452_v32  ;;  %v2202_v29 = vsel %vm924_vm2, %v4709_v62, %v4457_v12  ;;  %v6422_v43 = vld [vmem:[%s7576_s5 + $0x50] sm:$0xff]  ;;  %v6428_v25 = vld [vmem:[%s7576_s5 + $0x48] sm:$0xff]  ;;  %v2094_v62 = vld [vmem:[#allocation2 + $0x9e] sm:$0xff] }
 0x372   : > { %v2093_v6 = vld [vmem:[#allocation2 + $0x96] sm:$0xff] }
 0x373   : > { %v2418_v32 = vld [vmem:[%s7573_s2 + $0x70] sm:$0xff] }
 0x374   : > { %810 = vperm.xlu2 %4327, %v663_v54   ;;  %v1877_v18 = vpop.trf.xlu2  ;;  %v816_v10 = vpop.permute.xlu0 %815  ;;  %v4462_v54 = vunpack.i.h.bf16 %v6211_v2  ;;  %v6447_v12 = vld [vmem:[%s7576_s5 + $0x30] sm:$0xff] }
 0x375   : > { %v910_v36 = vmul.f32 %v816_v10, %v623_v19  ;;  %4237 = vmatmul.msk.f32.gmra.mxu2 %vm1888_vm3, %v1877_v18  ;;  %v540_v19 = vadd.f32 %v6317_v63, %v6287_v21  ;;  %v4467_v18 = vunpack.i.h.bf16 %v6233_v48  ;;  %v549_v10 = vadd.f32 %v6317_v63, %v6301_v1  ;;  %v2416_v48 = vld [vmem:[%s7573_s2 + $0x60] sm:$0xff] }
 0x376   : > { %v2203_v57 = vsel %vm924_vm2, %v5955_v52, %v4462_v54 }
 0x377   : > { %952 = vst.msk [vmem:[#allocation2 + $0xd8] sm:$0xff] %vm924_vm2, %v910_v36  ;;  %v618_v56 = vmax.f32 %v540_v19, 0.0  ;;  %v2204_v2 = vsel %vm924_vm2, %v5982_v15, %v4467_v18  ;;  %v621_v52 = vmax.f32 %v549_v10, 0.0  ;;  %v6383_v15 = vld [vmem:[%s7576_s5 + $0x78] sm:$0xff]  ;;  %v2095_v19 = vld [vmem:[#allocation2 + $0xa6] sm:$0xff] }
 0x378   : > { %2336 = vmatmul.f32.gmra.mxu3 %v2210_v55  ;;  %2368 = vmatmul.f32.gmra.mxu1 %v2215_v49  ;;  %v6389_v55 = vld [vmem:[%s7576_s5 + $0x70] sm:$0xff]  ;;  %v6396_v49 = vld [vmem:[%s7576_s5 + $0x68] sm:$0xff] }
 0x37c   : > { %2619 = vrot.lane.b32.xlu2 %v2571_v22, %s4795_s14  ;;  %v1878_v16 = vpop.trf.xlu2  ;;  %v821_v13 = vpop.permute.xlu0 %820  ;;  %v6402_v22 = vld [vmem:[%s7576_s5 + $0x60] sm:$0xff] }
 0x37d   : > { %v911_v35 = vmul.f32 %v821_v13, %v624_v30  ;;  %4238 = vmatmul.msk.f32.gmra.mxu2 %vm1888_vm3, %v1878_v16  ;;  %v2092_v30 = vld [vmem:[#allocation2 + $0x8e] sm:$0xff] }
 0x37e   : > { %v2417_v13 = vld [vmem:[%s7573_s2 + $0x68] sm:$0xff] }
 0x37f   : > { %953 = vst.msk [vmem:[#allocation2 + $0xe0] sm:$0xff] %vm924_vm2, %v911_v35  ;;  %v6414_v35 = vld [vmem:[%s7576_s5 + $0x58] sm:$0xff] }
 0x384   : > { %v1879_v5 = vpop.trf.xlu2 }
 0x385   : > { %4239 = vmatmul.msk.f32.gmra.mxu2 %vm1888_vm3, %v1879_v5  ;;  %v552_v5 = vadd.f32 %v6317_v63, %v6306_v39  ;;  %v6434_v39 = vld [vmem:[%s7576_s5 + $0x40] sm:$0xff] }
 0x38d   : > { %2286 = vmatmul.f32.vlgmr.msra.gmra.mxu2 %v2199_v45  ;;  %v622_v45 = vmax.f32 %v552_v5, 0.0 }
 0x38e   : > { %2817 = vmatpush.msra.mxu2 %v5938_v53 }
 0x390   : > { %2818 = vmatpush.msra.mxu2 %v5944_v60 }
 0x392   : > { %2819 = vmatpush.msra.mxu2 %v5952_v38 }
 0x394   : > { %2820 = vmatpush.msra.mxu2 %v5960_v58 }
 0x395   : > { %2289 = vmatmul.f32.gmra.mxu2 %v2200_v33 }
 0x396   : > { %2821 = vmatpush.msra.mxu2 %v5970_v4 }
 0x398   : > { %2822 = vmatpush.msra.mxu2 %v5977_v50 }
 0x39a   : > { %2823 = vmatpush.msra.mxu2 %v5987_v41 }
 0x39c   : > { %2824 = vmatpush.msra.mxu2 %v5997_v23 }
 0x39d   : > { %2292 = vmatmul.f32.gmra.mxu2 %v2201_v17 }
 0x39e   : > { %2825 = vmatpush.msra.mxu2 %v6006_v8 }
 0x3a0   : > { %2826 = vmatpush.msra.mxu2 %v6016_v47 }
 0x3a2   : > { %2827 = vmatpush.msra.mxu2 %v6023_v7 }
 0x3a4   : > { %2828 = vmatpush.msra.mxu2 %v6034_v44 }
 0x3a5   : > { %2295 = vmatmul.f32.gmra.mxu2 %v2202_v29 }
 0x3a6   : > { %2829 = vmatpush.msra.mxu2 %v6042_v42 }
 0x3a8   : > { %2830 = vmatpush.msra.mxu2 %v6051_v11 }
 0x3aa   : > { %2831 = vmatpush.msra.mxu2 %v6058_v31 }
 0x3ac   : > { %2832 = vmatpush.msra.mxu2 %v6067_v34 }
 0x3ad   : > { %2298 = vmatmul.f32.gmra.mxu2 %v2203_v57 }
 0x3ae   : > { %v791_v26 = vpop.permute.xlu2 %790 }
 0x3af   : > { %v905_v37 = vmul.f32 %v791_v26, %v618_v56  ;;  %v660_v56 = vld [vmem:[%s7572_s1 + $0xb8] sm:$0xff]  ;;  %v661_v26 = vld [vmem:[%s7572_s1 + $0xc0] sm:$0xff] }
 0x3b1   : > { %947 = vst.msk [vmem:[#allocation2 + $0xb0] sm:$0xff] %vm924_vm2, %v905_v37 }
 0x3b5   : > { %2301 = vmatmul.f32.gmra.mxu2 %v2204_v2  ;;  %v2252_v2 = vpop.f32.mrf.mxu1 }
 0x3b6   : > { %v6371_v21 = vpop.permute.xlu2 %2615 }
 0x3b8   : > { %v2090_v36 = vld [vmem:[#allocation2 + $0xad] sm:$0xff] }
 0x3b9   : > { %2185 = vrot.lane.b32.xlu1 %v2090_v36, %s4795_s14  ;;  %v2096_v54 = vld [vmem:[#allocation2 + $0xae] sm:$0xff] }
 0x3bd   : > { %4248 = vmatmul.msk.f32.vlgmr.msrb.gmra.mxu2 %vm924_vm2, %v2091_v46 }
 0x3be   : > { %v806_v9 = vpop.permute.xlu2 %805  ;;  %3259 = vmatpush.msrb.mxu2 %v6383_v15 }
 0x3bf   : > { %v908_v1 = vmul.f32 %v806_v9, %v621_v52  ;;  %v2255_v52 = vpop.f32.mrf.mxu1 }
 0x3c0   : > { %3260 = vmatpush.msrb.mxu2 %v6389_v55 }
 0x3c1   : > { %950 = vst.msk [vmem:[#allocation2 + $0xc8] sm:$0xff] %vm924_vm2, %v908_v1  ;;  %2424 = vperm.xlu1 %4326, %v2416_v48  }
 0x3c2   : > { %3261 = vmatpush.msrb.mxu2 %v6396_v49 }
 0x3c4   : > { %3262 = vmatpush.msrb.mxu2 %v6402_v22 }
 0x3c5   : > { %4249 = vmatmul.msk.f32.gmra.mxu2 %vm924_vm2, %v2092_v30 }
 0x3c6   : > { %v6406_v16 = vpop.permute.xlu2 %2617  ;;  %3263 = vmatpush.msrb.mxu2 %v6414_v35 }
 0x3c7   : > { %v2258_v48 = vpop.f32.mrf.mxu1 }
 0x3c8   : > { %3264 = vmatpush.msrb.mxu2 %v6422_v43 }
 0x3c9   : > { %2429 = vperm.xlu1 %4326, %v2417_v13  }
 0x3ca   : > { %3265 = vmatpush.msrb.mxu2 %v6428_v25 }
 0x3cc   : > { %3266 = vmatpush.msrb.mxu2 %v6434_v39 }
 0x3cd   : > { %4250 = vmatmul.msk.f32.gmra.mxu2 %vm924_vm2, %v2093_v6 }
 0x3ce   : > { %v811_v33 = vpop.permute.xlu2 %810  ;;  %3267 = vmatpush.msrb.mxu2 %v6075_v20  ;;  %v2419_v20 = vld [vmem:[%s7573_s2 + $0x78] sm:$0xff] }
 0x3cf   : > { %v909_v24 = vmul.f32 %v811_v33, %v622_v45  ;;  %v6501_v5 = vpop.f32.mrf.mxu1 }
 0x3d0   : > { %v6442_v17 = vpop.f32.mrf.mxu2  ;;  %3268 = vmatpush.msrb.mxu2 %v6447_v12 }
 0x3d1   : > { %951 = vst.msk [vmem:[#allocation2 + $0xd0] sm:$0xff] %vm924_vm2, %v909_v24  ;;  %2434 = vperm.xlu1 %4326, %v2418_v32  }
 0x3d2   : > { %3269 = vmatpush.msrb.mxu2 %v6086_v28  ;;  %v2420_v28 = vld [vmem:[%s7573_s2 + $0x80] sm:$0xff] }
 0x3d4   : > { %3270 = vmatpush.msrb.mxu2 %v6096_v59 }
 0x3d5   : > { %4251 = vmatmul.msk.f32.gmra.mxu2 %vm924_vm2, %v2094_v62 }
 0x3d6   : > { %3271 = vmatpush.msrb.mxu2 %v6103_v61  ;;  %v6469_v61 = vpop.f32.mrf.mxu3 }
 0x3d7   : > { %v6505_v33 = vpop.f32.mrf.mxu1 }
 0x3d8   : > { %v6458_v29 = vpop.f32.mrf.mxu2  ;;  %3272 = vmatpush.msrb.mxu2 %v6110_v40  ;;  %v2421_v40 = vld [vmem:[%s7573_s2 + $0x88] sm:$0xff] }
 0x3d9   : > { %2439 = vperm.xlu1 %4326, %v2419_v20   ;;  %v6511_v20 = vld [vmem:[#allocation2 + $0xac] sm:$0xff] }
 0x3da   : > { %3273 = vmatpush.msrb.mxu2 %v6119_v3 }
 0x3dc   : > { %3274 = vmatpush.msrb.mxu2 %v6129_v14 }
 0x3dd   : > { %4252 = vmatmul.msk.f32.gmra.mxu2 %vm924_vm2, %v2095_v19 }
 0x3de   : > { %v6477_v14 = vpop.f32.mrf.mxu3 }
 0x3e0   : > { %v6467_v59 = vpop.f32.mrf.mxu2 }
 0x3e1   : > { %2444 = vperm.xlu1 %4326, %v2420_v28   ;;  %v6515_v28 = vpop.f32.mrf.mxu1 }
 0x3e5   : > { %4253 = vmatmul.msk.f32.gmra.mxu2 %vm924_vm2, %v2096_v54 }
 0x3e6   : > { %v6487_v37 = vpop.f32.mrf.mxu3 }
 0x3e8   : > { %v6475_v3 = vpop.f32.mrf.mxu2 }
 0x3e9   : > { %2449 = vperm.xlu1 %4326, %v2421_v40   ;;  %v2563_v40 = vld [vmem:[#allocation2 + $0x90] sm:$0xff] }
 0x3ee   : > { %v6493_v36 = vpop.f32.mrf.mxu3 }
 0x3f0   : > { %v6482_v57 = vpop.f32.mrf.mxu2 }
 0x3f1   : > { %795 = vperm.xlu1 %4326, %v660_v56  }
 0x3f6   : > { %v6497_v9 = vpop.f32.mrf.mxu3 }
 0x3f8   : > { %v6489_v18 = vpop.f32.mrf.mxu2 }
 0x3f9   : > { %7633 = vst [vmem:[#allocation11_spill] sm:$0xff] %v6489_v18  ;;  %800 = vperm.xlu1 %4326, %v661_v26   ;;  %v2705_v26 = vsel %vm924_vm2, %v2563_v40, %v6371_v21 }
 0x3fe   : > { %v6499_v30 = vpop.f32.mrf.mxu3 }
 0x3ff   : > { %7636 = vst [vmem:[#allocation5_spill] sm:$0xff] %v6499_v30  ;;  %v2564_v30 = vld [vmem:[#allocation2 + $0x98] sm:$0xff] }
 0x400   : > { %v6491_v10 = vpop.f32.mrf.mxu2  ;;  %v2706_v18 = vsel %vm924_vm2, %v2564_v30, %v6406_v16 }
 0x401   : > { %7634 = vst [vmem:[#allocation12_spill] sm:$0xff] %v6491_v10 }
 0x406   : > { %v6503_v45 = vpop.f32.mrf.mxu3 }
 0x407   : > { %7637 = vst [vmem:[#allocation19_spill] sm:$0xff] %v6503_v45 }
 0x408   : > { %v6495_v46 = vpop.f32.mrf.mxu2 }
 0x409   : > { %7635 = vst [vmem:[#allocation20_spill] sm:$0xff] %v6495_v46 }
 0x40e   : > { %v6509_v24 = vpop.f32.mrf.mxu3 }
 0x40f   : > { %7638 = vst [vmem:[#allocation3_spill] sm:$0xff] %v6509_v24  ;;  %v6524_v24 = vld [vmem:[%s7577_s6] ss:$0 sm:$0xff] }
 0x410   : > { %v2287_v1 = vpop.f32.mrf.mxu2  ;;  %v2253_v45 = vadd.f32 %v6524_v24, %v2252_v2  ;;  %v2256_v2 = vadd.f32 %v6524_v24, %v2255_v52 }
 0x416   : > { %v2322_v46 = vpop.f32.mrf.mxu3 }
 0x418   : > { %v2290_v13 = vpop.f32.mrf.mxu2 }
 0x420   : > { %v2293_v6 = vpop.f32.mrf.mxu2 }
 0x428   : > { %v6507_v32 = vpop.f32.mrf.mxu2 }
 0x42b   : > { %v2186_v62 = vpop.permute.xlu1 %2185 }
 0x42c   : > { %v2216_v19 = vsel %vm924_vm2, %v6511_v20, %v2186_v62  ;;  %v2288_v62 = vadd.f32 %v2287_v1, %v2253_v45  ;;  %v2291_v1 = vadd.f32 %v2290_v13, %v2256_v2 }
 0x42d   : > { %2371 = vmatmul.f32.gmra.mxu1 %v2216_v19  ;;  %v2357_v19 = vpop.f32.mrf.mxu1 }
 0x42e   : > { %v2323_v21 = vadd.f32 %v2322_v46, %v2288_v62 }
 0x430   : > { %v6517_v54 = vpop.f32.mrf.mxu2  ;;  %v2358_v45 = vadd.f32 %v2357_v19, %v2323_v21 }
 0x433   : > { %v2425_v56 = vpop.permute.xlu1 %2424 }
 0x435   : > { %2763 = vmatmul.f32.vlgmr.msra.gmra.mxu1 %v2705_v26  ;;  %v2360_v46 = vpop.f32.mrf.mxu1 }
 0x436   : > { %3329 = vmatpush.msra.mxu1 %v5938_v53  ;;  %v2325_v53 = vpop.f32.mrf.mxu3 }
 0x437   : > { %v2326_v62 = vadd.f32 %v2325_v53, %v2291_v1 }
 0x438   : > { %v6528_v10 = vpop.f32.mrf.mxu2  ;;  %3330 = vmatpush.msra.mxu1 %v5944_v60  ;;  %v2620_v60 = vpop.permute.xlu2 %2619 }
 0x439   : > { %v2361_v13 = vadd.f32 %v2360_v46, %v2326_v62 }
 0x43a   : > { %3331 = vmatpush.msra.mxu1 %v5952_v38 }
 0x43b   : > { %v2430_v40 = vpop.permute.xlu1 %2429 }
 0x43c   : > { %3332 = vmatpush.msra.mxu1 %v5960_v58  ;;  %v2565_v58 = vld [vmem:[#allocation2 + $0xa0] sm:$0xff] }
 0x43d   : > { %2766 = vmatmul.f32.gmra.mxu1 %v2706_v18  ;;  %v2707_v52 = vsel %vm924_vm2, %v2565_v58, %v2620_v60 }
 0x43e   : > { %3333 = vmatpush.msra.mxu1 %v5970_v4  ;;  %v2259_v4 = vadd.f32 %v6524_v24, %v2258_v48  ;;  %v2363_v48 = vpop.f32.mrf.mxu1 }
 0x440   : > { %v2392_v26 = vpop.f32.mrf.mxu2  ;;  %3334 = vmatpush.msra.mxu1 %v5977_v50  ;;  %v2294_v50 = vadd.f32 %v2293_v6, %v2259_v4 }
 0x441   : > { %v2393_v38 = vadd.f32 %v2392_v26, %v2358_v45 }
 0x442   : > { %3335 = vmatpush.msra.mxu1 %v5987_v41  ;;  %v2328_v41 = vpop.f32.mrf.mxu3 }
 0x443   : > { %v2410_v16 = vmax.f32 %v2393_v38, 0.0  ;;  %v2435_v30 = vpop.permute.xlu1 %2434  ;;  %v2329_v2 = vadd.f32 %v2328_v41, %v2294_v50  ;;  %v308_v50 = vld [vmem:[%s4868_s18 + $0xe8] sm:$0xff] }
 0x444   : > { %3336 = vmatpush.msra.mxu1 %v5997_v23  ;;  %4208 = vmatmul.msk.f32.gmra.mxu0 %vm328_vm1, %v308_v50 }
 0x445   : > { %2769 = vmatmul.f32.gmra.mxu1 %v2707_v52  ;;  %v6542_v18 = vmul.f32 %v2425_v56, %v2410_v16 }
 0x446   : > { %3337 = vmatpush.msra.mxu1 %v6006_v8  ;;  %v2262_v8 = vadd.f32 %v6524_v24, %v6501_v5  ;;  %v2366_v5 = vpop.f32.mrf.mxu1 }
 0x447   : > { %2458 = vxpose.xlu1.b32.start [1/6] (short) (narrow) %v6542_v18, 64 }
 0x448   : > { %v2395_v19 = vpop.f32.mrf.mxu2  ;;  %3338 = vmatpush.msra.mxu1 %v6016_v47  ;;  %v2297_v56 = vadd.f32 %v6507_v32, %v2262_v8  ;;  %v2364_v47 = vadd.f32 %v2363_v48, %v2329_v2 }
 0x449   : > { %v2396_v21 = vadd.f32 %v2395_v19, %v2361_v13 }
 0x44a   : > { %3339 = vmatpush.msra.mxu1 %v6023_v7  ;;  %v2331_v45 = vpop.f32.mrf.mxu3 }
 0x44b   : > { %v2411_v23 = vmax.f32 %v2396_v21, 0.0  ;;  %v2440_v53 = vpop.permute.xlu1 %2439  ;;  %v546_v21 = vadd.f32 %v6317_v63, %v6294_v51 }
 0x44c   : > { %3340 = vmatpush.msra.mxu1 %v6034_v44  ;;  %v2332_v44 = vadd.f32 %v2331_v45, %v2297_v56  ;;  %v6582_v56 = vld [vmem:[#allocation2 + $0xa2] sm:$0xff] }
 0x44d   : > { %v6551_v6 = vmul.f32 %v2430_v40, %v2411_v23  ;;  %v620_v23 = vmax.f32 %v546_v21, 0.0  ;;  %v313_v21 = vld [vmem:[%s4868_s18 + $0x110] sm:$0xff] }
 0x44e   : > { %3341 = vmatpush.msra.mxu1 %v6042_v42  ;;  %v2265_v42 = vadd.f32 %v6524_v24, %v6505_v33  ;;  %v2369_v33 = vpop.f32.mrf.mxu1 }
 0x44f   : > { %2459 = vxpose.xlu1.b32.cont [2/6] (short) (narrow) %v6551_v6, 64 }
 0x450   : > { %v2398_v1 = vpop.f32.mrf.mxu2  ;;  %3342 = vmatpush.msra.mxu1 %v6051_v11  ;;  %v2300_v40 = vadd.f32 %v6517_v54, %v2265_v42  ;;  %v2367_v11 = vadd.f32 %v2366_v5, %v2332_v44  ;;  %v310_v44 = vld [vmem:[%s4868_s18 + $0xf8] sm:$0xff]  ;;  %v6592_v5 = vld [vmem:[#allocation2 + $0xaa] sm:$0xff] }
 0x451   : > { %v2399_v7 = vadd.f32 %v2398_v1, %v2364_v47  ;;  %v2572_v47 = vld [vmem:[#allocation2 + $0xa9] sm:$0xff] }
 0x452   : > { %3343 = vmatpush.msra.mxu1 %v6058_v31  ;;  %v2334_v31 = vpop.f32.mrf.mxu3 }
 0x453   : > { %v2412_v26 = vmax.f32 %v2399_v7, 0.0  ;;  %v2445_v60 = vpop.permute.xlu1 %2444  ;;  %v2335_v62 = vadd.f32 %v2334_v31, %v2300_v40  ;;  %v2600_v31 = vld [vmem:[#allocation2 + $0xcd] sm:$0xff] }
 0x454   : > { %3344 = vmatpush.msra.mxu1 %v6067_v34  ;;  %v543_v34 = vadd.f32 %v6317_v63, %v6291_v0 }
 0x455   : > { %v6561_v32 = vmul.f32 %v2435_v30, %v2412_v26  ;;  %v2370_v54 = vadd.f32 %v2369_v33, %v2335_v62 }
 0x456   : > { %v619_v30 = vmax.f32 %v543_v34, 0.0 }
 0x457   : > { %2460 = vxpose.xlu1.b32.cont [3/6] (short) (narrow) %v6561_v32, 64 }
 0x458   : > { %v2401_v38 = vpop.f32.mrf.mxu2 }
 0x459   : > { %v2402_v46 = vadd.f32 %v2401_v38, %v2367_v11  ;;  %v311_v11 = vld [vmem:[%s4868_s18 + $0x100] sm:$0xff] }
 0x45b   : > { %v2413_v16 = vmax.f32 %v2402_v46, 0.0  ;;  %v6565_v58 = vpop.permute.xlu1 %2449 }
 0x45d   : > { %v6569_v52 = vmul.f32 %v2440_v53, %v2413_v16  ;;  %v309_v53 = vld [vmem:[%s4868_s18 + $0xf0] sm:$0xff] }
 0x45e   : > { %4209 = vmatmul.msk.f32.gmra.mxu0 %vm328_vm1, %v309_v53  ;;  %v2602_v53 = vld [vmem:[#allocation2 + $0xdd] sm:$0xff] }
 0x45f   : > { %2461 = vxpose.xlu1.b32.cont [4/6] (short) (narrow) %v6569_v52, 64 }
 0x460   : > { %v2404_v4 = vpop.f32.mrf.mxu2 }
 0x461   : > { %v2405_v13 = vadd.f32 %v2404_v4, %v2370_v54 }
 0x463   : > { %v2414_v41 = vmax.f32 %v2405_v13, 0.0  ;;  %v796_v19 = vpop.permute.xlu1 %795 }
 0x464   : > { %v906_v2 = vmul.f32 %v796_v19, %v619_v30  ;;  %v2601_v30 = vld [vmem:[#allocation2 + $0xd5] sm:$0xff]  ;;  %v6623_v19 = vld [vmem:[#allocation2 + $0xca] sm:$0xff] }
 0x465   : > { %v6576_v0 = vmul.f32 %v2445_v60, %v2414_v41 }
 0x466   : > { %948 = vst.msk [vmem:[#allocation2 + $0xb8] sm:$0xff] %vm924_vm2, %v906_v2  ;;  %4210 = vmatmul.msk.f32.gmra.mxu0 %vm328_vm1, %v310_v44  ;;  %v6630_v2 = vld [vmem:[#allocation2 + $0xcc] sm:$0xff] }
 0x467   : > { %2462 = vxpose.xlu1.b32.cont [5/6] (short) (narrow) %v6576_v0, 64  ;;  %v666_v44 = vld [vmem:[%s7572_s1 + $0xe8] sm:$0xff] }
 0x46b   : > { %v801_v48 = vpop.permute.xlu1 %800 }
 0x46c   : > { %v907_v8 = vmul.f32 %v801_v48, %v620_v23  ;;  %v2930_v23 = vld [vmem:[%s7573_s2 + $0xa0] sm:$0xff]  ;;  %v4543_v48 = vpack.i.bf16 %v2602_v53, %v6630_v2  ;;  %v6714_v53 = vld [vmem:[%s7576_s5 + $0x1d0] sm:$0xff] }
 0x46d   : > { %v2573_v1 = vld [vmem:[#allocation2 + $0xb1] sm:$0xff] }
 0x46e   : > { %v2597_v51 = vld [vmem:[#allocation2 + $0xb5] sm:$0xff]  ;;  %949 = vst.msk [vmem:[#allocation2 + $0xc0] sm:$0xff] %vm924_vm2, %v907_v8  ;;  %v4498_v7 = vpack.i.bf16 %v2573_v1, %v2572_v47  ;;  %4211 = vmatmul.msk.f32.gmra.mxu0 %vm328_vm1, %v311_v11 }
 0x46f   : > { %v4508_v45 = vpack.i.bf16 %v6582_v56, %v2597_v51  ;;  %v6590_v26 = vld [vmem:[#allocation2 + $0xb4] sm:$0xff]  ;;  %v315_v51 = vld [vmem:[%s4868_s18 + $0x120] sm:$0xff] }
 0x470   : > { %4499 = vrot.lane.b32.xlu2 %v4498_v7, %s4795_s14  ;;  %v4518_v40 = vpack.i.bf16 %v6590_v26, %v6592_v5  ;;  %v6611_v54 = vld [vmem:[#allocation2 + $0xb2] sm:$0xff]  ;;  %v2268_v7 = vadd.f32 %v6524_v24, %v6515_v28 }
 0x471   : > { %4509 = vrot.lane.b32.xlu0 %v4508_v45, %s4795_s14  ;;  %v314_v8 = vld [vmem:[%s4868_s18 + $0x118] sm:$0xff]  ;;  %v2932_v47 = vld [vmem:[%s7573_s2 + $0xb0] sm:$0xff] }
 0x472   : > { %v2929_v1 = vld [vmem:[%s7573_s2 + $0x98] sm:$0xff]  ;;  %v2303_v45 = vadd.f32 %v6528_v10, %v2268_v7  ;;  %v2407_v10 = vpop.f32.mrf.mxu2 }
 0x475   : > { %v2574_v60 = vld [vmem:[#allocation2 + $0xb9] sm:$0xff]  ;;  %v2599_v34 = vld [vmem:[#allocation2 + $0xc5] sm:$0xff] }
 0x476   : > { %v4503_v42 = vpack.i.bf16 %v2574_v60, %v6328_v27  ;;  %v2598_v38 = vld [vmem:[#allocation2 + $0xbd] sm:$0xff]  ;;  %v312_v27 = vld [vmem:[%s4868_s18 + $0x108] sm:$0xff]  ;;  %v4523_v4 = vpack.i.bf16 %v6611_v54, %v2599_v34 }
 0x477   : > { %v6601_v46 = vld [vmem:[#allocation2 + $0xbc] sm:$0xff]  ;;  %v4513_v62 = vpack.i.bf16 %v2598_v38, %v6511_v20  ;;  %4212 = vmatmul.msk.f32.gmra.mxu0 %vm328_vm1, %v312_v27  ;;  %v6619_v13 = vld [vmem:[#allocation2 + $0xc4] sm:$0xff] }
 0x478   : > { %4504 = vrot.lane.b32.xlu2 %v4503_v42, %s4795_s14  ;;  %v4528_v16 = vpack.i.bf16 %v2600_v31, %v6601_v46  ;;  %v6609_v33 = vld [vmem:[#allocation2 + $0xc2] sm:$0xff]  ;;  %v6617_v50 = vld [vmem:[#allocation2 + $0xba] sm:$0xff] }
 0x479   : > { %4519 = vrot.lane.b32.xlu0 %v4518_v40, %s4795_s14  ;;  %v4538_v20 = vpack.i.bf16 %v6609_v33, %v2601_v30  ;;  %v4533_v41 = vpack.i.bf16 %v6619_v13, %v6617_v50  ;;  %v2931_v60 = vld [vmem:[%s7573_s2 + $0xa8] sm:$0xff]  ;;  %v2337_v40 = vpop.f32.mrf.mxu3  ;;  %v317_v30 = vld [vmem:[%s4868_s18 + $0x130] sm:$0xff] }
 0x47a   : > { %v316_v42 = vld [vmem:[%s4868_s18 + $0x128] sm:$0xff]  ;;  %v2338_v11 = vadd.f32 %v2337_v40, %v2303_v45  ;;  %v669_v45 = vld [vmem:[%s7572_s1 + $0x100] sm:$0xff] }
 0x47b   : > { %v3081_v28 = vld [vmem:[#allocation2 + $0xc1] sm:$0xff] }
 0x47f   : > { %4213 = vmatmul.msk.f32.gmra.mxu0 %vm328_vm1, %v313_v21  ;;  %v6707_v21 = vld [vmem:[%s7576_s5 + $0x1d8] sm:$0xff] }
 0x480   : > { %4514 = vrot.lane.b32.xlu2 %v4513_v62, %s4795_s14  ;;  %v3082_v62 = vld [vmem:[#allocation2 + $0xc9] sm:$0xff] }
 0x481   : > { %4529 = vrot.lane.b32.xlu0 %v4528_v16, %s4795_s14  ;;  %v2933_v16 = vld [vmem:[%s7573_s2 + $0xb8] sm:$0xff]  ;;  %v4548_v27 = vpack.i.bf16 %v3082_v62, %v3081_v28  ;;  %v2583_v28 = vld [vmem:[#allocation2 + $0xa3] sm:$0xff] }
 0x487   : > { %4214 = vmatmul.msk.f32.gmra.mxu0 %vm328_vm1, %v314_v8  ;;  %v6720_v8 = vld [vmem:[%s7576_s5 + $0x1c8] sm:$0xff] }
 0x488   : > { %4524 = vrot.lane.b32.xlu2 %v4523_v4, %s4795_s14 }
 0x489   : > { %4539 = vrot.lane.b32.xlu0 %v4538_v20, %s4795_s14  ;;  %v667_v20 = vld [vmem:[%s7572_s1 + $0xf0] sm:$0xff] }
 0x48f   : > { %4215 = vmatmul.msk.f32.gmra.mxu0 %vm328_vm1, %v315_v51  ;;  %v6726_v51 = vld [vmem:[%s7576_s5 + $0x1c0] sm:$0xff] }
 0x490   : > { %4534 = vrot.lane.b32.xlu2 %v4533_v41, %s4795_s14  ;;  %v318_v41 = vld [vmem:[%s4868_s18 + $0x138] sm:$0xff] }
 0x491   : > { %2649 = vrot.lane.b32.xlu0 %v6623_v19, %s4795_s14 }
 0x497   : > { %4216 = vmatmul.msk.f32.gmra.mxu0 %vm328_vm1, %v316_v42 }
 0x498   : > { %4544 = vrot.lane.b32.xlu2 %v4543_v48, %s4795_s14 }
 0x499   : > { %2946 = vperm.xlu0 %4325, %v2930_v23   ;;  %v3083_v23 = vld [vmem:[#allocation2 + $0xd1] sm:$0xff] }
 0x49f   : > { %4217 = vmatmul.msk.f32.gmra.mxu0 %vm328_vm1, %v317_v30  ;;  %v6770_v30 = vld [vmem:[%s7576_s5 + $0x190] sm:$0xff] }
 0x4a0   : > { %2941 = vperm.xlu2 %4327, %v2929_v1   ;;  %v2566_v1 = vld [vmem:[#allocation2 + $0xa8] sm:$0xff] }
 0x4a1   : > { %2956 = vperm.xlu0 %4325, %v2932_v47  }
 0x4a7   : > { %4218 = vmatmul.msk.f32.gmra.mxu0 %vm328_vm1, %v318_v41  ;;  %v6780_v41 = vld [vmem:[%s7576_s5 + $0x188] sm:$0xff] }
 0x4a8   : > { %2951 = vperm.xlu2 %4327, %v2931_v60   ;;  %v6742_v60 = vld [vmem:[%s7576_s5 + $0x1b0] sm:$0xff] }
 0x4a9   : > { %825 = vperm.xlu0 %4325, %v666_v44   ;;  %v6736_v44 = vld [vmem:[%s7576_s5 + $0x1b8] sm:$0xff] }
 0x4aa   : > { %v2372_v38 = vpop.f32.mrf.mxu1 }
 0x4ab   : > { %v2373_v24 = vadd.f32 %v2372_v38, %v2338_v11  ;;  %v6748_v11 = vld [vmem:[%s7576_s5 + $0x1a8] sm:$0xff] }
 0x4ad   : > { %v2408_v31 = vadd.f32 %v2407_v10, %v2373_v24  ;;  %v2567_v24 = vld [vmem:[#allocation2 + $0xb0] sm:$0xff]  ;;  %v6754_v10 = vld [vmem:[%s7576_s5 + $0x1a0] sm:$0xff] }
 0x4af   : > { %v2415_v34 = vmax.f32 %v2408_v31, 0.0 }
 0x4b0   : > { %2961 = vperm.xlu2 %4327, %v2933_v16   ;;  %v3084_v16 = vld [vmem:[#allocation2 + $0xd9] sm:$0xff] }
 0x4b1   : > { %4549 = vrot.lane.b32.xlu0 %v4548_v27, %s4795_s14  ;;  %v2457_v4 = vmul.f32 %v6565_v58, %v2415_v34  ;;  %v668_v58 = vld [vmem:[%s7572_s1 + $0xf8] sm:$0xff] }
 0x4b2   : > { %v6762_v27 = vld [vmem:[%s7576_s5 + $0x198] sm:$0xff] }
 0x4b3   : > { %2524 = vmatpush.msrb.mxu3 %v2457_v4  ;;  %2463 = vxpose.xlu1.b32.end [6/6] (short) (narrow) %v2457_v4, 64 }
 0x4b5   : > { %2525 = vmatpush.msrb.mxu3 %v6576_v0  ;;  %v6681_v0 = vld [vmem:[%s7576_s5 + $0x1f8] sm:$0xff] }
 0x4b7   : > { %2526 = vmatpush.msrb.mxu3 %v6569_v52  ;;  %v319_v52 = vld [vmem:[%s4868_s18 + $0x140] sm:$0xff] }
 0x4b8   : > { %830 = vperm.xlu2 %4327, %v667_v20   ;;  %4219 = vmatmul.msk.f32.gmra.mxu0 %vm328_vm1, %v319_v52  ;;  %v2584_v52 = vld [vmem:[#allocation2 + $0xab] sm:$0xff] }
 0x4b9   : > { %2527 = vmatpush.msrb.mxu3 %v6561_v32  ;;  %v6688_v32 = vld [vmem:[%s7576_s5 + $0x1f0] sm:$0xff] }
 0x4bb   : > { %2528 = vmatpush.msrb.mxu3 %v6551_v6  ;;  %v6701_v6 = vld [vmem:[%s7576_s5 + $0x1e0] sm:$0xff] }
 0x4bd   : > { %2529 = vmatpush.msrb.mxu3 %v6542_v18  ;;  %v6695_v18 = vld [vmem:[%s7576_s5 + $0x1e8] sm:$0xff] }
 0x4bf   : > { %2852 = vmatpush.msra.mxu3 %v6681_v0 }
 0x4c0   : > { %835 = vperm.xlu2 %4327, %v668_v58   ;;  %v2568_v58 = vld [vmem:[#allocation2 + $0xb8] sm:$0xff] }
 0x4c1   : > { %2853 = vmatpush.msra.mxu3 %v6688_v32 }
 0x4c3   : > { %2854 = vmatpush.msra.mxu3 %v6695_v18 }
 0x4c5   : > { %2855 = vmatpush.msra.mxu3 %v6701_v6 }
 0x4c7   : > { %2856 = vmatpush.msra.mxu3 %v6707_v21 }
 0x4c8   : > { %3131 = vrot.lane.b32.xlu2 %v3083_v23, %s4795_s14 }
 0x4c9   : > { %2857 = vmatpush.msra.mxu3 %v6714_v53 }
 0x4ca   : > { %v4500_v48 = vpop.permute.xlu2 %4499 }
 0x4cb   : > { %2858 = vmatpush.msra.mxu3 %v6720_v8  ;;  %v4501_v47 = vunpack.i.l.bf16 %v4500_v48  ;;  %v4502_v42 = vunpack.i.h.bf16 %v4500_v48 }
 0x4cd   : > { %2859 = vmatpush.msra.mxu3 %v6726_v51  ;;  %v2708_v7 = vsel %vm924_vm2, %v2566_v1, %v4501_v47  ;;  %v2709_v31 = vsel %vm924_vm2, %v2567_v24, %v4502_v42  ;;  %v670_v47 = vld [vmem:[%s7572_s1 + $0x108] sm:$0xff]  ;;  %v6792_v1 = vld [vmem:[%s7576_s5 + $0x180] sm:$0xff]  ;;  %v2603_v24 = vld [vmem:[#allocation2 + $0xb6] sm:$0xff] }
 0x4ce   : > { %2772 = vmatmul.f32.gmra.mxu1 %v2708_v7 }
 0x4cf   : > { %2860 = vmatpush.msra.mxu3 %v6736_v44 }
 0x4d0   : > { %840 = vperm.xlu2 %4327, %v669_v45  }
 0x4d1   : > { %2861 = vmatpush.msra.mxu3 %v6742_v60 }
 0x4d2   : > { %v4505_v40 = vpop.permute.xlu2 %4504 }
 0x4d3   : > { %2862 = vmatpush.msra.mxu3 %v6748_v11  ;;  %v4506_v38 = vunpack.i.l.bf16 %v4505_v40  ;;  %v4507_v34 = vunpack.i.h.bf16 %v4505_v40  ;;  %v2575_v40 = vld [vmem:[#allocation2 + $0x92] sm:$0xff] }
 0x4d5   : > { %2863 = vmatpush.msra.mxu3 %v6754_v10  ;;  %v2717_v62 = vsel %vm924_vm2, %v2583_v28, %v4506_v38  ;;  %v2710_v23 = vsel %vm924_vm2, %v2568_v58, %v4507_v34  ;;  %v2576_v34 = vld [vmem:[#allocation2 + $0x9a] sm:$0xff] }
 0x4d6   : > { %2775 = vmatmul.f32.gmra.mxu1 %v2709_v31  ;;  %2833 = vmatmul.f32.vlgmr.msra.gmra.mxu2 %v2717_v62 }
 0x4d7   : > { %2864 = vmatpush.msra.mxu3 %v6762_v27  ;;  %3364 = vmatpush.msra.mxu2 %v6681_v0 }
 0x4d8   : > { %3133 = vrot.lane.b32.xlu2 %v3084_v16, %s4795_s14 }
 0x4d9   : > { %2865 = vmatpush.msra.mxu3 %v6770_v30  ;;  %3365 = vmatpush.msra.mxu2 %v6688_v32 }
 0x4da   : > { %v6774_v4 = vpop.permute.xlu2 %4514 }
 0x4db   : > { %v4516_v20 = vunpack.i.l.bf16 %v6774_v4  ;;  %2866 = vmatpush.msra.mxu3 %v6780_v41  ;;  %3366 = vmatpush.msra.mxu2 %v6695_v18 }
 0x4dd   : > { %v2718_v48 = vsel %vm924_vm2, %v2584_v52, %v4516_v20  ;;  %2867 = vmatpush.msra.mxu3 %v6792_v1  ;;  %3367 = vmatpush.msra.mxu2 %v6701_v6  ;;  %v2585_v20 = vld [vmem:[#allocation2 + $0xb3] sm:$0xff] }
 0x4de   : > { %2778 = vmatmul.f32.gmra.mxu1 %v2710_v23  ;;  %2836 = vmatmul.f32.gmra.mxu2 %v2718_v48 }
 0x4df   : > { %3368 = vmatpush.msra.mxu2 %v6707_v21 }
 0x4e0   : > { %845 = vperm.xlu2 %4327, %v670_v47  }
 0x4e1   : > { %3369 = vmatpush.msra.mxu2 %v6714_v53 }
 0x4e2   : > { %v6798_v7 = vpop.permute.xlu2 %4524 }
 0x4e3   : > { %v6800_v45 = vpop.permute.xlu0 %4509  ;;  %3370 = vmatpush.msra.mxu2 %v6720_v8 }
 0x4e4   : > { %v4512_v42 = vunpack.i.h.bf16 %v6800_v45 }
 0x4e5   : > { %3371 = vmatpush.msra.mxu2 %v6726_v51 }
 0x4e6   : > { %v2711_v38 = vsel %vm924_vm2, %v2575_v40, %v4512_v42  ;;  %4262 = vmatmul.msk.f32.vlgmr.msrb.gmra.mxu1 %vm924_vm2, %v2603_v24  ;;  %v2586_v42 = vld [vmem:[#allocation2 + $0xbb] sm:$0xff] }
 0x4e7   : > { %2798 = vmatmul.f32.vlgmr.msrb.gmra.mxu0 %v2711_v38  ;;  %3372 = vmatpush.msra.mxu2 %v6736_v44  ;;  %v6826_v40 = vld [vmem:[#allocation2 + $0xdc] sm:$0xff] }
 0x4e8   : > { %3771 = vmatpush.msrb.mxu1 %v6383_v15  ;;  %v2604_v15 = vld [vmem:[#allocation2 + $0xbe] sm:$0xff] }
 0x4e9   : > { %3373 = vmatpush.msra.mxu2 %v6742_v60 }
 0x4ea   : > { %3772 = vmatpush.msrb.mxu1 %v6389_v55  ;;  %v4535_v28 = vpop.permute.xlu2 %4534  ;;  %v4527_v55 = vunpack.i.h.bf16 %v6798_v7 }
 0x4eb   : > { %v4520_v31 = vpop.permute.xlu0 %4519  ;;  %3374 = vmatpush.msra.mxu2 %v6748_v11 }
 0x4ec   : > { %v4522_v62 = vunpack.i.h.bf16 %v4520_v31  ;;  %v4521_v16 = vunpack.i.l.bf16 %v4520_v31  ;;  %3773 = vmatpush.msrb.mxu1 %v6396_v49  ;;  %v4537_v31 = vunpack.i.h.bf16 %v4535_v28 }
 0x4ed   : > { %3375 = vmatpush.msra.mxu2 %v6754_v10 }
 0x4ee   : > { %v2712_v58 = vsel %vm924_vm2, %v2576_v34, %v4521_v16  ;;  %v2719_v52 = vsel %vm924_vm2, %v2585_v20, %v4522_v62  ;;  %4263 = vmatmul.msk.f32.gmra.mxu1 %vm924_vm2, %v2604_v15  ;;  %v2587_v34 = vld [vmem:[#allocation2 + $0xc3] sm:$0xff]  ;;  %v6842_v20 = vld [vmem:[#allocation2 + $0xd4] sm:$0xff] }
 0x4ef   : > { %2801 = vmatmul.f32.gmra.mxu0 %v2712_v58  ;;  %2839 = vmatmul.f32.gmra.mxu2 %v2719_v52  ;;  %v4736_v58 = vld [vmem:[%s7576_s5 + $0x38] sm:$0xff] }
 0x4f0   : > { %3376 = vmatpush.msra.mxu2 %v6762_v27  ;;  %3774 = vmatpush.msrb.mxu1 %v6402_v22  ;;  %v2713_v22 = vsel %vm924_vm2, %v6582_v56, %v4527_v55 }
 0x4f2   : > { %3377 = vmatpush.msra.mxu2 %v6770_v30  ;;  %v4545_v49 = vpop.permute.xlu2 %4544  ;;  %3775 = vmatpush.msrb.mxu1 %v6414_v35  ;;  %v2605_v35 = vld [vmem:[#allocation2 + $0xc6] sm:$0xff] }
 0x4f3   : > { %v6821_v23 = vpop.permute.xlu0 %4529  ;;  %v4547_v48 = vunpack.i.h.bf16 %v4545_v49  ;;  %v4546_v55 = vunpack.i.l.bf16 %v4545_v49  ;;  %v2607_v49 = vld [vmem:[#allocation2 + $0xd6] sm:$0xff] }
 0x4f4   : > { %v4531_v47 = vunpack.i.l.bf16 %v6821_v23  ;;  %3378 = vmatpush.msra.mxu2 %v6780_v41  ;;  %3776 = vmatpush.msrb.mxu1 %v6422_v43  ;;  %v4536_v43 = vunpack.i.l.bf16 %v4535_v28  ;;  %v560_v28 = vpop.f32.mrf.mxu0 }
 0x4f5   : > { %v6834_v24 = vsel %vm924_vm2, %v6826_v40, %v4547_v48 }
 0x4f6   : > { %v2720_v38 = vsel %vm924_vm2, %v2586_v42, %v4531_v47  ;;  %3379 = vmatpush.msra.mxu2 %v6792_v1  ;;  %4264 = vmatmul.msk.f32.gmra.mxu1 %vm924_vm2, %v2605_v35  ;;  %v2714_v52 = vsel %vm924_vm2, %v6592_v5, %v4536_v43  ;;  %v4737_v5 = vld [vmem:[%s7576_s5 + $0x28] sm:$0xff]  ;;  %v4739_v43 = vld [vmem:[%s7576_s5 + $0x18] sm:$0xff] }
 0x4f7   : > { %2804 = vmatmul.f32.gmra.mxu0 %v2713_v22  ;;  %2842 = vmatmul.f32.gmra.mxu2 %v2720_v38  ;;  %v2588_v22 = vld [vmem:[#allocation2 + $0xcb] sm:$0xff]  ;;  %v4738_v38 = vld [vmem:[%s7576_s5 + $0x20] sm:$0xff] }
 0x4f8   : > { %3777 = vmatpush.msrb.mxu1 %v6428_v25  ;;  %v2721_v25 = vsel %vm924_vm2, %v2587_v34, %v4537_v31 }
 0x4fa   : > { %v6839_v62 = vpop.permute.xlu2 %2941  ;;  %3778 = vmatpush.msrb.mxu1 %v6434_v39  ;;  %v2606_v39 = vld [vmem:[#allocation2 + $0xce] sm:$0xff] }
 0x4fb   : > { %v4540_v56 = vpop.permute.xlu0 %4539 }
 0x4fc   : > { %v4541_v16 = vunpack.i.l.bf16 %v4540_v56  ;;  %3779 = vmatpush.msrb.mxu1 %v4736_v58  ;;  %v4542_v48 = vunpack.i.h.bf16 %v4540_v56  ;;  %v563_v31 = vpop.f32.mrf.mxu0  ;;  %v4741_v58 = vld [vmem:[%s7576_s5 + $0x8] sm:$0xff] }
 0x4fd   : > { %v564_v34 = vadd.f32 %v6317_v63, %v563_v31 }
 0x4fe   : > { %v6852_v15 = vsel %vm924_vm2, %v6842_v20, %v4541_v16  ;;  %4265 = vmatmul.msk.f32.gmra.mxu1 %vm924_vm2, %v2606_v39  ;;  %v2715_v35 = vsel %vm924_vm2, %v6611_v54, %v4542_v48  ;;  %v4740_v54 = vld [vmem:[%s7576_s5 + $0x10] sm:$0xff]  ;;  %v4742_v39 = vld [vmem:[%s7576_s5] sm:$0xff] }
 0x4ff   : > { %2807 = vmatmul.f32.gmra.mxu0 %v2714_v52  ;;  %2845 = vmatmul.f32.gmra.mxu2 %v2721_v25  ;;  %v2608_v25 = vld [vmem:[#allocation2 + $0xde] sm:$0xff] }
 0x500   : > { %3780 = vmatpush.msrb.mxu1 %v6447_v12  ;;  %v2722_v12 = vsel %vm924_vm2, %v2588_v22, %v4546_v55  ;;  %v626_v55 = vmax.f32 %v564_v34, 0.0  ;;  %v6893_v22 = vld [vmem:[%s7575_s4] ss:$0 sm:$0xff] }
 0x502   : > { %v6856_v47 = vpop.permute.xlu2 %2951  ;;  %3781 = vmatpush.msrb.mxu1 %v4737_v5 }
 0x503   : > { %v2650_v42 = vpop.permute.xlu0 %2649 }
 0x504   : > { %3782 = vmatpush.msrb.mxu1 %v4738_v38  ;;  %v2716_v52 = vsel %vm924_vm2, %v6617_v50, %v2650_v42  ;;  %v566_v48 = vpop.f32.mrf.mxu0  ;;  %v561_v50 = vadd.f32 %v6893_v22, %v560_v28 }
 0x505   : > { %v567_v38 = vadd.f32 %v6893_v22, %v566_v48 }
 0x506   : > { %4266 = vmatmul.msk.f32.gmra.mxu1 %vm924_vm2, %v2607_v49 }
 0x507   : > { %2810 = vmatmul.f32.gmra.mxu0 %v2715_v35  ;;  %2848 = vmatmul.f32.gmra.mxu2 %v2722_v12  ;;  %v625_v35 = vmax.f32 %v561_v50, 0.0  ;;  %v627_v12 = vmax.f32 %v567_v38, 0.0 }
 0x508   : > { %3783 = vmatpush.msrb.mxu1 %v4739_v43  ;;  %v2928_v43 = vld [vmem:[%s7573_s2 + $0x90] sm:$0xff] }
 0x50a   : > { %v6871_v56 = vpop.permute.xlu2 %2961  ;;  %3784 = vmatpush.msrb.mxu1 %v4740_v54 }
 0x50b   : > { %v6873_v16 = vpop.permute.xlu0 %2946 }
 0x50c   : > { %3785 = vmatpush.msrb.mxu1 %v4741_v58  ;;  %v569_v28 = vpop.f32.mrf.mxu0 }
 0x50e   : > { %3786 = vmatpush.msrb.mxu1 %v4742_v39 }
 0x50f   : > { %2813 = vmatmul.f32.gmra.mxu0 %v2716_v52  ;;  %4267 = vmatmul.msk.f32.gmra.mxu1 %vm924_vm2, %v2608_v25  ;;  %v570_v25 = vadd.f32 %v6893_v22, %v569_v28 }
 0x511   : > { %v628_v38 = vmax.f32 %v570_v25, 0.0 }
 0x512   : > { %v831_v63 = vpop.permute.xlu2 %830 }
 0x513   : > { %v6888_v5 = vpop.permute.xlu0 %2956  ;;  %v913_v42 = vmul.f32 %v831_v63, %v626_v55  ;;  %v3075_v55 = vld [vmem:[#allocation2 + $0xc0] sm:$0xff] }
 0x515   : > { %955 = vst.msk [vmem:[#allocation2 + $0xf0] sm:$0xff] %vm924_vm2, %v913_v42 }
 0x51a   : > { %v836_v49 = vpop.permute.xlu2 %835 }
 0x51b   : > { %v826_v31 = vpop.permute.xlu0 %825  ;;  %v914_v54 = vmul.f32 %v836_v49, %v627_v12  ;;  %v4745_v49 = vld [vmem:[%s7576_s5 + $0xf0] sm:$0xff] }
 0x51c   : > { %v912_v34 = vmul.f32 %v826_v31, %v625_v35  ;;  %v4744_v35 = vld [vmem:[%s7576_s5 + $0xf8] sm:$0xff] }
 0x51d   : > { %956 = vst.msk [vmem:[#allocation2 + $0xf8] sm:$0xff] %vm924_vm2, %v914_v54  ;;  %2936 = vperm.xlu1 %4326, %v2928_v43   ;;  %v4746_v54 = vld [vmem:[%s7576_s5 + $0xe8] sm:$0xff] }
 0x51e   : > { %954 = vst.msk [vmem:[#allocation2 + $0xe8] sm:$0xff] %vm924_vm2, %v912_v34  ;;  %v3076_v34 = vld [vmem:[#allocation2 + $0xc8] sm:$0xff] }
 0x522   : > { %v3132_v58 = vpop.permute.xlu2 %3131 }
 0x523   : > { %v4550_v52 = vpop.permute.xlu0 %4549 }
 0x524   : > { %v4551_v39 = vunpack.i.l.bf16 %v4550_v52  ;;  %v4552_v12 = vunpack.i.h.bf16 %v4550_v52  ;;  %v4747_v52 = vld [vmem:[%s7576_s5 + $0xe0] sm:$0xff] }
 0x525   : > { %v3085_v48 = vld [vmem:[#allocation2 + $0xe1] sm:$0xff]  ;;  %v3110_v50 = vld [vmem:[#allocation2 + $0xed] sm:$0xff] }
 0x526   : > { %v3217_v63 = vsel %vm924_vm2, %v3075_v55, %v4551_v39  ;;  %3135 = vrot.lane.b32.xlu2 %v3085_v48, %s4795_s14  ;;  %v4563_v42 = vpack.i.bf16 %v3110_v50, %v6842_v20  ;;  %v671_v20 = vld [vmem:[%s7572_s1 + $0x110] sm:$0xff]  ;;  %v3218_v28 = vsel %vm924_vm2, %v3076_v34, %v4552_v12  ;;  %v4748_v39 = vld [vmem:[%s7576_s5 + $0xd8] sm:$0xff]  ;;  %v4750_v12 = vld [vmem:[%s7576_s5 + $0xc8] sm:$0xff] }
 0x527   : > { %3275 = vmatmul.f32.vlgmr.msrb.gmra.mxu2 %v3217_v63  ;;  %v3086_v55 = vld [vmem:[#allocation2 + $0xe9] sm:$0xff]  ;;  %v572_v63 = vpop.f32.mrf.mxu0 }
 0x528   : > { %3806 = vmatpush.msrb.mxu2 %v4744_v35  ;;  %4564 = vrot.lane.b32.xlu1 %v4563_v42, %s4795_s14  ;;  %v4749_v48 = vld [vmem:[%s7576_s5 + $0xd0] sm:$0xff]  ;;  %v573_v42 = vadd.f32 %v6893_v22, %v572_v63 }
 0x52a   : > { %3807 = vmatpush.msrb.mxu2 %v4745_v49  ;;  %v841_v31 = vpop.permute.xlu2 %840 }
 0x52b   : > { %v915_v43 = vmul.f32 %v841_v31, %v628_v38  ;;  %v6933_v38 = vld [vmem:[#allocation2 + $0xd2] sm:$0xff] }
 0x52c   : > { %3808 = vmatpush.msrb.mxu2 %v4746_v54  ;;  %v4553_v31 = vpack.i.bf16 %v6933_v38, %v3086_v55 }
 0x52d   : > { %957 = vst.msk [vmem:[#allocation2 + $0x100] sm:$0xff] %vm924_vm2, %v915_v43  ;;  %v6939_v43 = vld [vmem:[#allocation2 + $0xe4] sm:$0xff] }
 0x52e   : > { %3809 = vmatpush.msrb.mxu2 %v4747_v52  ;;  %850 = vperm.xlu2 %4327, %v671_v20  }
 0x52f   : > { %3278 = vmatmul.f32.gmra.mxu2 %v3218_v28  ;;  %v2474_v25 = vpop.trf.xlu1 }
 0x530   : > { %3810 = vmatpush.msrb.mxu2 %v4748_v39  ;;  %4254 = vmatmul.msk.f32.vlgmr.msrb.gmra.mxu3 %vm1888_vm3, %v2474_v25  ;;  %v629_v25 = vmax.f32 %v573_v42, 0.0 }
 0x531   : > { %3294 = vmatpush.msrb.mxu3 %v4744_v35  ;;  %v3077_v35 = vld [vmem:[#allocation2 + $0xd0] sm:$0xff] }
 0x532   : > { %3811 = vmatpush.msrb.mxu2 %v4749_v48  ;;  %v3134_v50 = vpop.permute.xlu2 %3133  ;;  %v3219_v34 = vsel %vm924_vm2, %v3077_v35, %v3132_v58  ;;  %v4752_v58 = vld [vmem:[%s7576_s5 + $0xb8] sm:$0xff] }
 0x533   : > { %3295 = vmatpush.msrb.mxu3 %v4745_v49  ;;  %v4751_v49 = vld [vmem:[%s7576_s5 + $0xc0] sm:$0xff] }
 0x534   : > { %3812 = vmatpush.msrb.mxu2 %v4750_v12  ;;  %v3112_v20 = vld [vmem:[#allocation2 + $0xfd] sm:$0xff] }
 0x535   : > { %v4578_v28 = vpack.i.bf16 %v3112_v20, %v6939_v43  ;;  %3296 = vmatpush.msrb.mxu3 %v4746_v54  ;;  %v3109_v54 = vld [vmem:[#allocation2 + $0xe5] sm:$0xff]  ;;  %v6955_v35 = vld [vmem:[#allocation2 + $0xda] sm:$0xff] }
 0x536   : > { %3813 = vmatpush.msrb.mxu2 %v4751_v49  ;;  %4554 = vrot.lane.b32.xlu2 %v4553_v31, %s4795_s14  ;;  %v4753_v31 = vld [vmem:[%s7576_s5 + $0xb0] sm:$0xff]  ;;  %v3078_v20 = vld [vmem:[#allocation2 + $0xd8] sm:$0xff] }
 0x537   : > { %3281 = vmatmul.f32.gmra.mxu2 %v3219_v34  ;;  %4579 = vrot.lane.b32.xlu1 %v4578_v28, %s4795_s14  ;;  %v2475_v55 = vpop.trf.xlu1  ;;  %v4754_v34 = vld [vmem:[%s7576_s5 + $0xa8] sm:$0xff] }
 0x538   : > { %3297 = vmatpush.msrb.mxu3 %v4747_v52  ;;  %3814 = vmatpush.msrb.mxu2 %v4752_v58  ;;  %v4558_v52 = vpack.i.bf16 %v6955_v35, %v3109_v54 }
 0x539   : > { %4255 = vmatmul.msk.f32.gmra.mxu3 %vm1888_vm3, %v2475_v55  ;;  %v3094_v55 = vld [vmem:[#allocation2 + $0xfa] sm:$0xff] }
 0x53a   : > { %3298 = vmatpush.msrb.mxu3 %v4748_v39  ;;  %v846_v63 = vpop.permute.xlu2 %845  ;;  %3815 = vmatpush.msrb.mxu2 %v4753_v31  ;;  %v3220_v39 = vsel %vm924_vm2, %v3078_v20, %v3134_v50  ;;  %v4756_v50 = vld [vmem:[%s7576_s5 + $0x98] sm:$0xff] }
 0x53b   : > { %v916_v42 = vmul.f32 %v846_v63, %v629_v25  ;;  %v6968_v25 = vld [vmem:[#allocation2 + $0xe2] sm:$0xff] }
 0x53c   : > { %3299 = vmatpush.msrb.mxu3 %v4749_v48  ;;  %3816 = vmatpush.msrb.mxu2 %v4754_v34  ;;  %v4755_v48 = vld [vmem:[%s7576_s5 + $0xa0] sm:$0xff] }
 0x53d   : > { %958 = vst.msk [vmem:[#allocation2 + $0x108] sm:$0xff] %vm924_vm2, %v916_v42  ;;  %v3093_v42 = vld [vmem:[#allocation2 + $0xf2] sm:$0xff] }
 0x53e   : > { %3300 = vmatpush.msrb.mxu3 %v4750_v12  ;;  %4559 = vrot.lane.b32.xlu2 %v4558_v52, %s4795_s14  ;;  %v4757_v12 = vld [vmem:[%s7576_s5 + $0x90] sm:$0xff] }
 0x53f   : > { %3284 = vmatmul.f32.gmra.mxu2 %v3220_v39  ;;  %v2476_v28 = vpop.trf.xlu1  ;;  %v6987_v52 = vld [vmem:[#allocation2 + $0xec] sm:$0xff]  ;;  %v6992_v39 = vld [vmem:[#allocation2 + $0xf4] sm:$0xff] }
 0x540   : > { %3301 = vmatpush.msrb.mxu3 %v4751_v49  ;;  %3817 = vmatpush.msrb.mxu2 %v4755_v48  ;;  %v4568_v49 = vpack.i.bf16 %v6826_v40, %v6968_v25  ;;  %v4759_v40 = vld [vmem:[%s7576_s5 + $0x80] sm:$0xff]  ;;  %v4583_v20 = vpack.i.bf16 %v6987_v52, %v3093_v42 }
 0x541   : > { %4256 = vmatmul.msk.f32.gmra.mxu3 %vm1888_vm3, %v2476_v28  ;;  %v673_v42 = vld [vmem:[%s7572_s1 + $0x120] sm:$0xff] }
 0x542   : > { %3302 = vmatpush.msrb.mxu3 %v4752_v58  ;;  %3818 = vmatpush.msrb.mxu2 %v4756_v50  ;;  %v4758_v58 = vld [vmem:[%s7576_s5 + $0x88] sm:$0xff] }
 0x544   : > { %3303 = vmatpush.msrb.mxu3 %v4753_v31  ;;  %3819 = vmatpush.msrb.mxu2 %v4757_v12  ;;  %v3113_v54 = vld [vmem:[#allocation2 + $0x105] sm:$0xff] }
 0x545   : > { %v4588_v63 = vpack.i.bf16 %v3094_v55, %v3113_v54  ;;  %v4511_v55 = vunpack.i.l.bf16 %v6800_v45  ;;  %v3443_v54 = vld [vmem:[%s7573_s2 + $0xd8] sm:$0xff]  ;;  %v4526_v45 = vunpack.i.l.bf16 %v6798_v7 }
 0x546   : > { %3304 = vmatpush.msrb.mxu3 %v4754_v34  ;;  %3820 = vmatpush.msrb.mxu2 %v4758_v58 }
 0x547   : > { %4569 = vrot.lane.b32.xlu2 %v4568_v49, %s4795_s14  ;;  %4589 = vrot.lane.b32.xlu1 %v4588_v63, %s4795_s14  ;;  %v2477_v31 = vpop.trf.xlu1  ;;  %v2723_v63 = vsel %vm924_vm2, %v6590_v26, %v4511_v55  ;;  %v2725_v26 = vsel %vm924_vm2, %v6619_v13, %v4526_v45 }
 0x548   : > { %3305 = vmatpush.msrb.mxu3 %v4755_v48  ;;  %3821 = vmatpush.msrb.mxu2 %v4759_v40  ;;  %v6997_v48 = vld [vmem:[#allocation2 + $0xfc] sm:$0xff] }
 0x549   : > { %4257 = vmatmul.msk.f32.gmra.mxu3 %vm1888_vm3, %v2477_v31  ;;  %v3445_v31 = vld [vmem:[%s7573_s2 + $0xe8] sm:$0xff] }
 0x54a   : > { %3306 = vmatpush.msrb.mxu3 %v4756_v50 }
 0x54c   : > { %3307 = vmatpush.msrb.mxu3 %v4757_v12  ;;  %v3441_v12 = vld [vmem:[%s7573_s2 + $0xc8] sm:$0xff] }
 0x54e   : > { %3308 = vmatpush.msrb.mxu3 %v4758_v58  ;;  %v4517_v58 = vunpack.i.h.bf16 %v6774_v4  ;;  %v575_v4 = vpop.f32.mrf.mxu0 }
 0x54f   : > { %4584 = vrot.lane.b32.xlu2 %v4583_v20, %s4795_s14  ;;  %v2478_v34 = vpop.trf.xlu1 }
 0x550   : > { %3309 = vmatpush.msrb.mxu3 %v4759_v40  ;;  %v2724_v40 = vsel %vm924_vm2, %v6601_v46, %v4517_v58  ;;  %v4532_v46 = vunpack.i.h.bf16 %v6821_v23 }
 0x551   : > { %4258 = vmatmul.msk.f32.gmra.mxu3 %vm1888_vm3, %v2478_v34  ;;  %v3079_v34 = vld [vmem:[#allocation2 + $0xe0] sm:$0xff] }
 0x557   : > { %3183 = vrot.lane.b32.xlu2 %v6992_v39, %s4795_s14  ;;  %v2479_v28 = vpop.trf.xlu1 }
 0x559   : > { %4259 = vmatmul.msk.f32.gmra.mxu3 %vm1888_vm3, %v2479_v28  ;;  %v576_v28 = vadd.f32 %v6893_v22, %v575_v4 }
 0x55b   : > { %v630_v7 = vmax.f32 %v576_v28, 0.0 }
 0x55f   : > { %3185 = vrot.lane.b32.xlu2 %v6997_v48, %s4795_s14  ;;  %v2480_v50 = vpop.trf.xlu1 }
 0x561   : > { %4260 = vmatmul.msk.f32.gmra.mxu3 %vm1888_vm3, %v2480_v50 }
 0x567   : > { %3453 = vperm.xlu2 %4327, %v3441_v12   ;;  %v2481_v49 = vpop.trf.xlu1  ;;  %v2726_v12 = vsel %vm924_vm2, %v6630_v2, %v4532_v46  ;;  %v3440_v2 = vld [vmem:[%s7573_s2 + $0xc0] sm:$0xff]  ;;  %v3442_v46 = vld [vmem:[%s7573_s2 + $0xd0] sm:$0xff] }
 0x569   : > { %4261 = vmatmul.msk.f32.gmra.mxu3 %vm1888_vm3, %v2481_v49 }
 0x56f   : > { %3463 = vperm.xlu2 %4327, %v3443_v54  }
 0x571   : > { %2868 = vmatmul.f32.vlgmr.msra.gmra.mxu3 %v2723_v63 }
 0x577   : > { %3473 = vperm.xlu2 %4327, %v3445_v31   ;;  %v3080_v31 = vld [vmem:[#allocation2 + $0xe8] sm:$0xff] }
 0x579   : > { %2871 = vmatmul.f32.gmra.mxu3 %v2724_v40 }
 0x57f   : > { %860 = vperm.xlu2 %4327, %v673_v42  }
 0x580   : > { %v3136_v20 = vpop.permute.xlu2 %3135 }
 0x581   : > { %2874 = vmatmul.f32.gmra.mxu3 %v2725_v26  ;;  %v3221_v50 = vsel %vm924_vm2, %v3079_v34, %v3136_v20  ;;  %v3095_v20 = vld [vmem:[#allocation2 + $0xd3] sm:$0xff] }
 0x582   : > { %3287 = vmatmul.f32.gmra.mxu2 %v3221_v50 }
 0x588   : > { %v851_v49 = vpop.permute.xlu2 %850 }
 0x589   : > { %2877 = vmatmul.f32.gmra.mxu3 %v2726_v12  ;;  %v917_v55 = vmul.f32 %v851_v49, %v630_v7  ;;  %v7052_v49 = vpop.f32.mrf.mxu0 }
 0x58b   : > { %959 = vst.msk [vmem:[#allocation2 + $0x110] sm:$0xff] %vm924_vm2, %v917_v55 }
 0x58f   : > { %v7031_v63 = vpop.permute.xlu1 %2936 }
 0x590   : > { %v4555_v13 = vpop.permute.xlu2 %4554 }
 0x591   : > { %2880 = vmatmul.f32.gmra.mxu3 %v6852_v15  ;;  %v4556_v54 = vunpack.i.l.bf16 %v4555_v13  ;;  %v4557_v15 = vunpack.i.h.bf16 %v4555_v13 }
 0x592   : > { %v3114_v58 = vld [vmem:[#allocation2 + $0x10d] sm:$0xff] }
 0x593   : > { %3209 = vrot.lane.b32.xlu1 %v3114_v58, %s4795_s14  ;;  %v3222_v23 = vsel %vm924_vm2, %v3080_v31, %v4556_v54  ;;  %v3097_v54 = vld [vmem:[#allocation2 + $0xe3] sm:$0xff]  ;;  %v7074_v31 = vpop.f32.mrf.mxu1 }
 0x594   : > { %3290 = vmatmul.f32.gmra.mxu2 %v3222_v23  ;;  %v672_v23 = vld [vmem:[%s7572_s1 + $0x118] sm:$0xff] }
 0x598   : > { %v4560_v40 = vpop.permute.xlu2 %4559 }
 0x599   : > { %2883 = vmatmul.f32.gmra.mxu3 %v6834_v24  ;;  %v4561_v45 = vunpack.i.l.bf16 %v4560_v40  ;;  %v3223_v24 = vsel %vm924_vm2, %v6609_v33, %v4557_v15  ;;  %v3096_v33 = vld [vmem:[#allocation2 + $0xdb] sm:$0xff] }
 0x59a   : > { %v4565_v42 = vpop.permute.xlu1 %4564 }
 0x59b   : > { %v4566_v26 = vunpack.i.l.bf16 %v4565_v42  ;;  %3448 = vperm.xlu1 %4326, %v3440_v2   ;;  %v3235_v4 = vsel %vm924_vm2, %v6939_v43, %v4561_v45  ;;  %v4567_v28 = vunpack.i.h.bf16 %v4565_v42  ;;  %v4562_v43 = vunpack.i.h.bf16 %v4560_v40  ;;  %v3594_v40 = vld [vmem:[#allocation2 + $0xf9] sm:$0xff]  ;;  %v3593_v45 = vld [vmem:[#allocation2 + $0xf1] sm:$0xff] }
 0x59c   : > { %3380 = vmatmul.f32.vlgmr.msra.gmra.mxu2 %v3235_v4  ;;  %v4593_v15 = vpack.i.bf16 %v3594_v40, %v3593_v45  ;;  %v674_v4 = vld [vmem:[%s7572_s1 + $0x128] sm:$0xff]  ;;  %v7135_v40 = vld [vmem:[%s7577_s6] ss:$0 sm:$0xff] }
 0x59d   : > { %v3229_v34 = vsel %vm924_vm2, %v3095_v20, %v4566_v26  ;;  %v3236_v12 = vsel %vm924_vm2, %v6987_v52, %v4567_v28  ;;  %v3224_v55 = vsel %vm924_vm2, %v6623_v19, %v4562_v43  ;;  %v3099_v26 = vld [vmem:[#allocation2 + $0xf3] sm:$0xff]  ;;  %v3100_v28 = vld [vmem:[#allocation2 + $0xfb] sm:$0xff] }
 0x59e   : > { %3345 = vmatmul.f32.vlgmr.msra.gmra.mxu1 %v3229_v34 }
 0x59f   : > { %3876 = vmatpush.msra.mxu1 %v6681_v0 }
 0x5a1   : > { %v4570_v50 = vpop.permute.xlu2 %4569  ;;  %3310 = vmatmul.f32.vlgmr.msrb.gmra.mxu3 %v3223_v24  ;;  %3877 = vmatpush.msra.mxu1 %v6688_v32 }
 0x5a2   : > { %v4572_v7 = vunpack.i.h.bf16 %v4570_v50 }
 0x5a3   : > { %3458 = vperm.xlu1 %4326, %v3442_v46   ;;  %3878 = vmatpush.msra.mxu1 %v6695_v18  ;;  %v3444_v18 = vld [vmem:[%s7573_s2 + $0xe0] sm:$0xff] }
 0x5a4   : > { %3383 = vmatmul.f32.gmra.mxu2 %v3236_v12  ;;  %v3230_v0 = vsel %vm924_vm2, %v3096_v33, %v4572_v7  ;;  %v675_v12 = vld [vmem:[%s7572_s1 + $0x130] sm:$0xff] }
 0x5a5   : > { %3879 = vmatpush.msra.mxu1 %v6701_v6  ;;  %v4571_v6 = vunpack.i.l.bf16 %v4570_v50 }
 0x5a6   : > { %3348 = vmatmul.f32.gmra.mxu1 %v3230_v0 }
 0x5a7   : > { %3880 = vmatpush.msra.mxu1 %v6707_v21  ;;  %v581_v21 = vpop.f32.mrf.mxu0  ;;  %v3225_v58 = vsel %vm924_vm2, %v6933_v38, %v4571_v6  ;;  %v3098_v38 = vld [vmem:[#allocation2 + $0xeb] sm:$0xff] }
 0x5a8   : > { %v582_v33 = vadd.f32 %v6893_v22, %v581_v21 }
 0x5a9   : > { %v7059_v32 = vpop.permute.xlu2 %4584  ;;  %3313 = vmatmul.f32.gmra.mxu3 %v3224_v55  ;;  %v7064_v52 = vpop.permute.xlu1 %4579  ;;  %3881 = vmatpush.msra.mxu1 %v6714_v53 }
 0x5aa   : > { %v4581_v13 = vunpack.i.l.bf16 %v7064_v52 }
 0x5ab   : > { %3468 = vperm.xlu1 %4326, %v3444_v18   ;;  %3882 = vmatpush.msra.mxu1 %v6720_v8  ;;  %v4587_v8 = vunpack.i.h.bf16 %v7059_v32  ;;  %v632_v18 = vmax.f32 %v582_v33, 0.0 }
 0x5ac   : > { %v3231_v19 = vsel %vm924_vm2, %v3097_v54, %v4581_v13 }
 0x5ad   : > { %3883 = vmatpush.msra.mxu1 %v6726_v51 }
 0x5ae   : > { %3351 = vmatmul.f32.gmra.mxu1 %v3231_v19 }
 0x5af   : > { %3884 = vmatpush.msra.mxu1 %v6736_v44  ;;  %v3232_v44 = vsel %vm924_vm2, %v3098_v38, %v4587_v8  ;;  %v7087_v42 = vpop.f32.mrf.mxu0  ;;  %v2834_v8 = vpop.f32.mrf.mxu2 }
 0x5b1   : > { %v3184_v53 = vpop.permute.xlu2 %3183  ;;  %3316 = vmatmul.f32.gmra.mxu3 %v3225_v58  ;;  %3885 = vmatpush.msra.mxu1 %v6742_v60  ;;  %v2767_v60 = vpop.f32.mrf.mxu1 }
 0x5b3   : > { %855 = vperm.xlu1 %4326, %v672_v23   ;;  %v7081_v51 = vpop.f32.mrf.mxu3  ;;  %3886 = vmatpush.msra.mxu1 %v6748_v11 }
 0x5b5   : > { %3887 = vmatpush.msra.mxu1 %v6754_v10  ;;  %v3233_v10 = vsel %vm924_vm2, %v3099_v26, %v3184_v53 }
 0x5b6   : > { %3354 = vmatmul.f32.gmra.mxu1 %v3232_v44 }
 0x5b7   : > { %3888 = vmatpush.msra.mxu1 %v6762_v27  ;;  %v2837_v26 = vpop.f32.mrf.mxu2 }
 0x5b9   : > { %v3186_v2 = vpop.permute.xlu2 %3185  ;;  %3889 = vmatpush.msra.mxu1 %v6770_v30  ;;  %v7101_v30 = vpop.f32.mrf.mxu0 }
 0x5ba   : > { %v2770_v34 = vpop.f32.mrf.mxu1 }
 0x5bb   : > { %4594 = vrot.lane.b32.xlu1 %v4593_v15, %s4795_s14  ;;  %3890 = vmatpush.msra.mxu1 %v6780_v41  ;;  %v3234_v41 = vsel %vm924_vm2, %v3100_v28, %v3186_v2  ;;  %v2765_v2 = vadd.f32 %v7135_v40, %v7074_v31  ;;  %v2771_v31 = vadd.f32 %v7135_v40, %v2770_v34 }
 0x5bc   : > { %v7091_v11 = vpop.f32.mrf.mxu3 }
 0x5bd   : > { %3891 = vmatpush.msra.mxu1 %v6792_v1  ;;  %v3595_v1 = vld [vmem:[#allocation2 + $0x101] sm:$0xff] }
 0x5be   : > { %3357 = vmatmul.f32.gmra.mxu1 %v3233_v10 }
 0x5c1   : > { %v7096_v27 = vpop.permute.xlu2 %3453  ;;  %v7111_v7 = vpop.f32.mrf.mxu0 }
 0x5c2   : > { %v2773_v46 = vpop.f32.mrf.mxu1 }
 0x5c3   : > { %865 = vperm.xlu1 %4326, %v674_v4   ;;  %v2768_v4 = vadd.f32 %v7135_v40, %v2767_v60 }
 0x5c4   : > { %v7103_v20 = vpop.f32.mrf.mxu3 }
 0x5c6   : > { %3360 = vmatmul.f32.gmra.mxu1 %v3234_v41 }
 0x5c9   : > { %v7106_v24 = vpop.permute.xlu2 %3463  ;;  %v7121_v13 = vpop.f32.mrf.mxu0 }
 0x5ca   : > { %v2776_v55 = vpop.f32.mrf.mxu1 }
 0x5cb   : > { %3643 = vrot.lane.b32.xlu1 %v3595_v1, %s4795_s14 }
 0x5cc   : > { %v7109_v50 = vpop.f32.mrf.mxu3 }
 0x5d1   : > { %v7113_v43 = vpop.permute.xlu2 %3473  ;;  %v2799_v53 = vpop.f32.mrf.mxu0 }
 0x5d2   : > { %v7126_v58 = vpop.f32.mrf.mxu1  ;;  %v2800_v45 = vadd.f32 %v2799_v53, %v2765_v2 }
 0x5d3   : > { %870 = vperm.xlu1 %4326, %v675_v12  }
 0x5d4   : > { %v7119_v0 = vpop.f32.mrf.mxu3  ;;  %v2835_v15 = vadd.f32 %v2834_v8, %v2800_v45  ;;  %v7145_v8 = vpop.permute.xlu1 %4589 }
 0x5d5   : > { %7639 = vst [vmem:[#allocation4_spill] sm:$0xff] %v7119_v0 }
 0x5d9   : > { %v861_v6 = vpop.permute.xlu2 %860  ;;  %v2802_v38 = vpop.f32.mrf.mxu0 }
 0x5da   : > { %v919_v54 = vmul.f32 %v861_v6, %v632_v18  ;;  %v2904_v21 = vpop.f32.mrf.mxu1  ;;  %v2803_v12 = vadd.f32 %v2802_v38, %v2768_v4 }
 0x5dc   : > { %961 = vst.msk [vmem:[#allocation2 + $0x120] sm:$0xff] %vm924_vm2, %v919_v54  ;;  %v7124_v19 = vpop.f32.mrf.mxu3  ;;  %v2838_v54 = vadd.f32 %v2837_v26, %v2803_v12  ;;  %v2774_v26 = vadd.f32 %v7135_v40, %v2773_v46  ;;  %v2777_v46 = vadd.f32 %v7135_v40, %v2776_v55 }
 0x5dd   : > { %7640 = vst [vmem:[#allocation6_spill] sm:$0xff] %v7124_v19 }
 0x5e1   : > { %v2805_v1 = vpop.f32.mrf.mxu0 }
 0x5e2   : > { %v2907_v28 = vpop.f32.mrf.mxu1  ;;  %v2806_v60 = vadd.f32 %v2805_v1, %v2771_v31 }
 0x5e4   : > { %v7128_v23 = vpop.f32.mrf.mxu3 }
 0x5e5   : > { %7641 = vst [vmem:[#allocation7_spill] sm:$0xff] %v7128_v23 }
 0x5ea   : > { %v2910_v2 = vpop.f32.mrf.mxu1 }
 0x5ec   : > { %v7130_v44 = vpop.f32.mrf.mxu3 }
 0x5ed   : > { %7642 = vst [vmem:[#allocation8_spill] sm:$0xff] %v7130_v44  ;;  %v2840_v44 = vpop.f32.mrf.mxu2 }
 0x5f4   : > { %v2869_v10 = vpop.f32.mrf.mxu3 }
 0x5f5   : > { %v2870_v41 = vadd.f32 %v2869_v10, %v2835_v15  ;;  %v2808_v15 = vpop.f32.mrf.mxu0  ;;  %v2841_v10 = vadd.f32 %v2840_v44, %v2806_v60 }
 0x5f6   : > { %v2809_v12 = vadd.f32 %v2808_v15, %v2774_v26 }
 0x5f7   : > { %v2905_v33 = vadd.f32 %v2904_v21, %v2870_v41  ;;  %v2843_v41 = vpop.f32.mrf.mxu2 }
 0x5f8   : > { %v2844_v44 = vadd.f32 %v2843_v41, %v2809_v12 }
 0x5f9   : > { %v2922_v18 = vmax.f32 %v2905_v33, 0.0 }
 0x5fb   : > { %v7141_v6 = vmul.f32 %v7031_v63, %v2922_v18 }
 0x5fc   : > { %v2872_v23 = vpop.f32.mrf.mxu3 }
 0x5fd   : > { %v2873_v53 = vadd.f32 %v2872_v23, %v2838_v54  ;;  %2970 = vxpose.xlu0.b32.start [1/6] (short) (narrow) %v7141_v6, 64  ;;  %v7149_v23 = vld [vmem:[#allocation2 + $0x10c] sm:$0xff]  ;;  %v2811_v54 = vpop.f32.mrf.mxu0 }
 0x5ff   : > { %v2908_v45 = vadd.f32 %v2907_v28, %v2873_v53  ;;  %v2913_v28 = vpop.f32.mrf.mxu1 }
 0x601   : > { %v2923_v38 = vmax.f32 %v2908_v45, 0.0  ;;  %v2812_v45 = vadd.f32 %v2811_v54, %v2777_v46 }
 0x603   : > { %v2965_v21 = vmul.f32 %v6839_v62, %v2923_v38 }
 0x604   : > { %v2875_v63 = vpop.f32.mrf.mxu3 }
 0x605   : > { %v2876_v4 = vadd.f32 %v2875_v63, %v2841_v10  ;;  %2971 = vxpose.xlu0.b32.cont [2/6] (short) (narrow) %v2965_v21, 64  ;;  %v3210_v34 = vpop.permute.xlu1 %3209 }
 0x606   : > { %v7153_v1 = vsel %vm924_vm2, %v7149_v23, %v3210_v34 }
 0x607   : > { %v2911_v33 = vadd.f32 %v2910_v2, %v2876_v4  ;;  %v2846_v2 = vpop.f32.mrf.mxu2  ;;  %v2916_v10 = vpop.f32.mrf.mxu1 }
 0x608   : > { %v2847_v26 = vadd.f32 %v2846_v2, %v2812_v45  ;;  %v2814_v4 = vpop.f32.mrf.mxu0 }
 0x609   : > { %v2924_v18 = vmax.f32 %v2911_v33, 0.0 }
 0x60b   : > { %v2966_v62 = vmul.f32 %v6873_v16, %v2924_v18  ;;  %v2780_v16 = vadd.f32 %v7135_v40, %v7126_v58  ;;  %v579_v58 = vadd.f32 %v6893_v22, %v7052_v49  ;;  %v3596_v49 = vld [vmem:[#allocation2 + $0x109] sm:$0xff] }
 0x60c   : > { %v2878_v31 = vpop.f32.mrf.mxu3 }
 0x60d   : > { %v2879_v53 = vadd.f32 %v2878_v31, %v2844_v44  ;;  %2972 = vxpose.xlu0.b32.cont [3/6] (short) (narrow) %v2966_v62, 64  ;;  %v7157_v60 = vpop.permute.xlu1 %3448  ;;  %v2815_v12 = vadd.f32 %v2814_v4, %v2780_v16 }
 0x60f   : > { %v2914_v15 = vadd.f32 %v2913_v28, %v2879_v53  ;;  %v2849_v54 = vpop.f32.mrf.mxu2 }
 0x610   : > { %v2850_v44 = vadd.f32 %v2849_v54, %v2815_v12 }
 0x611   : > { %v2925_v38 = vmax.f32 %v2914_v15, 0.0 }
 0x613   : > { %v2967_v63 = vmul.f32 %v6856_v47, %v2925_v38  ;;  %v2919_v47 = vpop.f32.mrf.mxu1  ;;  %v631_v38 = vmax.f32 %v579_v58, 0.0 }
 0x614   : > { %v2881_v34 = vpop.f32.mrf.mxu3 }
 0x615   : > { %v2882_v41 = vadd.f32 %v2881_v34, %v2847_v26  ;;  %2973 = vxpose.xlu0.b32.cont [4/6] (short) (narrow) %v2967_v63, 64  ;;  %v7162_v55 = vpop.permute.xlu1 %3458  ;;  %v3587_v34 = vld [vmem:[#allocation2 + $0xf0] sm:$0xff] }
 0x617   : > { %v2917_v33 = vadd.f32 %v2916_v10, %v2882_v41  ;;  %v585_v41 = vadd.f32 %v6893_v22, %v7087_v42 }
 0x619   : > { %v2926_v18 = vmax.f32 %v2917_v33, 0.0  ;;  %v633_v42 = vmax.f32 %v585_v41, 0.0  ;;  %v677_v41 = vld [vmem:[%s7572_s1 + $0x140] sm:$0xff] }
 0x61b   : > { %v2968_v28 = vmul.f32 %v6888_v5, %v2926_v18  ;;  %v7197_v18 = vld [vmem:[%s7576_s5 + $0x220] sm:$0xff] }
 0x61c   : > { %v2884_v31 = vpop.f32.mrf.mxu3 }
 0x61d   : > { %v2885_v46 = vadd.f32 %v2884_v31, %v2850_v44  ;;  %2974 = vxpose.xlu0.b32.cont [5/6] (short) (narrow) %v2968_v28, 64  ;;  %v7165_v53 = vpop.permute.xlu1 %3468  ;;  %v676_v44 = vld [vmem:[%s7572_s1 + $0x138] sm:$0xff] }
 0x61e   : > { %v7206_v31 = vld [vmem:[%s7576_s5 + $0x218] sm:$0xff] }
 0x61f   : > { %v2920_v45 = vadd.f32 %v2919_v47, %v2885_v46  ;;  %v7214_v47 = vld [vmem:[%s7576_s5 + $0x210] sm:$0xff] }
 0x621   : > { %v2927_v15 = vmax.f32 %v2920_v45, 0.0  ;;  %v7220_v45 = vld [vmem:[%s7576_s5 + $0x208] sm:$0xff] }
 0x623   : > { %v2969_v2 = vmul.f32 %v6871_v56, %v2927_v15  ;;  %v7175_v56 = vld [vmem:[%s7576_s5 + $0x238] sm:$0xff] }
 0x625   : > { %3036 = vmatpush.msra.mxu0 %v2969_v2  ;;  %2975 = vxpose.xlu0.b32.end [6/6] (short) (narrow) %v2969_v2, 64  ;;  %v856_v10 = vpop.permute.xlu1 %855  ;;  %v7226_v2 = vld [vmem:[%s7576_s5 + $0x200] sm:$0xff] }
 0x626   : > { %v918_v26 = vmul.f32 %v856_v10, %v631_v38  ;;  %v3589_v38 = vld [vmem:[#allocation2 + $0x100] sm:$0xff] }
 0x627   : > { %3037 = vmatpush.msra.mxu0 %v2968_v28  ;;  %v3588_v28 = vld [vmem:[#allocation2 + $0xf8] sm:$0xff]  ;;  %v7229_v10 = vld [vmem:[#allocation2 + $0x102] sm:$0xff] }
 0x628   : > { %960 = vst.msk [vmem:[#allocation2 + $0x118] sm:$0xff] %vm924_vm2, %v918_v26  ;;  %v588_v26 = vadd.f32 %v6893_v22, %v7101_v30  ;;  %v7242_v30 = vld [vmem:[#allocation2 + $0x104] sm:$0xff] }
 0x629   : > { %3038 = vmatpush.msra.mxu0 %v2967_v63  ;;  %v7191_v63 = vld [vmem:[%s7576_s5 + $0x228] sm:$0xff] }
 0x62b   : > { %3039 = vmatpush.msra.mxu0 %v2966_v62 }
 0x62d   : > { %3040 = vmatpush.msra.mxu0 %v2965_v21  ;;  %v4595_v5 = vpop.permute.xlu1 %4594 }
 0x62e   : > { %v4596_v4 = vunpack.i.l.bf16 %v4595_v5  ;;  %v4597_v12 = vunpack.i.h.bf16 %v4595_v5 }
 0x62f   : > { %3041 = vmatpush.msra.mxu0 %v7141_v6  ;;  %v3597_v16 = vld [vmem:[#allocation2 + $0x111] sm:$0xff]  ;;  %v3598_v15 = vld [vmem:[#allocation2 + $0x119] sm:$0xff] }
 0x630   : > { %v3729_v62 = vsel %vm924_vm2, %v3587_v34, %v4596_v4  ;;  %v4598_v21 = vpack.i.bf16 %v3597_v16, %v3596_v49  ;;  %v7184_v6 = vld [vmem:[%s7576_s5 + $0x230] sm:$0xff]  ;;  %v3730_v46 = vsel %vm924_vm2, %v3588_v28, %v4597_v12  ;;  %v4603_v4 = vpack.i.bf16 %v3598_v15, %v7229_v10 }
 0x631   : > { %3407 = vmatpush.msrb.mxu0 %v7175_v56  ;;  %3787 = vmatmul.f32.vlgmr.msrb.gmra.mxu1 %v3729_v62  ;;  %v634_v34 = vmax.f32 %v588_v26, 0.0  ;;  %v7240_v62 = vld [vmem:[#allocation2 + $0x10a] sm:$0xff] }
 0x632   : > { %4599 = vrot.lane.b32.xlu1 %v4598_v21, %s4795_s14  ;;  %v4608_v21 = vpack.i.bf16 %v7242_v30, %v7240_v62  ;;  %v4770_v26 = vld [vmem:[%s7576_s5 + $0x170] sm:$0xff] }
 0x633   : > { %3408 = vmatpush.msrb.mxu0 %v7184_v6 }
 0x635   : > { %3409 = vmatpush.msrb.mxu0 %v7191_v63  ;;  %v866_v33 = vpop.permute.xlu1 %865 }
 0x636   : > { %v920_v54 = vmul.f32 %v866_v33, %v633_v42  ;;  %v3622_v42 = vld [vmem:[#allocation2 + $0x11d] sm:$0xff] }
 0x637   : > { %3410 = vmatpush.msrb.mxu0 %v7197_v18  ;;  %v4618_v12 = vpack.i.bf16 %v3622_v42, %v7149_v23  ;;  %v4769_v23 = vld [vmem:[%s7576_s5 + $0x178] sm:$0xff] }
 0x638   : > { %962 = vst.msk [vmem:[#allocation2 + $0x128] sm:$0xff] %vm924_vm2, %v920_v54  ;;  %v7249_v54 = vld [vmem:[#allocation2 + $0x11c] sm:$0xff] }
 0x639   : > { %3411 = vmatpush.msrb.mxu0 %v7206_v31  ;;  %3790 = vmatmul.f32.gmra.mxu1 %v3730_v46  ;;  %v3111_v46 = vld [vmem:[#allocation2 + $0xf5] sm:$0xff] }
 0x63a   : > { %875 = vperm.xlu1 %4326, %v676_v44   ;;  %v7253_v44 = vld [vmem:[#allocation2 + $0xea] sm:$0xff] }
 0x63b   : > { %3412 = vmatpush.msrb.mxu0 %v7214_v47  ;;  %v4573_v15 = vpack.i.bf16 %v7253_v44, %v3111_v46 }
 0x63d   : > { %3413 = vmatpush.msrb.mxu0 %v7220_v45  ;;  %v3644_v58 = vpop.permute.xlu1 %3643 }
 0x63e   : > { %v3731_v5 = vsel %vm924_vm2, %v3589_v38, %v3644_v58 }
 0x63f   : > { %3414 = vmatpush.msrb.mxu0 %v7226_v2 }
 0x641   : > { %3793 = vmatmul.f32.gmra.mxu1 %v3731_v5 }
 0x642   : > { %4604 = vrot.lane.b32.xlu1 %v4603_v4, %s4795_s14  ;;  %v7264_v4 = vld [vmem:[#allocation2 + $0x112] sm:$0xff] }
 0x645   : > { %v871_v49 = vpop.permute.xlu1 %870 }
 0x646   : > { %v921_v16 = vmul.f32 %v871_v49, %v634_v34  ;;  %v3621_v34 = vld [vmem:[#allocation2 + $0x115] sm:$0xff]  ;;  %v3590_v49 = vld [vmem:[#allocation2 + $0x108] sm:$0xff] }
 0x648   : > { %963 = vst.msk [vmem:[#allocation2 + $0x130] sm:$0xff] %vm924_vm2, %v921_v16  ;;  %v4771_v16 = vld [vmem:[%s7576_s5 + $0x168] sm:$0xff] }
 0x64a   : > { %880 = vperm.xlu1 %4326, %v677_v41   ;;  %v591_v41 = vadd.f32 %v6893_v22, %v7111_v7 }
 0x64c   : > { %v635_v7 = vmax.f32 %v591_v41, 0.0 }
 0x64f   : > { %v3624_v33 = vld [vmem:[#allocation2 + $0x12d] sm:$0xff] }
 0x650   : > { %v4633_v28 = vpack.i.bf16 %v3624_v33, %v7249_v54  ;;  %v4772_v33 = vld [vmem:[%s7576_s5 + $0x160] sm:$0xff] }
 0x652   : > { %4609 = vrot.lane.b32.xlu1 %v4608_v21, %s4795_s14 }
 0x65a   : > { %4619 = vrot.lane.b32.xlu1 %v4618_v12, %s4795_s14  ;;  %v4613_v12 = vpack.i.bf16 %v7264_v4, %v3621_v34  ;;  %v3591_v34 = vld [vmem:[#allocation2 + $0x110] sm:$0xff] }
 0x662   : > { %4634 = vrot.lane.b32.xlu1 %v4633_v28, %s4795_s14  ;;  %v4773_v28 = vld [vmem:[%s7576_s5 + $0x158] sm:$0xff] }
 0x6a1   : > { %v2986_v58 = vpop.trf.xlu0 }
 0x6a2   : > { %4268 = vmatmul.msk.f32.vlgmr.msra.gmra.mxu0 %vm1888_vm3, %v2986_v58 }
 0x6a3   : > { %4574 = vrot.lane.b32.xlu0 %v4573_v15, %s4795_s14  ;;  %3841 = vmatpush.msra.mxu0 %v4769_v23  ;;  %v4774_v15 = vld [vmem:[%s7576_s5 + $0x150] sm:$0xff] }
 0x6a4   : > { %v4600_v38 = vpop.permute.xlu1 %4599 }
 0x6a5   : > { %3842 = vmatpush.msra.mxu0 %v4770_v26  ;;  %v4601_v5 = vunpack.i.l.bf16 %v4600_v38  ;;  %v4602_v46 = vunpack.i.h.bf16 %v4600_v38  ;;  %v7284_v26 = vld [vmem:[#allocation2 + $0x11a] sm:$0xff] }
 0x6a7   : > { %3843 = vmatpush.msra.mxu0 %v4771_v16  ;;  %v3732_v21 = vsel %vm924_vm2, %v3590_v49, %v4601_v5  ;;  %v7286_v5 = vld [vmem:[#allocation2 + $0x114] sm:$0xff]  ;;  %v4775_v49 = vld [vmem:[%s7576_s5 + $0x148] sm:$0xff]  ;;  %v3733_v38 = vsel %vm924_vm2, %v3591_v34, %v4602_v46 }
 0x6a8   : > { %3796 = vmatmul.f32.gmra.mxu1 %v3732_v21  ;;  %v4623_v41 = vpack.i.bf16 %v7286_v5, %v7284_v26  ;;  %v4776_v21 = vld [vmem:[%s7576_s5 + $0x140] sm:$0xff] }
 0x6a9   : > { %v2987_v42 = vpop.trf.xlu0  ;;  %3844 = vmatpush.msra.mxu0 %v4772_v33  ;;  %v4778_v33 = vld [vmem:[%s7576_s5 + $0x130] sm:$0xff] }
 0x6aa   : > { %4269 = vmatmul.msk.f32.gmra.mxu0 %vm1888_vm3, %v2987_v42  ;;  %v4777_v42 = vld [vmem:[%s7576_s5 + $0x138] sm:$0xff] }
 0x6ab   : > { %4614 = vrot.lane.b32.xlu0 %v4613_v12, %s4795_s14  ;;  %3845 = vmatpush.msra.mxu0 %v4773_v28 }
 0x6ac   : > { %v876_v58 = vpop.permute.xlu1 %875 }
 0x6ad   : > { %3846 = vmatpush.msra.mxu0 %v4774_v15  ;;  %v922_v23 = vmul.f32 %v876_v58, %v635_v7  ;;  %v3606_v7 = vld [vmem:[#allocation2 + $0x12a] sm:$0xff]  ;;  %v3592_v58 = vld [vmem:[#allocation2 + $0x118] sm:$0xff] }
 0x6ae   : > { %v4779_v15 = vld [vmem:[%s7576_s5 + $0x128] sm:$0xff] }
 0x6af   : > { %3847 = vmatpush.msra.mxu0 %v4775_v49  ;;  %964 = vst.msk [vmem:[#allocation2 + $0x138] sm:$0xff] %vm924_vm2, %v922_v23  ;;  %v594_v23 = vadd.f32 %v6893_v22, %v7121_v13  ;;  %v7316_v49 = vld [vmem:[#allocation2 + $0x124] sm:$0xff]  ;;  %v4781_v22 = vld [vmem:[%s7576_s5 + $0x118] sm:$0xff] }
 0x6b0   : > { %3799 = vmatmul.f32.gmra.mxu1 %v3733_v38 }
 0x6b1   : > { %v2988_v16 = vpop.trf.xlu0  ;;  %3848 = vmatpush.msra.mxu0 %v4776_v21  ;;  %v636_v13 = vmax.f32 %v594_v23, 0.0  ;;  %v7344_v23 = vld [vmem:[#allocation2 + $0x12c] sm:$0xff] }
 0x6b2   : > { %4270 = vmatmul.msk.f32.gmra.mxu0 %vm1888_vm3, %v2988_v16  ;;  %v4638_v16 = vpack.i.bf16 %v7316_v49, %v3606_v7  ;;  %v4783_v7 = vld [vmem:[%s7576_s5 + $0x108] sm:$0xff] }
 0x6b3   : > { %4624 = vrot.lane.b32.xlu0 %v4623_v41, %s4795_s14  ;;  %3849 = vmatpush.msra.mxu0 %v4777_v42  ;;  %v4780_v41 = vld [vmem:[%s7576_s5 + $0x120] sm:$0xff]  ;;  %v3952_v42 = vld [vmem:[%s7573_s2 + $0xf0] sm:$0xff] }
 0x6b4   : > { %v7303_v12 = vpop.permute.xlu1 %4604 }
 0x6b5   : > { %3850 = vmatpush.msra.mxu0 %v4778_v33  ;;  %v4607_v28 = vunpack.i.h.bf16 %v7303_v12  ;;  %v4782_v33 = vld [vmem:[%s7576_s5 + $0x110] sm:$0xff] }
 0x6b6   : > { %v3625_v46 = vld [vmem:[#allocation2 + $0x135] sm:$0xff] }
 0x6b7   : > { %3851 = vmatpush.msra.mxu0 %v4779_v15  ;;  %3719 = vrot.lane.b32.xlu1 %v3625_v46, %s4795_s14  ;;  %v3734_v34 = vsel %vm924_vm2, %v3592_v58, %v4607_v28  ;;  %v4784_v58 = vld [vmem:[%s7576_s5 + $0x100] sm:$0xff] }
 0x6b8   : > { %3802 = vmatmul.f32.gmra.mxu1 %v3734_v34  ;;  %v3954_v15 = vld [vmem:[%s7573_s2 + $0x100] sm:$0xff] }
 0x6b9   : > { %v2989_v38 = vpop.trf.xlu0  ;;  %3852 = vmatpush.msra.mxu0 %v4780_v41  ;;  %v3956_v41 = vld [vmem:[%s7573_s2 + $0x110] sm:$0xff] }
 0x6ba   : > { %4271 = vmatmul.msk.f32.gmra.mxu0 %vm1888_vm3, %v2989_v38 }
 0x6bb   : > { %4639 = vrot.lane.b32.xlu0 %v4638_v16, %s4795_s14  ;;  %3853 = vmatpush.msra.mxu0 %v4781_v22  ;;  %v3953_v22 = vld [vmem:[%s7573_s2 + $0xf8] sm:$0xff] }
 0x6bc   : > { %v881_v21 = vpop.permute.xlu1 %880 }
 0x6bd   : > { %3854 = vmatpush.msra.mxu0 %v4782_v33  ;;  %v923_v28 = vmul.f32 %v881_v21, %v636_v13  ;;  %v3955_v21 = vld [vmem:[%s7573_s2 + $0x108] sm:$0xff]  ;;  %v3957_v33 = vld [vmem:[%s7573_s2 + $0x118] sm:$0xff] }
 0x6bf   : > { %3855 = vmatpush.msra.mxu0 %v4783_v7  ;;  %965 = vst.msk [vmem:[#allocation2 + $0x140] sm:$0xff] %vm924_vm2, %v923_v28  ;;  %3960 = vperm.xlu1 %4326, %v3952_v42   ;;  %v3115_v28 = vld [vmem:[#allocation2 + $0xe6] sm:$0xff]  ;;  %v3116_v7 = vld [vmem:[#allocation2 + $0xee] sm:$0xff] }
 0x6c1   : > { %v2990_v46 = vpop.trf.xlu0  ;;  %3856 = vmatpush.msra.mxu0 %v4784_v58  ;;  %v3118_v58 = vld [vmem:[#allocation2 + $0xfe] sm:$0xff] }
 0x6c2   : > { %4272 = vmatmul.msk.f32.gmra.mxu0 %vm1888_vm3, %v2990_v46  ;;  %v3117_v46 = vld [vmem:[#allocation2 + $0xf6] sm:$0xff] }
 0x6c6   : > { %v3626_v34 = vld [vmem:[#allocation2 + $0x13d] sm:$0xff] }
 0x6c7   : > { %3970 = vperm.xlu1 %4326, %v3954_v15   ;;  %v4643_v38 = vpack.i.bf16 %v3626_v34, %v7344_v23  ;;  %v3119_v15 = vld [vmem:[#allocation2 + $0x106] sm:$0xff]  ;;  %v7368_v34 = vpop.permute.xlu1 %4609 }
 0x6c9   : > { %v2991_v16 = vpop.trf.xlu0  ;;  %4644 = vrot.lane.b32.xlu0 %v4643_v38, %s4795_s14  ;;  %v3120_v38 = vld [vmem:[#allocation2 + $0x10e] sm:$0xff] }
 0x6ca   : > { %4273 = vmatmul.msk.f32.gmra.mxu0 %vm1888_vm3, %v2991_v16  ;;  %v4612_v16 = vunpack.i.h.bf16 %v7368_v34 }
 0x6cf   : > { %3980 = vperm.xlu1 %4326, %v3956_v41   ;;  %v3607_v41 = vld [vmem:[#allocation2 + $0x103] sm:$0xff] }
 0x6d1   : > { %v2992_v13 = vpop.trf.xlu0  ;;  %3965 = vperm.xlu0 %4325, %v3953_v22   ;;  %v3741_v22 = vsel %vm924_vm2, %v3607_v41, %v4612_v16  ;;  %v4582_v16 = vunpack.i.h.bf16 %v7064_v52  ;;  %v4591_v52 = vunpack.i.l.bf16 %v7145_v8 }
 0x6d2   : > { %4274 = vmatmul.msk.f32.gmra.mxu0 %vm1888_vm3, %v2992_v13  ;;  %v4620_v13 = vpop.permute.xlu1 %4619 }
 0x6d9   : > { %v2993_v42 = vpop.trf.xlu0  ;;  %3975 = vperm.xlu0 %4325, %v3955_v21   ;;  %v4621_v21 = vunpack.i.l.bf16 %v4620_v13 }
 0x6da   : > { %4275 = vmatmul.msk.f32.gmra.mxu0 %vm1888_vm3, %v2993_v42 }
 0x6e1   : > { %3985 = vperm.xlu0 %4325, %v3957_v33  }
 0x6e2   : > { %4276 = vmatmul.msk.f32.vlgmr.msrb.gmra.mxu0 %vm924_vm2, %v3115_v28 }
 0x6ea   : > { %4277 = vmatmul.msk.f32.gmra.mxu0 %vm924_vm2, %v3116_v7 }
 0x6f2   : > { %4278 = vmatmul.msk.f32.gmra.mxu0 %vm924_vm2, %v3117_v46 }
 0x6fa   : > { %4279 = vmatmul.msk.f32.gmra.mxu0 %vm924_vm2, %v3118_v58  ;;  %v3608_v58 = vld [vmem:[#allocation2 + $0x10b] sm:$0xff] }
 0x702   : > { %4280 = vmatmul.msk.f32.gmra.mxu0 %vm924_vm2, %v3119_v15  ;;  %v3742_v15 = vsel %vm924_vm2, %v3608_v58, %v4621_v21  ;;  %v3276_v21 = vpop.f32.mrf.mxu2 }
 0x70a   : > { %4281 = vmatmul.msk.f32.gmra.mxu0 %vm924_vm2, %v3120_v38  ;;  %v4586_v38 = vunpack.i.l.bf16 %v7059_v32  ;;  %v4592_v32 = vunpack.i.h.bf16 %v7145_v8  ;;  %v7399_v8 = vpop.permute.xlu1 %4634 }
 0x712   : > { %3857 = vmatmul.f32.vlgmr.msra.gmra.mxu0 %v3741_v22 }
 0x715   : > { %v4575_v42 = vpop.permute.xlu0 %4574 }
 0x716   : > { %v4577_v33 = vunpack.i.h.bf16 %v4575_v42  ;;  %v4576_v28 = vunpack.i.l.bf16 %v4575_v42 }
 0x718   : > { %v3226_v7 = vsel %vm924_vm2, %v6955_v35, %v4577_v33  ;;  %v3237_v46 = vsel %vm924_vm2, %v6992_v39, %v4576_v28  ;;  %v3227_v35 = vsel %vm924_vm2, %v6968_v25, %v4586_v38  ;;  %v3238_v39 = vsel %vm924_vm2, %v6997_v48, %v4582_v16  ;;  %v3609_v25 = vld [vmem:[#allocation2 + $0x113] sm:$0xff] }
 0x719   : > { %3319 = vmatmul.f32.gmra.mxu3 %v3226_v7  ;;  %3386 = vmatmul.f32.gmra.mxu2 %v3237_v46  ;;  %v4622_v33 = vunpack.i.h.bf16 %v4620_v13  ;;  %v3228_v48 = vsel %vm924_vm2, %v7253_v44, %v4592_v32  ;;  %v3279_v13 = vpop.f32.mrf.mxu2  ;;  %v4636_v38 = vunpack.i.l.bf16 %v7399_v8  ;;  %v3610_v44 = vld [vmem:[#allocation2 + $0x11b] sm:$0xff]  ;;  %v3599_v32 = vld [vmem:[#allocation2 + $0xf2] sm:$0xff] }
 0x71a   : > { %3860 = vmatmul.f32.gmra.mxu0 %v3742_v15 }
 0x71b   : > { %v3748_v15 = vsel %vm924_vm2, %v7249_v54, %v4622_v33  ;;  %v3611_v33 = vld [vmem:[#allocation2 + $0x123] sm:$0xff] }
 0x71d   : > { %v4615_v41 = vpop.permute.xlu0 %4614 }
 0x71e   : > { %v4616_v22 = vunpack.i.l.bf16 %v4615_v41 }
 0x71f   : > { %v7380_v19 = vpop.f32.mrf.mxu0 }
 0x720   : > { %v3747_v42 = vsel %vm924_vm2, %v7286_v5, %v4616_v22  ;;  %v3239_v5 = vsel %vm924_vm2, %v7242_v30, %v4591_v52  ;;  %v3744_v30 = vsel %vm924_vm2, %v3610_v44, %v4636_v38 }
 0x721   : > { %3322 = vmatmul.f32.gmra.mxu3 %v3227_v35  ;;  %3389 = vmatmul.f32.gmra.mxu2 %v3238_v39  ;;  %v4606_v35 = vunpack.i.l.bf16 %v7303_v12  ;;  %v3282_v39 = vpop.f32.mrf.mxu2 }
 0x722   : > { %3892 = vmatmul.f32.vlgmr.msra.gmra.mxu1 %v3747_v42 }
 0x723   : > { %v3735_v52 = vsel %vm924_vm2, %v3599_v32, %v4606_v35 }
 0x725   : > { %v4625_v28 = vpop.permute.xlu0 %4624 }
 0x726   : > { %v4627_v7 = vunpack.i.h.bf16 %v4625_v28  ;;  %v4626_v32 = vunpack.i.l.bf16 %v4625_v28 }
 0x727   : > { %v7390_v46 = vpop.f32.mrf.mxu0 }
 0x728   : > { %v3743_v58 = vsel %vm924_vm2, %v3609_v25, %v4627_v7 }
 0x729   : > { %3325 = vmatmul.f32.gmra.mxu3 %v3228_v48  ;;  %3392 = vmatmul.f32.gmra.mxu2 %v3239_v5  ;;  %v3600_v5 = vld [vmem:[#allocation2 + $0xfa] sm:$0xff]  ;;  %v3285_v38 = vpop.f32.mrf.mxu2 }
 0x72a   : > { %3863 = vmatmul.f32.gmra.mxu0 %v3743_v58  ;;  %3895 = vmatmul.f32.gmra.mxu1 %v3748_v15  ;;  %v3612_v15 = vld [vmem:[#allocation2 + $0x12b] sm:$0xff] }
 0x72d   : > { %v7406_v22 = vpop.permute.xlu0 %4639 }
 0x72e   : > { %v4642_v54 = vunpack.i.h.bf16 %v7406_v22 }
 0x72f   : > { %v7402_v16 = vpop.f32.mrf.mxu0 }
 0x730   : > { %v3745_v7 = vsel %vm924_vm2, %v3611_v33, %v4642_v54  ;;  %v3738_v33 = vsel %vm924_vm2, %v7240_v62, %v4626_v32 }
 0x731   : > { %3395 = vmatmul.f32.gmra.mxu2 %v7153_v1  ;;  %v4611_v1 = vunpack.i.l.bf16 %v7368_v34  ;;  %v3288_v54 = vpop.f32.mrf.mxu2 }
 0x732   : > { %3866 = vmatmul.f32.gmra.mxu0 %v3744_v30  ;;  %v4617_v30 = vunpack.i.h.bf16 %v4615_v41  ;;  %v3346_v41 = vpop.f32.mrf.mxu1 }
 0x733   : > { %v3736_v58 = vsel %vm924_vm2, %v3600_v5, %v4611_v1  ;;  %v3311_v1 = vpop.f32.mrf.mxu3 }
 0x734   : > { %v3737_v34 = vsel %vm924_vm2, %v7229_v10, %v4617_v30  ;;  %v3280_v30 = vadd.f32 %v7135_v40, %v3279_v13 }
 0x737   : > { %v7410_v42 = vpop.f32.mrf.mxu0 }
 0x739   : > { %3822 = vmatmul.f32.vlgmr.msrb.gmra.mxu2 %v3735_v52 }
 0x73a   : > { %3869 = vmatmul.f32.gmra.mxu0 %v3745_v7  ;;  %v3291_v7 = vpop.f32.mrf.mxu2 }
 0x73b   : > { %v7415_v25 = vpop.permute.xlu0 %4644  ;;  %v3314_v10 = vpop.f32.mrf.mxu3 }
 0x73c   : > { %v4646_v48 = vunpack.i.l.bf16 %v7415_v25  ;;  %v3315_v28 = vadd.f32 %v3314_v10, %v3280_v30 }
 0x73e   : > { %v3746_v44 = vsel %vm924_vm2, %v3612_v15, %v4646_v48  ;;  %v3277_v48 = vadd.f32 %v7135_v40, %v3276_v21 }
 0x73f   : > { %v7418_v12 = vpop.f32.mrf.mxu0 }
 0x740   : > { %7643 = vst [vmem:[#allocation9_spill] sm:$0xff] %v7418_v12  ;;  %v3312_v5 = vadd.f32 %v3311_v1, %v3277_v48  ;;  %v3349_v12 = vpop.f32.mrf.mxu1 }
 0x741   : > { %3825 = vmatmul.f32.gmra.mxu2 %v3736_v58  ;;  %v3350_v62 = vadd.f32 %v3349_v12, %v3315_v28 }
 0x742   : > { %3872 = vmatmul.f32.gmra.mxu0 %v3746_v44  ;;  %v3347_v15 = vadd.f32 %v3346_v41, %v3312_v5  ;;  %v3381_v44 = vpop.f32.mrf.mxu2 }
 0x743   : > { %v3317_v13 = vpop.f32.mrf.mxu3 }
 0x747   : > { %v7422_v35 = vpop.f32.mrf.mxu0 }
 0x748   : > { %7644 = vst [vmem:[#allocation10_spill] sm:$0xff] %v7422_v35  ;;  %v3352_v41 = vpop.f32.mrf.mxu1 }
 0x749   : > { %3828 = vmatmul.f32.gmra.mxu2 %v3737_v34  ;;  %v3382_v34 = vadd.f32 %v3381_v44, %v3347_v15  ;;  %v3283_v15 = vadd.f32 %v7135_v40, %v3282_v39  ;;  %v3289_v39 = vadd.f32 %v7135_v40, %v3288_v54 }
 0x74a   : > { %v3384_v0 = vpop.f32.mrf.mxu2 }
 0x74b   : > { %v3385_v21 = vadd.f32 %v3384_v0, %v3350_v62  ;;  %v3318_v44 = vadd.f32 %v3317_v13, %v3283_v15 }
 0x74d   : > { %v3353_v10 = vadd.f32 %v3352_v41, %v3318_v44 }
 0x74f   : > { %v7426_v52 = vpop.f32.mrf.mxu0 }
 0x750   : > { %7645 = vst [vmem:[#allocation13_spill] sm:$0xff] %v7426_v52  ;;  %v3355_v28 = vpop.f32.mrf.mxu1 }
 0x751   : > { %3831 = vmatmul.f32.gmra.mxu2 %v3738_v33 }
 0x757   : > { %v7431_v58 = vpop.f32.mrf.mxu0 }
 0x758   : > { %7646 = vst [vmem:[#allocation14_spill] sm:$0xff] %v7431_v58  ;;  %v3358_v15 = vpop.f32.mrf.mxu1 }
 0x75f   : > { %v3416_v52 = vpop.f32.mrf.mxu0 }
 0x760   : > { %v3417_v35 = vadd.f32 %v3416_v52, %v3382_v34  ;;  %v3361_v54 = vpop.f32.mrf.mxu1 }
 0x762   : > { %v3434_v32 = vmax.f32 %v3417_v35, 0.0 }
 0x764   : > { %v3476_v33 = vmul.f32 %v7157_v60, %v3434_v32  ;;  %v3286_v60 = vadd.f32 %v7135_v40, %v3285_v38 }
 0x766   : > { %3482 = vxpose.xlu2.b32.start [1/6] (short) (narrow) %v3476_v33, 64 }
 0x767   : > { %v3419_v1 = vpop.f32.mrf.mxu0 }
 0x768   : > { %v3420_v48 = vadd.f32 %v3419_v1, %v3385_v21 }
 0x76a   : > { %v3435_v58 = vmax.f32 %v3420_v48, 0.0 }
 0x76c   : > { %v3477_v5 = vmul.f32 %v7096_v27, %v3435_v58 }
 0x76e   : > { %3483 = vxpose.xlu2.b32.cont [2/6] (short) (narrow) %v3477_v5, 64 }
 0x76f   : > { %v3422_v52 = vpop.f32.mrf.mxu0 }
 0x777   : > { %v3425_v62 = vpop.f32.mrf.mxu0 }
 0x77f   : > { %v3428_v38 = vpop.f32.mrf.mxu0 }
 0x79c   : > { %v3320_v12 = vpop.f32.mrf.mxu3  ;;  %v3387_v35 = vpop.f32.mrf.mxu2 }
 0x79d   : > { %v3388_v30 = vadd.f32 %v3387_v35, %v3353_v10  ;;  %v3321_v0 = vadd.f32 %v3320_v12, %v3286_v60  ;;  %v3292_v60 = vadd.f32 %v7135_v40, %v3291_v7  ;;  %v3623_v7 = vld [vmem:[#allocation2 + $0x125] sm:$0xff] }
 0x79f   : > { %v3423_v34 = vadd.f32 %v3422_v52, %v3388_v30  ;;  %v3356_v58 = vadd.f32 %v3355_v28, %v3321_v0 }
 0x7a1   : > { %v3436_v32 = vmax.f32 %v3423_v34, 0.0 }
 0x7a3   : > { %v3478_v27 = vmul.f32 %v7162_v55, %v3436_v32 }
 0x7a4   : > { %v3323_v21 = vpop.f32.mrf.mxu3  ;;  %v3390_v1 = vpop.f32.mrf.mxu2 }
 0x7a5   : > { %v3391_v48 = vadd.f32 %v3390_v1, %v3356_v58  ;;  %3484 = vxpose.xlu2.b32.cont [3/6] (short) (narrow) %v3478_v27, 64  ;;  %v3324_v41 = vadd.f32 %v3323_v21, %v3289_v39  ;;  %v3431_v21 = vpop.f32.mrf.mxu0 }
 0x7a7   : > { %v3426_v13 = vadd.f32 %v3425_v62, %v3391_v48  ;;  %v3359_v12 = vadd.f32 %v3358_v15, %v3324_v41  ;;  %v3630_v48 = vld [vmem:[#allocation2 + $0x12e] sm:$0xff]  ;;  %v3631_v41 = vld [vmem:[#allocation2 + $0x136] sm:$0xff] }
 0x7a9   : > { %v3437_v44 = vmax.f32 %v3426_v13, 0.0 }
 0x7ab   : > { %v3479_v10 = vmul.f32 %v7106_v24, %v3437_v44 }
 0x7ac   : > { %v3326_v52 = vpop.f32.mrf.mxu3  ;;  %v3393_v35 = vpop.f32.mrf.mxu2 }
 0x7ad   : > { %v3394_v55 = vadd.f32 %v3393_v35, %v3359_v12  ;;  %3485 = vxpose.xlu2.b32.cont [4/6] (short) (narrow) %v3479_v10, 64  ;;  %v3327_v30 = vadd.f32 %v3326_v52, %v3292_v60  ;;  %v3632_v12 = vld [vmem:[#allocation2 + $0x13e] sm:$0xff]  ;;  %v4637_v52 = vunpack.i.h.bf16 %v7399_v8  ;;  %v4641_v35 = vunpack.i.l.bf16 %v7406_v22 }
 0x7ae   : > { %v3620_v8 = vld [vmem:[#allocation2 + $0x13c] sm:$0xff] }
 0x7af   : > { %v3429_v28 = vadd.f32 %v3428_v38, %v3394_v55  ;;  %v3362_v32 = vadd.f32 %v3361_v54, %v3327_v30  ;;  %v3740_v60 = vsel %vm924_vm2, %v7284_v26, %v4641_v35  ;;  %v3750_v55 = vsel %vm924_vm2, %v7344_v23, %v4637_v52  ;;  %v3619_v30 = vld [vmem:[#allocation2 + $0x134] sm:$0xff] }
 0x7b1   : > { %v3438_v0 = vmax.f32 %v3429_v28, 0.0  ;;  %v4647_v28 = vunpack.i.h.bf16 %v7415_v25 }
 0x7b3   : > { %v3480_v34 = vmul.f32 %v7165_v53, %v3438_v0  ;;  %v3605_v53 = vld [vmem:[#allocation2 + $0x122] sm:$0xff]  ;;  %v3752_v22 = vsel %vm924_vm2, %v3620_v8, %v4647_v28  ;;  %v2028_v0 = vadd.f32 %v6469_v61, %v6442_v17  ;;  %v2034_v17 = vadd.f32 %v6487_v37, %v6467_v59  ;;  %v7647_v37 = vld [vmem:[#allocation4_spill] sm:$0xff]  ;;  %v3858_v8 = vpop.f32.mrf.mxu0 }
 0x7b4   : > { %v3396_v62 = vpop.f32.mrf.mxu2  ;;  %v2040_v59 = vadd.f32 %v6497_v9, %v6482_v57  ;;  %v7653_v57 = vld [vmem:[#allocation12_spill] sm:$0xff]  ;;  %v7654_v9 = vld [vmem:[#allocation19_spill] sm:$0xff] }
 0x7b5   : > { %v3397_v58 = vadd.f32 %v3396_v62, %v3362_v32  ;;  %3486 = vxpose.xlu2.b32.cont [5/6] (short) (narrow) %v3480_v34, 64  ;;  %v2555_v26 = vadd.f32 %v7081_v51, %v2028_v0  ;;  %v2031_v32 = vadd.f32 %v6477_v14, %v6458_v29  ;;  %v3788_v62 = vpop.f32.mrf.mxu1  ;;  %v2557_v61 = vadd.f32 %v7103_v20, %v2034_v17 }
 0x7b6   : > { %v2037_v29 = vadd.f32 %v6493_v36, %v6475_v3  ;;  %v2559_v20 = vadd.f32 %v7647_v37, %v2040_v59  ;;  %v7649_v3 = vld [vmem:[#allocation11_spill] sm:$0xff]  ;;  %v7650_v36 = vld [vmem:[#allocation5_spill] sm:$0xff] }
 0x7b7   : > { %v3432_v1 = vadd.f32 %v3431_v21, %v3397_v58  ;;  %v3067_v23 = vadd.f32 %v7380_v19, %v2555_v26  ;;  %v2556_v25 = vadd.f32 %v7091_v11, %v2031_v32  ;;  %v3069_v19 = vadd.f32 %v7402_v16, %v2557_v61  ;;  %v7648_v16 = vld [vmem:[#allocation9_spill] sm:$0xff]  ;;  %v4785_v32 = vld [vmem:[%s7577_s6] ss:$0 sm:$0xff] }
 0x7b8   : > { %v2558_v14 = vadd.f32 %v7109_v50, %v2037_v29  ;;  %v2043_v50 = vadd.f32 %v7650_v36, %v7649_v3 }
 0x7b9   : > { %v3439_v24 = vmax.f32 %v3432_v1, 0.0  ;;  %v3068_v58 = vadd.f32 %v7390_v46, %v2556_v25 }
 0x7ba   : > { %v3070_v11 = vadd.f32 %v7410_v42, %v2558_v14 }
 0x7bb   : > { %v3481_v39 = vmul.f32 %v7113_v43, %v3439_v24 }
 0x7bd   : > { %3548 = vmatpush.msra.mxu3 %v3481_v39  ;;  %3487 = vxpose.xlu2.b32.end [6/6] (short) (narrow) %v3481_v39, 64  ;;  %v3791_v51 = vpop.f32.mrf.mxu1 }
 0x7be   : > { %v3792_v25 = vadd.f32 %v4785_v32, %v3791_v51 }
 0x7bf   : > { %3549 = vmatpush.msra.mxu3 %v3480_v34 }
 0x7c1   : > { %3550 = vmatpush.msra.mxu3 %v3479_v10 }
 0x7c3   : > { %3551 = vmatpush.msra.mxu3 %v3478_v27  ;;  %v3629_v27 = vld [vmem:[#allocation2 + $0x126] sm:$0xff] }
 0x7c5   : > { %3552 = vmatpush.msra.mxu3 %v3477_v5  ;;  %v3628_v5 = vld [vmem:[#allocation2 + $0x11e] sm:$0xff]  ;;  %v3794_v46 = vpop.f32.mrf.mxu1 }
 0x7c7   : > { %3553 = vmatpush.msra.mxu3 %v3476_v33  ;;  %v3627_v33 = vld [vmem:[#allocation2 + $0x116] sm:$0xff] }
 0x7c9   : > { %3919 = vmatpush.msrb.mxu3 %v7175_v56  ;;  %v4628_v56 = vpack.i.bf16 %v3605_v53, %v3623_v7  ;;  %v3071_v7 = vadd.f32 %v7648_v16, %v2559_v20  ;;  %v3966_v20 = vpop.permute.xlu0 %3965 }
 0x7cb   : > { %3920 = vmatpush.msrb.mxu3 %v7184_v6 }
 0x7cd   : > { %3921 = vmatpush.msrb.mxu3 %v7191_v63 }
 0x7cf   : > { %3922 = vmatpush.msrb.mxu3 %v7197_v18 }
 0x7d1   : > { %3923 = vmatpush.msrb.mxu3 %v7206_v31 }
 0x7d3   : > { %3924 = vmatpush.msrb.mxu3 %v7214_v47 }
 0x7d5   : > { %3925 = vmatpush.msrb.mxu3 %v7220_v45 }
 0x7d7   : > { %3926 = vmatpush.msrb.mxu3 %v7226_v2 }
 0x82e   : > { %v3498_v43 = vpop.trf.xlu2 }
 0x82f   : > { %4282 = vmatmul.msk.f32.vlgmr.msra.gmra.mxu3 %vm1888_vm3, %v3498_v43 }
 0x836   : > { %4629 = vrot.lane.b32.xlu2 %v4628_v56, %s4795_s14  ;;  %v3499_v6 = vpop.trf.xlu2  ;;  %v3797_v56 = vpop.f32.mrf.mxu1 }
 0x837   : > { %4283 = vmatmul.msk.f32.gmra.mxu3 %vm1888_vm3, %v3499_v6 }
 0x83e   : > { %v3500_v63 = vpop.trf.xlu2 }
 0x83f   : > { %4284 = vmatmul.msk.f32.gmra.mxu3 %vm1888_vm3, %v3500_v63 }
 0x846   : > { %v3501_v18 = vpop.trf.xlu2 }
 0x847   : > { %4285 = vmatmul.msk.f32.gmra.mxu3 %vm1888_vm3, %v3501_v18  ;;  %v7651_v18 = vld [vmem:[#allocation6_spill] sm:$0xff] }
 0x848   : > { %v2560_v42 = vadd.f32 %v7651_v18, %v2043_v50 }
 0x84e   : > { %v3502_v31 = vpop.trf.xlu2 }
 0x84f   : > { %4286 = vmatmul.msk.f32.gmra.mxu3 %vm1888_vm3, %v3502_v31  ;;  %v7652_v31 = vld [vmem:[#allocation10_spill] sm:$0xff] }
 0x856   : > { %v3503_v47 = vpop.trf.xlu2 }
 0x857   : > { %4287 = vmatmul.msk.f32.gmra.mxu3 %vm1888_vm3, %v3503_v47  ;;  %v3072_v47 = vadd.f32 %v7652_v31, %v2560_v42  ;;  %v3798_v31 = vadd.f32 %v4785_v32, %v3797_v56 }
 0x85e   : > { %v3504_v45 = vpop.trf.xlu2 }
 0x85f   : > { %4288 = vmatmul.msk.f32.gmra.mxu3 %vm1888_vm3, %v3504_v45 }
 0x866   : > { %v3505_v2 = vpop.trf.xlu2 }
 0x867   : > { %4289 = vmatmul.msk.f32.gmra.mxu3 %vm1888_vm3, %v3505_v2 }
 0x86f   : > { %4290 = vmatmul.msk.f32.vlgmr.msrb.gmra.mxu3 %vm924_vm2, %v3627_v33  ;;  %v3800_v33 = vpop.f32.mrf.mxu1 }
 0x877   : > { %4291 = vmatmul.msk.f32.gmra.mxu3 %vm924_vm2, %v3628_v5  ;;  %v2046_v5 = vadd.f32 %v7654_v9, %v7653_v57  ;;  %v7524_v35 = vpop.f32.mrf.mxu1 }
 0x87f   : > { %4292 = vmatmul.msk.f32.gmra.mxu3 %vm924_vm2, %v3629_v27  ;;  %v7655_v27 = vld [vmem:[#allocation7_spill] sm:$0xff] }
 0x887   : > { %4293 = vmatmul.msk.f32.gmra.mxu3 %vm924_vm2, %v3630_v48  ;;  %v2561_v48 = vadd.f32 %v7655_v27, %v2046_v5 }
 0x88f   : > { %4294 = vmatmul.msk.f32.gmra.mxu3 %vm924_vm2, %v3631_v41  ;;  %v7656_v41 = vld [vmem:[#allocation13_spill] sm:$0xff] }
 0x890   : > { %v4630_v13 = vpop.permute.xlu2 %4629 }
 0x891   : > { %v4632_v15 = vunpack.i.h.bf16 %v4630_v13  ;;  %v4631_v44 = vunpack.i.l.bf16 %v4630_v13  ;;  %v3073_v13 = vadd.f32 %v7656_v41, %v2561_v48 }
 0x893   : > { %v3739_v38 = vsel %vm924_vm2, %v7264_v4, %v4632_v15  ;;  %v3749_v10 = vsel %vm924_vm2, %v7316_v49, %v4631_v44  ;;  %v3720_v4 = vpop.permute.xlu1 %3719 }
 0x894   : > { %3834 = vmatmul.f32.gmra.mxu2 %v3739_v38  ;;  %3898 = vmatmul.f32.gmra.mxu1 %v3749_v10  ;;  %v3751_v49 = vsel %vm924_vm2, %v3619_v30, %v3720_v4  ;;  %v3823_v38 = vpop.f32.mrf.mxu2  ;;  %v7657_v10 = vld [vmem:[#allocation20_spill] sm:$0xff]  ;;  %v3789_v4 = vadd.f32 %v7135_v40, %v3788_v62  ;;  %v7660_v30 = vld [vmem:[#allocation14_spill] sm:$0xff]  ;;  %v3861_v40 = vpop.f32.mrf.mxu0 }
 0x896   : > { %v3824_v28 = vadd.f32 %v3823_v38, %v3789_v4  ;;  %v3976_v4 = vpop.permute.xlu0 %3975 }
 0x897   : > { %4295 = vmatmul.msk.f32.gmra.mxu3 %vm924_vm2, %v3632_v12  ;;  %v7658_v12 = vld [vmem:[#allocation3_spill] sm:$0xff] }
 0x898   : > { %v2049_v52 = vadd.f32 %v7658_v12, %v7657_v10  ;;  %v3859_v26 = vadd.f32 %v3858_v8, %v3824_v28  ;;  %v3801_v10 = vadd.f32 %v4785_v32, %v3800_v33 }
 0x89c   : > { %3837 = vmatmul.f32.gmra.mxu2 %v3740_v60  ;;  %3901 = vmatmul.f32.gmra.mxu1 %v3750_v55  ;;  %v7659_v60 = vld [vmem:[#allocation8_spill] sm:$0xff] }
 0x89d   : > { %v2562_v55 = vadd.f32 %v7659_v60, %v2049_v52 }
 0x8a4   : > { %3904 = vmatmul.f32.gmra.mxu1 %v3751_v49  ;;  %v3074_v49 = vadd.f32 %v7660_v30, %v2562_v55 }
 0x8ac   : > { %3907 = vmatmul.f32.gmra.mxu1 %v3752_v22 }
 0x8b2   : > { %v3555_v54 = vpop.f32.mrf.mxu3 }
 0x8b3   : > { %v7484_v34 = vadd.f32 %v3555_v54, %v3067_v23  ;;  %v3893_v23 = vpop.f32.mrf.mxu1  ;;  %v3826_v54 = vpop.f32.mrf.mxu2 }
 0x8ba   : > { %v3558_v21 = vpop.f32.mrf.mxu3 }
 0x8bb   : > { %v7490_v1 = vadd.f32 %v3558_v21, %v3068_v58  ;;  %v3827_v58 = vadd.f32 %v3826_v54, %v3792_v25  ;;  %v3894_v21 = vadd.f32 %v3893_v23, %v3859_v26  ;;  %v3896_v14 = vpop.f32.mrf.mxu1  ;;  %v3829_v51 = vpop.f32.mrf.mxu2 }
 0x8bd   : > { %v3862_v62 = vadd.f32 %v3861_v40, %v3827_v58 }
 0x8c2   : > { %v3561_v24 = vpop.f32.mrf.mxu3 }
 0x8c3   : > { %v7496_v39 = vadd.f32 %v3561_v24, %v3069_v19  ;;  %v3961_v24 = vpop.permute.xlu1 %3960  ;;  %v3832_v50 = vpop.f32.mrf.mxu2 }
 0x8c4   : > { %v3833_v57 = vadd.f32 %v3832_v50, %v3798_v31 }
 0x8ca   : > { %v3564_v43 = vpop.f32.mrf.mxu3 }
 0x8cb   : > { %v7502_v53 = vadd.f32 %v3564_v43, %v3070_v11  ;;  %v3897_v11 = vadd.f32 %v3896_v14, %v3862_v62  ;;  %v3971_v48 = vpop.permute.xlu1 %3970  ;;  %v3986_v14 = vpop.permute.xlu0 %3985 }
 0x8d2   : > { %v3567_v6 = vpop.f32.mrf.mxu3 }
 0x8d3   : > { %v7508_v63 = vadd.f32 %v3567_v6, %v3071_v7  ;;  %v3864_v7 = vpop.f32.mrf.mxu0  ;;  %v3795_v6 = vadd.f32 %v4785_v32, %v3794_v46  ;;  %v3981_v33 = vpop.permute.xlu1 %3980 }
 0x8d5   : > { %v3830_v3 = vadd.f32 %v3829_v51, %v3795_v6 }
 0x8d7   : > { %v3865_v18 = vadd.f32 %v3864_v7, %v3830_v3 }
 0x8da   : > { %v3570_v45 = vpop.f32.mrf.mxu3 }
 0x8db   : > { %v7514_v2 = vadd.f32 %v3570_v45, %v3072_v47  ;;  %v3867_v45 = vpop.f32.mrf.mxu0 }
 0x8e2   : > { %v3573_v15 = vpop.f32.mrf.mxu3 }
 0x8e3   : > { %v7520_v44 = vadd.f32 %v3573_v15, %v3073_v13  ;;  %v3868_v15 = vadd.f32 %v3867_v45, %v3833_v57  ;;  %v3870_v60 = vpop.f32.mrf.mxu0 }
 0x8ea   : > { %v3576_v22 = vpop.f32.mrf.mxu3 }
 0x8eb   : > { %v7529_v0 = vadd.f32 %v3576_v22, %v3074_v49  ;;  %v3804_v22 = vadd.f32 %v4785_v32, %v7524_v35  ;;  %v3873_v58 = vpop.f32.mrf.mxu0 }
 0x8f2   : > { %v3928_v17 = vpop.f32.mrf.mxu3 }
 0x8f3   : > { %v3929_v61 = vadd.f32 %v3928_v17, %v3894_v21 }
 0x8f5   : > { %v3946_v19 = vmax.f32 %v3929_v61, 0.0 }
 0x8f7   : > { %v7534_v29 = vmul.f32 %v3961_v24, %v3946_v19 }
 0x8f9   : > { %3994 = vxpose.xlu1.b32.start [1/6] (short) (narrow) %v7534_v29, 64 }
 0x8fa   : > { %v3931_v43 = vpop.f32.mrf.mxu3 }
 0x8fb   : > { %v3932_v59 = vadd.f32 %v3931_v43, %v3897_v11 }
 0x8fd   : > { %v3947_v37 = vmax.f32 %v3932_v59, 0.0 }
 0x8ff   : > { %v3989_v16 = vmul.f32 %v3966_v20, %v3947_v37 }
 0x901   : > { %3995 = vxpose.xlu1.b32.cont [2/6] (short) (narrow) %v3989_v16, 64 }
 0x902   : > { %v3934_v36 = vpop.f32.mrf.mxu3 }
 0x90a   : > { %v3937_v5 = vpop.f32.mrf.mxu3 }
 0x911   : > { %v3899_v42 = vpop.f32.mrf.mxu1 }
 0x912   : > { %v3900_v47 = vadd.f32 %v3899_v42, %v3865_v18  ;;  %v3940_v56 = vpop.f32.mrf.mxu3 }
 0x914   : > { %v3935_v9 = vadd.f32 %v3934_v36, %v3900_v47 }
 0x916   : > { %v3948_v27 = vmax.f32 %v3935_v9, 0.0 }
 0x917   : > { %v3835_v41 = vpop.f32.mrf.mxu2 }
 0x918   : > { %v3990_v13 = vmul.f32 %v3971_v48, %v3948_v27  ;;  %v3836_v46 = vadd.f32 %v3835_v41, %v3801_v10 }
 0x919   : > { %v3902_v38 = vpop.f32.mrf.mxu1 }
 0x91a   : > { %v3903_v12 = vadd.f32 %v3902_v38, %v3868_v15  ;;  %3996 = vxpose.xlu1.b32.cont [3/6] (short) (narrow) %v3990_v13, 64  ;;  %v3871_v49 = vadd.f32 %v3870_v60, %v3836_v46  ;;  %v3943_v62 = vpop.f32.mrf.mxu3 }
 0x91c   : > { %v3938_v52 = vadd.f32 %v3937_v5, %v3903_v12 }
 0x91e   : > { %v3949_v55 = vmax.f32 %v3938_v52, 0.0 }
 0x91f   : > { %v3838_v28 = vpop.f32.mrf.mxu2 }
 0x920   : > { %v3991_v30 = vmul.f32 %v3976_v4, %v3949_v55  ;;  %v3839_v23 = vadd.f32 %v3838_v28, %v3804_v22 }
 0x921   : > { %v3905_v8 = vpop.f32.mrf.mxu1 }
 0x922   : > { %v3906_v26 = vadd.f32 %v3905_v8, %v3871_v49  ;;  %3997 = vxpose.xlu1.b32.cont [4/6] (short) (narrow) %v3991_v30, 64  ;;  %v3874_v17 = vadd.f32 %v3873_v58, %v3839_v23 }
 0x924   : > { %v3941_v54 = vadd.f32 %v3940_v56, %v3906_v26 }
 0x926   : > { %v3950_v25 = vmax.f32 %v3941_v54, 0.0 }
 0x928   : > { %v3992_v21 = vmul.f32 %v3981_v33, %v3950_v25 }
 0x929   : > { %v3908_v61 = vpop.f32.mrf.mxu1 }
 0x92a   : > { %v3909_v40 = vadd.f32 %v3908_v61, %v3874_v17  ;;  %3998 = vxpose.xlu1.b32.cont [5/6] (short) (narrow) %v3992_v21, 64 }
 0x92c   : > { %v3944_v19 = vadd.f32 %v3943_v62, %v3909_v40 }
 0x92e   : > { %v3951_v24 = vmax.f32 %v3944_v19, 0.0 }
 0x930   : > { %v3993_v11 = vmul.f32 %v3986_v14, %v3951_v24 }
 0x932   : > { %4060 = vmatpush.msrb.mxu0 %v3993_v11  ;;  %4307 = vmatpush.msra.mxu2 %v3993_v11 }
 0x933   : > { %3999 = vxpose.xlu1.b32.end [6/6] (short) (narrow) %v3993_v11, 64 }
 0x934   : > { %4061 = vmatpush.msrb.mxu0 %v3992_v21  ;;  %4308 = vmatpush.msra.mxu2 %v3992_v21 }
 0x936   : > { %4062 = vmatpush.msrb.mxu0 %v3991_v30  ;;  %4309 = vmatpush.msra.mxu2 %v3991_v30 }
 0x938   : > { %4063 = vmatpush.msrb.mxu0 %v3990_v13  ;;  %4310 = vmatpush.msra.mxu2 %v3990_v13 }
 0x93a   : > { %4064 = vmatpush.msrb.mxu0 %v3989_v16  ;;  %4311 = vmatpush.msra.mxu2 %v3989_v16 }
 0x93c   : > { %4065 = vmatpush.msrb.mxu0 %v7534_v29  ;;  %4312 = vmatpush.msra.mxu2 %v7534_v29 }
 0x9af   : > { %v4010_v35 = vpop.trf.xlu1 }
 0x9b0   : > { %4296 = vmatmul.msk.f32.vlgmr.msrb.gmra.mxu0 %vm1888_vm3, %v4010_v35 }
 0x9b7   : > { %v4011_v32 = vpop.trf.xlu1 }
 0x9b8   : > { %4297 = vmatmul.msk.f32.gmra.mxu0 %vm1888_vm3, %v4011_v32 }
 0x9bf   : > { %v4012_v43 = vpop.trf.xlu1 }
 0x9c0   : > { %4298 = vmatmul.msk.f32.gmra.mxu0 %vm1888_vm3, %v4012_v43 }
 0x9c7   : > { %v4013_v59 = vpop.trf.xlu1 }
 0x9c8   : > { %4299 = vmatmul.msk.f32.vlgmr.msra.gmra.mxu2 %vm1888_vm3, %v4013_v59 }
 0x9cf   : > { %v4014_v37 = vpop.trf.xlu1 }
 0x9d0   : > { %4300 = vmatmul.msk.f32.gmra.mxu2 %vm1888_vm3, %v4014_v37 }
 0x9d7   : > { %v4015_v20 = vpop.trf.xlu1 }
 0x9d8   : > { %4301 = vmatmul.msk.f32.gmra.mxu2 %vm1888_vm3, %v4015_v20 }
 0x9df   : > { %v4016_v29 = vpop.trf.xlu1 }
 0x9e0   : > { %4302 = vmatmul.msk.f32.gmra.mxu2 %vm1888_vm3, %v4016_v29 }
 0x9e7   : > { %v4017_v16 = vpop.trf.xlu1 }
 0x9e8   : > { %4303 = vmatmul.msk.f32.gmra.mxu2 %vm1888_vm3, %v4017_v16 }
 0xa2d   : > { %v4067_v51 = vpop.f32.mrf.mxu0 }
 0xa2e   : > { %v4091_v7 = vadd.f32 %v4067_v51, %v7484_v34 }
 0xa30   : > { %v4099_v6 = vmul.f32 6.1035156e-05, %v4091_v7 }
 0xa32   : > { %4107 = vst.msk [vmem:[%s278_s29] sm:$0xff] %vm924_vm2, %v4099_v6 }
 0xa35   : > { %v4070_v3 = vpop.f32.mrf.mxu0 }
 0xa36   : > { %v4092_v36 = vadd.f32 %v4070_v3, %v7490_v1 }
 0xa38   : > { %v4100_v50 = vmul.f32 6.1035156e-05, %v4092_v36 }
 0xa3a   : > { %4108 = vst.msk [vmem:[%s278_s29 + $0x8] sm:$0xff] %vm924_vm2, %v4100_v50 }
 0xa3d   : > { %v4073_v18 = vpop.f32.mrf.mxu0 }
 0xa3e   : > { %v4093_v42 = vadd.f32 %v4073_v18, %v7496_v39 }
 0xa40   : > { %v4101_v31 = vmul.f32 6.1035156e-05, %v4093_v42 }
 0xa42   : > { %4109 = vst.msk [vmem:[%s278_s29 + $0x10] sm:$0xff] %vm924_vm2, %v4101_v31 }
 0xa4b   : > { %v4076_v34 = vpop.f32.mrf.mxu2 }
 0xa4c   : > { %v4094_v47 = vadd.f32 %v4076_v34, %v7502_v53 }
 0xa4e   : > { %v4102_v45 = vmul.f32 6.1035156e-05, %v4094_v47 }
 0xa50   : > { %4110 = vst.msk [vmem:[%s278_s29 + $0x18] sm:$0xff] %vm924_vm2, %v4102_v45 }
 0xa53   : > { %v4079_v57 = vpop.f32.mrf.mxu2 }
 0xa54   : > { %v4095_v9 = vadd.f32 %v4079_v57, %v7508_v63 }
 0xa56   : > { %v4103_v5 = vmul.f32 6.1035156e-05, %v4095_v9 }
 0xa58   : > { %4111 = vst.msk [vmem:[%s278_s29 + $0x20] sm:$0xff] %vm924_vm2, %v4103_v5 }
 0xa5b   : > { %v4082_v1 = vpop.f32.mrf.mxu2 }
 0xa5c   : > { %v4096_v27 = vadd.f32 %v4082_v1, %v7514_v2 }
 0xa5e   : > { %v4104_v48 = vmul.f32 6.1035156e-05, %v4096_v27 }
 0xa60   : > { %4112 = vst.msk [vmem:[%s278_s29 + $0x28] sm:$0xff] %vm924_vm2, %v4104_v48 }
 0xa63   : > { %v4085_v39 = vpop.f32.mrf.mxu2 }
 0xa64   : > { %v4097_v41 = vadd.f32 %v4085_v39, %v7520_v44 }
 0xa66   : > { %v4105_v13 = vmul.f32 6.1035156e-05, %v4097_v41 }
 0xa68   : > { %4113 = vst.msk [vmem:[%s278_s29 + $0x30] sm:$0xff] %vm924_vm2, %v4105_v13 }
 0xa6b   : > { %v4088_v53 = vpop.f32.mrf.mxu2 }
 0xa6c   : > { %v4098_v15 = vadd.f32 %v4088_v53, %v7529_v0 }
 0xa6e   : > { %v4106_v38 = vmul.f32 6.1035156e-05, %v4098_v15 }
 0xa70   : > { %4114 = vst.msk [vmem:[%s278_s29 + $0x38] sm:$0xff] %vm924_vm2, %v4106_v38 }
 0xa71 PF: > { %s17_s24 = sadd.s32 1, %s4792_s24  }
 0xa72   : > { %p14_p4 = scmp.ge.s32.totalorder %s17_s24, 6  }
 0xa74   :  { %16 = sbr.rel (!%p14_p4) target bundleno = 1 (0x1), region = 78 }

</bundles_post_ra>
